<compile_context>
chip_gen: v7x
topology: tpu7x:2x2x1
jax: 0.10.0
libtpu: 0.0.40
codegen_flags: <defaults>
</compile_context>

<pallas_src>
import functools
import math

import jax
import jax.numpy as jnp
from jax.experimental import pallas as pl
from jax.experimental.pallas import tpu as pltpu


def _round_up(x, m):
    return (x + m - 1) // m * m


def _vmem_budget():
    """Returns (tiling budget bytes, vmem_limit_bytes) derived from the device."""
    try:
        cap = int(pltpu.get_tpu_info().vmem_capacity_bytes)
    except Exception:
        cap = 64 * 1024 * 1024          # conservative (v7x physical VMEM)
    limit = min(int(cap * 0.9), 112 * 1024 * 1024)
    return int(limit * 0.75), limit


def _pick_time_chunk(T, max_chunk=16):
    """Largest divisor of T that is <= max_chunk (statically unrolled in-kernel)."""
    tc = min(T, max_chunk)
    while T % tc:
        tc -= 1
    return tc


def _pick_batch_tile(Bp, Tc, k_in, Hp, act_bytes, w_bytes, budget,
                     last_only, max_tile=512):
    """Largest batch tile (multiple of 8, divisor of Bp) fitting the VMEM budget."""
    # Resident weights + bias (double-buffered by the default pipeline).
    wb = 2 * 2 * ((k_in + Hp) * 4 * Hp * w_bytes + 4 * Hp * 4)
    tb = min(Bp, max_tile)
    while Bp % tb:
        tb -= 8
    while tb > 8:
        x_bytes = 2 * 2 * Tc * tb * k_in * act_bytes            # fwd+rev streams, 2 bufs
        if last_only:
            out_bytes = 2 * 2 * tb * Hp * 4
        else:
            out_bytes = 2 * 2 * Tc * tb * Hp * act_bytes
        scratch = 4 * tb * Hp * 4
        temps = 3 * tb * 4 * Hp * 4                              # gates / lhs temporaries
        if wb + x_bytes + out_bytes + scratch + temps <= budget:
            break
        nt = tb - 8
        while nt > 8 and Bp % nt:
            nt -= 8
        tb = nt
    return tb


# --------------------------------------------------------------------------
# Pallas kernels
# --------------------------------------------------------------------------
def _bilstm_layer_kernel(*refs, num_parts, chunk, last_only, matmul_dtype):
    nx = 2 * num_parts
    xf = refs[:num_parts]                        # fwd-stream input parts
    xr = refs[num_parts:nx]                      # rev-stream input parts
    wf_ref, bf_ref, wr_ref, br_ref = refs[nx:nx + 4]
    hf_out, hr_out = refs[nx + 4:nx + 6]
    hf_sc, cf_sc, hr_sc, cr_sc = refs[nx + 6:nx + 10]

    c_idx = pl.program_id(1)                     # time-chunk axis (sequential)
    nchunks = pl.num_programs(1)
    hp = hf_sc.shape[-1]                         # padded hidden width (x128)

    @pl.when(c_idx == 0)
    def _():
        hf_sc[...] = jnp.zeros_like(hf_sc)
        cf_sc[...] = jnp.zeros_like(cf_sc)
        hr_sc[...] = jnp.zeros_like(hr_sc)
        cr_sc[...] = jnp.zeros_like(cr_sc)

    # Pre-stacked [W_ih; W_hh] weights, already in matmul_dtype (no in-kernel
    # weight casts); they stay VMEM-resident across the whole time loop.
    wf = wf_ref[...]
    wr = wr_ref[...]
    bf = bf_ref[...]
    br = br_ref[...]

    def sig(x):                                  # sigmoid = 0.5*tanh(0.5x)+0.5
        return 0.5 * jnp.tanh(0.5 * x) + 0.5

    def cell(x_parts, h, c_state, w, b):
        # One fused MXU matmul: lhs = [x_parts... | h], K = sum(F_i) + Hp.
        lhs = jnp.concatenate(list(x_parts) + [h.astype(matmul_dtype)], axis=-1)
        gates = jnp.dot(lhs, w, preferred_element_type=jnp.float32) + b
        i_g = sig(gates[:, 0 * hp:1 * hp])
        f_g = sig(gates[:, 1 * hp:2 * hp])
        g_g = jnp.tanh(gates[:, 2 * hp:3 * hp])
        o_g = sig(gates[:, 3 * hp:4 * hp])
        c_new = f_g * c_state + i_g * g_g
        h_new = o_g * jnp.tanh(c_new)
        return h_new, c_new

    hf, cf = hf_sc[...], cf_sc[...]
    hr, cr = hr_sc[...], cr_sc[...]

    # Static unroll over the time chunk (chunk <= 16).
    # TODO(synk): switch to lax.fori_loop for very large chunks.
    for s in range(chunk):
        # Forward direction: global time t = c_idx*chunk + s.
        hf, cf = cell([p[s] for p in xf], hf, cf, wf, bf)
        # Reverse direction: global time t = T-1 - (c_idx*chunk + s); its input/
        # output block index is nchunks-1-c_idx, local index chunk-1-s (outputs
        # are stored in natural time order).
        hr, cr = cell([p[chunk - 1 - s] for p in xr], hr, cr, wr, br)

        if last_only:
            if s == chunk - 1:
                @pl.when(c_idx == nchunks - 1)           # fwd hidden at t = T-1
                def _():
                    hf_out[...] = hf.astype(hf_out.dtype)
            if s == 0:
                @pl.when(c_idx == 0)                     # rev hidden at t = T-1
                def _():
                    hr_out[...] = hr.astype(hr_out.dtype)
        else:
            hf_out[s] = hf.astype(hf_out.dtype)
            hr_out[chunk - 1 - s] = hr.astype(hr_out.dtype)

    hf_sc[...] = hf
    cf_sc[...] = cf
    hr_sc[...] = hr
    cr_sc[...] = cr


def bilstm_layer_pallas(x_parts, w_f, b_f, w_r, b_r, *, hidden_pad,
                        matmul_dtype=jnp.float32, last_only=False,
                        batch_tile=None, time_chunk=None,
                        vmem_limit_bytes=None):
    """One bidirectional LSTM layer over a whole (time-major, padded) sequence.

    x_parts: tuple of time-major inputs [T, Bp, Wi] (lane-aligned widths) whose
    lane-concat is the layer input.  Returns (h_fwd, h_rev): full sequences
    [T, Bp, Hp] in natural time order, or just the t=T-1 hidden states
    [Bp, Hp] (f32) when last_only=True.
    """
    T, Bp = x_parts[0].shape[:2]
    widths = [p.shape[-1] for p in x_parts]
    Hp = hidden_pad
    Tc = time_chunk or _pick_time_chunk(T)
    assert T % Tc == 0, "time_chunk must divide T"
    nchunks = T // Tc

    act_dtype = x_parts[0].dtype
    if batch_tile is None:
        budget, limit = _vmem_budget()
        vmem_limit_bytes = vmem_limit_bytes or limit
        batch_tile = _pick_batch_tile(
            Bp, Tc, sum(widths), Hp, jnp.dtype(act_dtype).itemsize,
            jnp.dtype(w_f.dtype).itemsize, budget, last_only)
    TB = batch_tile
    nb = Bp // TB

    fwd_map = lambda b, c: (c, b, 0)
    rev_map = lambda b, c: (nchunks - 1 - c, b, 0)
    const2 = lambda b, c: (0, 0)

    in_specs = (
        [pl.BlockSpec((Tc, TB, w), fwd_map) for w in widths]        # fwd stream
        + [pl.BlockSpec((Tc, TB, w), rev_map) for w in widths]      # rev stream
        + [pl.BlockSpec(w_f.shape, const2),                         # stacked W fwd
           pl.BlockSpec(b_f.shape, const2),                         # bias fwd
           pl.BlockSpec(w_r.shape, const2),                         # stacked W rev
           pl.BlockSpec(b_r.shape, const2)])                        # bias rev

    if last_only:
        out_shape = (jax.ShapeDtypeStruct((Bp, Hp), jnp.float32),
                     jax.ShapeDtypeStruct((Bp, Hp), jnp.float32))
        out_specs = (pl.BlockSpec((TB, Hp), lambda b, c: (b, 0)),
                     pl.BlockSpec((TB, Hp), lambda b, c: (b, 0)))
    else:
        out_shape = (jax.ShapeDtypeStruct((T, Bp, Hp), act_dtype),
                     jax.ShapeDtypeStruct((T, Bp, Hp), act_dtype))
        out_specs = (pl.BlockSpec((Tc, TB, Hp), fwd_map),
                     pl.BlockSpec((Tc, TB, Hp), rev_map))

    kernel = functools.partial(_bilstm_layer_kernel, num_parts=len(x_parts),
                               chunk=Tc, last_only=last_only,
                               matmul_dtype=matmul_dtype)

    return pl.pallas_call(
        kernel,
        out_shape=out_shape,
        grid_spec=pltpu.PrefetchScalarGridSpec(
            num_scalar_prefetch=0,
            grid=(nb, nchunks),
            in_specs=in_specs,
            out_specs=out_specs,
            scratch_shapes=[pltpu.VMEM((TB, Hp), jnp.float32)] * 4),
        compiler_params=pltpu.CompilerParams(
            dimension_semantics=("parallel", "arbitrary"),
            vmem_limit_bytes=vmem_limit_bytes),
    )(*x_parts, *x_parts, w_f, b_f, w_r, b_r)


def _linear_kernel(x_ref, w_ref, b_ref, o_ref, *, matmul_dtype):
    acc = jnp.dot(x_ref[...].astype(matmul_dtype), w_ref[...],
                  preferred_element_type=jnp.float32) + b_ref[...]
    o_ref[...] = acc.astype(o_ref.dtype)


def linear_pallas(x, w, b, *, matmul_dtype=jnp.float32, batch_tile=None,
                  vmem_limit_bytes=None):
    """x: [Bp, Fin]; w: [Fin, Fout] (pre-cast to matmul_dtype); b: [1, Fout]."""
    Bp, Fin = x.shape
    Fout = w.shape[1]
    TB = batch_tile or min(Bp, 512)
    while Bp % TB:
        TB -= 8
    nb = Bp // TB
    return pl.pallas_call(
        functools.partial(_linear_kernel, matmul_dtype=matmul_dtype),
        out_shape=jax.ShapeDtypeStruct((Bp, Fout), jnp.float32),
        grid_spec=pltpu.PrefetchScalarGridSpec(
            num_scalar_prefetch=0,
            grid=(nb,),
            in_specs=[
                pl.BlockSpec((TB, Fin), lambda b: (b, 0)),
                pl.BlockSpec((Fin, Fout), lambda b: (0, 0)),
                pl.BlockSpec((1, Fout), lambda b: (0, 0)),
            ],
            out_specs=pl.BlockSpec((TB, Fout), lambda b: (b, 0)),
        ),
        compiler_params=pltpu.CompilerParams(
            dimension_semantics=("parallel",),
            vmem_limit_bytes=vmem_limit_bytes),
    )(x, w, b)


# --------------------------------------------------------------------------
# Weight padding (PyTorch layout -> stacked lane-dense [in+H, 4*Hp] layout)
# --------------------------------------------------------------------------
def _pad_lstm_dir(w_ih, w_hh, b_ih, b_hh, H, Hp, in_segments, in_pad,
                  matmul_dtype):
    """PyTorch (i,f,g,o) gate weights -> one stacked zero-padded [in_pad+Hp, 4*Hp]
    matrix (rows = [input parts ; hidden]) pre-cast to matmul_dtype, plus the
    combined f32 bias [1, 4*Hp].  Padded gate columns get zero weight AND zero
    bias, so padded hidden lanes stay exactly 0 through the recurrence (c0=0).
    """
    w_p = jnp.zeros((in_pad + Hp, 4 * Hp), jnp.float32)
    b_p = jnp.zeros((1, 4 * Hp), jnp.float32)
    for g in range(4):
        for (po, oo, ln) in in_segments:
            w_p = w_p.at[po:po + ln, g * Hp:g * Hp + H].set(
                w_ih[g * H:(g + 1) * H, oo:oo + ln].T)
        w_p = w_p.at[in_pad:in_pad + H, g * Hp:g * Hp + H].set(
            w_hh[g * H:(g + 1) * H, :].T)
        b_p = b_p.at[0, g * Hp:g * Hp + H].set(
            b_ih[g * H:(g + 1) * H] + b_hh[g * H:(g + 1) * H])
    return w_p.astype(matmul_dtype), b_p


# --------------------------------------------------------------------------
# Full forward (mirrors BiLSTM.forward)
# --------------------------------------------------------------------------
def bilstm_forward(x, params, *, input_size, hidden_size, num_layers,
                   num_classes, matmul_dtype=jnp.float32,
                   time_chunk=None, batch_tile=None):
    # Shape normalization, same as the PyTorch forward().
    if x.ndim == 4:
        x = jnp.squeeze(x, axis=1)            # [B, 1, T, F] -> [B, T, F]
    elif x.ndim == 3:
        x = jnp.transpose(x, (0, 2, 1))       # [B, F, T]    -> [B, T, F]

    B, T, F_in = x.shape
    H = hidden_size
    Bp = _round_up(B, 8)
    Fp = _round_up(F_in, 128)
    Hp = _round_up(H, 128)
    Cp = _round_up(num_classes, 128)

    # Time-major, sublane/lane padded activations (matmul_dtype): [T, Bp, Fp].
    x_tm = jnp.transpose(x, (1, 0, 2)).astype(jnp.float32)
    x_tm = jnp.pad(x_tm, ((0, 0), (0, Bp - B), (0, Fp - F_in)))
    x_parts = (x_tm.astype(matmul_dtype),)

    in_segments = [(0, 0, F_in)]
    in_pad = Fp
    hf = hr = None
    for l in range(num_layers):
        last = (l == num_layers - 1)
        w_f, b_f = _pad_lstm_dir(*params["lstm"][l][0], H, Hp,
                                 in_segments, in_pad, matmul_dtype)
        w_r, b_r = _pad_lstm_dir(*params["lstm"][l][1], H, Hp,
                                 in_segments, in_pad, matmul_dtype)
        hf, hr = bilstm_layer_pallas(
            x_parts, w_f, b_f, w_r, b_r, hidden_pad=Hp,
            matmul_dtype=matmul_dtype, last_only=last,
            batch_tile=batch_tile, time_chunk=time_chunk)
        if not last:
            # Next layer consumes (h_fwd, h_rev) directly as two lane-aligned
            # parts -- no HBM concatenate between layers.
            x_parts = (hf, hr)
            in_segments = [(0, 0, H), (Hp, H, H)]
            in_pad = 2 * Hp

    # PyTorch out[:, -1, :] == [h_fwd(T-1) | h_rev(T-1)]; both [Bp, Hp] (tiny).
    last_cat = jnp.concatenate([hf, hr], axis=-1)          # [Bp, 2*Hp]

    w_fc, b_fc = params["fc"]                               # [C, 2H], [C]
    w_fc_p = jnp.zeros((2 * Hp, Cp), jnp.float32)
    w_fc_p = w_fc_p.at[0:H, 0:num_classes].set(w_fc[:, 0:H].T)
    w_fc_p = w_fc_p.at[Hp:Hp + H, 0:num_classes].set(w_fc[:, H:2 * H].T)
    b_fc_p = jnp.zeros((1, Cp), jnp.float32).at[0, 0:num_classes].set(b_fc)

    logits = linear_pallas(last_cat, w_fc_p.astype(matmul_dtype), b_fc_p,
                           matmul_dtype=matmul_dtype)
    return logits[:B, :num_classes]


# --------------------------------------------------------------------------
# Deterministic PyTorch-style init + pure-JAX reference
# --------------------------------------------------------------------------
def init_bilstm_params(key, input_size, hidden_size, num_layers, num_classes):
    params = {"lstm": [], "fc": None}
    bound = 1.0 / math.sqrt(hidden_size)
    keys = jax.random.split(key, num_layers * 2 + 1)
    idx = 0
    for l in range(num_layers):
        in_f = input_size if l == 0 else 2 * hidden_size
        dirs = []
        for _d in range(2):
            k1, k2, k3, k4 = jax.random.split(keys[idx], 4)
            idx += 1
            w_ih = jax.random.uniform(k1, (4 * hidden_size, in_f), jnp.float32, -bound, bound)
            w_hh = jax.random.uniform(k2, (4 * hidden_size, hidden_size), jnp.float32, -bound, bound)
            b_ih = jax.random.uniform(k3, (4 * hidden_size,), jnp.float32, -bound, bound)
            b_hh = jax.random.uniform(k4, (4 * hidden_size,), jnp.float32, -bound, bound)
            dirs.append((w_ih, w_hh, b_ih, b_hh))
        params["lstm"].append(dirs)
    kw, kb = jax.random.split(keys[idx])
    fc_bound = 1.0 / math.sqrt(2 * hidden_size)
    w_fc = jax.random.uniform(kw, (num_classes, 2 * hidden_size), jnp.float32, -fc_bound, fc_bound)
    b_fc = jax.random.uniform(kb, (num_classes,), jnp.float32, -fc_bound, fc_bound)
    params["fc"] = (w_fc, b_fc)
    return params


def bilstm_reference(x, params, *, hidden_size, num_layers):
    if x.ndim == 4:
        x = jnp.squeeze(x, axis=1)
    elif x.ndim == 3:
        x = jnp.transpose(x, (0, 2, 1))
    B, T, _ = x.shape
    H = hidden_size
    prec = jax.lax.Precision.HIGHEST
    layer_in = x
    for l in range(num_layers):
        outs = []
        for d in range(2):
            w_ih, w_hh, b_ih, b_hh = params["lstm"][l][d]
            h = jnp.zeros((B, H), jnp.float32)
            c = jnp.zeros((B, H), jnp.float32)
            hs = []
            order = range(T) if d == 0 else range(T - 1, -1, -1)
            for t in order:
                xt = layer_in[:, t, :]
                gates = (jnp.dot(xt, w_ih.T, precision=prec)
                         + jnp.dot(h, w_hh.T, precision=prec)
                         + b_ih + b_hh)
                i_g = jax.nn.sigmoid(gates[:, 0:H])
                f_g = jax.nn.sigmoid(gates[:, H:2 * H])
                g_g = jnp.tanh(gates[:, 2 * H:3 * H])
                o_g = jax.nn.sigmoid(gates[:, 3 * H:4 * H])
                c = f_g * c + i_g * g_g
                h = o_g * jnp.tanh(c)
                hs.append(h)
            if d == 1:
                hs = hs[::-1]
            outs.append(jnp.stack(hs, axis=1))
        layer_in = jnp.concatenate(outs, axis=-1)
    last = layer_in[:, -1, :]
    w_fc, b_fc = params["fc"]
    return jnp.dot(last, w_fc.T, precision=prec) + b_fc


if __name__ == "__main__":
    # Small shapes consistent with BiLSTM(input_size, hidden_size, num_layers, num_classes).
    batch, seq_len = 4, 12
    input_size, hidden_size, num_layers, num_classes = 16, 32, 2, 5

    key = jax.random.PRNGKey(0)
    kx, kp = jax.random.split(key)

    # 4-D input exercises the squeeze(1) branch of the PyTorch forward.
    x = jax.random.normal(kx, (batch, 1, seq_len, input_size), jnp.float32)
    params = init_bilstm_params(kp, input_size, hidden_size, num_layers, num_classes)

    out = bilstm_forward(x, params,
                         input_size=input_size, hidden_size=hidden_size,
                         num_layers=num_layers, num_classes=num_classes,
                         matmul_dtype=jnp.float32,  # jnp.bfloat16 = fast path on v6e/v7x
                         time_chunk=4)              # exercises multi-chunk h/c carry
    out = jax.block_until_ready(out)

    ref = bilstm_reference(x, params, hidden_size=hidden_size, num_layers=num_layers)

    assert out.shape == (batch, num_classes)
    assert jnp.allclose(out, ref, atol=1e-3, rtol=1e-3), "mismatch vs reference"

    print("KERNEL_OK")
</pallas_src>

<mosaic_0001>
module attributes {stable_mosaic.version = 11 : i64} {
  func.func @_bilstm_layer_kernel(%arg0: i32, %arg1: i32, %arg2: memref<4x8x128xf32, #tpu.memory_space<vmem>>, %arg3: memref<4x8x128xf32, #tpu.memory_space<vmem>>, %arg4: memref<256x512xf32, #tpu.memory_space<vmem>>, %arg5: memref<1x512xf32, #tpu.memory_space<vmem>>, %arg6: memref<256x512xf32, #tpu.memory_space<vmem>>, %arg7: memref<1x512xf32, #tpu.memory_space<vmem>>, %arg8: memref<4x8x128xf32, #tpu.memory_space<vmem>>, %arg9: memref<4x8x128xf32, #tpu.memory_space<vmem>>, %arg10: memref<8x128xf32, #tpu.memory_space<vmem>>, %arg11: memref<8x128xf32, #tpu.memory_space<vmem>>, %arg12: memref<8x128xf32, #tpu.memory_space<vmem>>, %arg13: memref<8x128xf32, #tpu.memory_space<vmem>>) attributes {dimension_semantics = [#tpu.dimension_semantics<parallel>, #tpu.dimension_semantics<arbitrary>], iteration_bounds = array<i64: 1, 3>, scalar_prefetch = 0 : i64, scratch_operands = 4 : i64, tpu.core_type = #tpu.core_type<tc>, window_params = [{transform_indices = @transform_0, window_bounds = array<i64: 4, 8, 128>}, {transform_indices = @transform_1, window_bounds = array<i64: 4, 8, 128>}, {pipeline_mode = #tpu.pipeline_mode<synchronous>, transform_indices = @transform_2, window_bounds = array<i64: 256, 512>}, {pipeline_mode = #tpu.pipeline_mode<synchronous>, transform_indices = @transform_3, window_bounds = array<i64: 1, 512>}, {pipeline_mode = #tpu.pipeline_mode<synchronous>, transform_indices = @transform_4, window_bounds = array<i64: 256, 512>}, {pipeline_mode = #tpu.pipeline_mode<synchronous>, transform_indices = @transform_5, window_bounds = array<i64: 1, 512>}, {transform_indices = @transform_6, window_bounds = array<i64: 4, 8, 128>}, {transform_indices = @transform_7, window_bounds = array<i64: 4, 8, 128>}]} {
    %c0_i32 = arith.constant 0 : i32
    %0 = arith.cmpi eq, %arg1, %c0_i32 : i32
    %1 = arith.extui %0 : i1 to i32
    %c0_i32_0 = arith.constant 0 : i32
    %2 = arith.cmpi ne, %1, %c0_i32_0 : i32
    scf.if %2 {
      %cst_148 = arith.constant 0.000000e+00 : f32
      %335 = vector.broadcast %cst_148 : f32 to vector<8x128xf32>
      %c0_149 = arith.constant 0 : index
      %c0_150 = arith.constant 0 : index
      %336 = vector.load %arg10[%c0_149, %c0_150] : memref<8x128xf32, #tpu.memory_space<vmem>>, vector<8x128xf32>
      tpu.vector_store %arg10[%c0_149, %c0_150], %335 {strides = array<i32>} : memref<8x128xf32, #tpu.memory_space<vmem>>, vector<8x128xf32>,
      %cst_151 = arith.constant 0.000000e+00 : f32
      %337 = vector.broadcast %cst_151 : f32 to vector<8x128xf32>
      %c0_152 = arith.constant 0 : index
      %c0_153 = arith.constant 0 : index
      %338 = vector.load %arg11[%c0_152, %c0_153] : memref<8x128xf32, #tpu.memory_space<vmem>>, vector<8x128xf32>
      tpu.vector_store %arg11[%c0_152, %c0_153], %337 {strides = array<i32>} : memref<8x128xf32, #tpu.memory_space<vmem>>, vector<8x128xf32>,
      %cst_154 = arith.constant 0.000000e+00 : f32
      %339 = vector.broadcast %cst_154 : f32 to vector<8x128xf32>
      %c0_155 = arith.constant 0 : index
      %c0_156 = arith.constant 0 : index
      %340 = vector.load %arg12[%c0_155, %c0_156] : memref<8x128xf32, #tpu.memory_space<vmem>>, vector<8x128xf32>
      tpu.vector_store %arg12[%c0_155, %c0_156], %339 {strides = array<i32>} : memref<8x128xf32, #tpu.memory_space<vmem>>, vector<8x128xf32>,
      %cst_157 = arith.constant 0.000000e+00 : f32
      %341 = vector.broadcast %cst_157 : f32 to vector<8x128xf32>
      %c0_158 = arith.constant 0 : index
      %c0_159 = arith.constant 0 : index
      %342 = vector.load %arg13[%c0_158, %c0_159] : memref<8x128xf32, #tpu.memory_space<vmem>>, vector<8x128xf32>
      tpu.vector_store %arg13[%c0_158, %c0_159], %341 {strides = array<i32>} : memref<8x128xf32, #tpu.memory_space<vmem>>, vector<8x128xf32>,
    } else {
    }
    %c0 = arith.constant 0 : index
    %c0_1 = arith.constant 0 : index
    %3 = vector.load %arg4[%c0, %c0_1] : memref<256x512xf32, #tpu.memory_space<vmem>>, vector<256x512xf32>
    %c0_2 = arith.constant 0 : index
    %c0_3 = arith.constant 0 : index
    %4 = vector.load %arg6[%c0_2, %c0_3] : memref<256x512xf32, #tpu.memory_space<vmem>>, vector<256x512xf32>
    %c0_4 = arith.constant 0 : index
    %c0_5 = arith.constant 0 : index
    %5 = vector.load %arg5[%c0_4, %c0_5] : memref<1x512xf32, #tpu.memory_space<vmem>>, vector<1x512xf32>
    %c0_6 = arith.constant 0 : index
    %c0_7 = arith.constant 0 : index
    %6 = vector.load %arg7[%c0_6, %c0_7] : memref<1x512xf32, #tpu.memory_space<vmem>>, vector<1x512xf32>
    %c0_8 = arith.constant 0 : index
    %c0_9 = arith.constant 0 : index
    %7 = vector.load %arg10[%c0_8, %c0_9] : memref<8x128xf32, #tpu.memory_space<vmem>>, vector<8x128xf32>
    %c0_10 = arith.constant 0 : index
    %c0_11 = arith.constant 0 : index
    %8 = vector.load %arg11[%c0_10, %c0_11] : memref<8x128xf32, #tpu.memory_space<vmem>>, vector<8x128xf32>
    %c0_12 = arith.constant 0 : index
    %c0_13 = arith.constant 0 : index
    %9 = vector.load %arg12[%c0_12, %c0_13] : memref<8x128xf32, #tpu.memory_space<vmem>>, vector<8x128xf32>
    %c0_14 = arith.constant 0 : index
    %c0_15 = arith.constant 0 : index
    %10 = vector.load %arg13[%c0_14, %c0_15] : memref<8x128xf32, #tpu.memory_space<vmem>>, vector<8x128xf32>
    %c0_16 = arith.constant 0 : index
    %c0_17 = arith.constant 0 : index
    %c0_18 = arith.constant 0 : index
    %11 = vector.load %arg2[%c0_16, %c0_17, %c0_18] : memref<4x8x128xf32, #tpu.memory_space<vmem>>, vector<1x8x128xf32>
    %12 = vector.shape_cast %11 : vector<1x8x128xf32> to vector<8x128xf32>
    %13 = tpu.concatenate %12, %7 in 1 : vector<8x128xf32>, vector<8x128xf32> -> vector<8x256xf32>
    %cst = arith.constant dense<0.000000e+00> : vector<8x512xf32>
    %14 = tpu.matmul %13, %3, %cst {dimension_numbers = #tpu.dot_dimension_numbers<[1], [0], [0], [1], [0, 0, 1, 1], [], []>} : vector<8x256xf32>, vector<256x512xf32>, vector<8x512xf32> -> vector<8x512xf32>
    %15 = vector.broadcast %5 : vector<1x512xf32> to vector<8x512xf32>
    %16 = arith.addf %14, %15 : vector<8x512xf32>
    %17 = vector.extract_strided_slice %16 {offsets = [0, 0], sizes = [8, 128], strides = [1, 1]} : vector<8x512xf32> to vector<8x128xf32>
    %cst_19 = arith.constant 5.000000e-01 : f32
    %18 = vector.broadcast %cst_19 : f32 to vector<8x128xf32>
    %19 = arith.mulf %18, %17 : vector<8x128xf32>
    %20 = math.tanh %19 : vector<8x128xf32>
    %cst_20 = arith.constant 5.000000e-01 : f32
    %21 = vector.broadcast %cst_20 : f32 to vector<8x128xf32>
    %22 = arith.mulf %21, %20 : vector<8x128xf32>
    %cst_21 = arith.constant 5.000000e-01 : f32
    %23 = vector.broadcast %cst_21 : f32 to vector<8x128xf32>
    %24 = arith.addf %22, %23 : vector<8x128xf32>
    %25 = vector.extract_strided_slice %16 {offsets = [0, 128], sizes = [8, 128], strides = [1, 1]} : vector<8x512xf32> to vector<8x128xf32>
    %cst_22 = arith.constant 5.000000e-01 : f32
    %26 = vector.broadcast %cst_22 : f32 to vector<8x128xf32>
    %27 = arith.mulf %26, %25 : vector<8x128xf32>
    %28 = math.tanh %27 : vector<8x128xf32>
    %cst_23 = arith.constant 5.000000e-01 : f32
    %29 = vector.broadcast %cst_23 : f32 to vector<8x128xf32>
    %30 = arith.mulf %29, %28 : vector<8x128xf32>
    %cst_24 = arith.constant 5.000000e-01 : f32
    %31 = vector.broadcast %cst_24 : f32 to vector<8x128xf32>
    %32 = arith.addf %30, %31 : vector<8x128xf32>
    %33 = vector.extract_strided_slice %16 {offsets = [0, 256], sizes = [8, 128], strides = [1, 1]} : vector<8x512xf32> to vector<8x128xf32>
    %34 = math.tanh %33 : vector<8x128xf32>
    %35 = vector.extract_strided_slice %16 {offsets = [0, 384], sizes = [8, 128], strides = [1, 1]} : vector<8x512xf32> to vector<8x128xf32>
    %cst_25 = arith.constant 5.000000e-01 : f32
    %36 = vector.broadcast %cst_25 : f32 to vector<8x128xf32>
    %37 = arith.mulf %36, %35 : vector<8x128xf32>
    %38 = math.tanh %37 : vector<8x128xf32>
    %cst_26 = arith.constant 5.000000e-01 : f32
    %39 = vector.broadcast %cst_26 : f32 to vector<8x128xf32>
    %40 = arith.mulf %39, %38 : vector<8x128xf32>
    %cst_27 = arith.constant 5.000000e-01 : f32
    %41 = vector.broadcast %cst_27 : f32 to vector<8x128xf32>
    %42 = arith.addf %40, %41 : vector<8x128xf32>
    %43 = arith.mulf %32, %8 : vector<8x128xf32>
    %44 = arith.mulf %24, %34 : vector<8x128xf32>
    %45 = arith.addf %43, %44 : vector<8x128xf32>
    %46 = math.tanh %45 : vector<8x128xf32>
    %47 = arith.mulf %42, %46 : vector<8x128xf32>
    %c3 = arith.constant 3 : index
    %c0_28 = arith.constant 0 : index
    %c0_29 = arith.constant 0 : index
    %48 = vector.load %arg3[%c3, %c0_28, %c0_29] : memref<4x8x128xf32, #tpu.memory_space<vmem>>, vector<1x8x128xf32>
    %49 = vector.shape_cast %48 : vector<1x8x128xf32> to vector<8x128xf32>
    %50 = tpu.concatenate %49, %9 in 1 : vector<8x128xf32>, vector<8x128xf32> -> vector<8x256xf32>
    %cst_30 = arith.constant dense<0.000000e+00> : vector<8x512xf32>
    %51 = tpu.matmul %50, %4, %cst_30 {dimension_numbers = #tpu.dot_dimension_numbers<[1], [0], [0], [1], [0, 0, 1, 1], [], []>} : vector<8x256xf32>, vector<256x512xf32>, vector<8x512xf32> -> vector<8x512xf32>
    %52 = vector.broadcast %6 : vector<1x512xf32> to vector<8x512xf32>
    %53 = arith.addf %51, %52 : vector<8x512xf32>
    %54 = vector.extract_strided_slice %53 {offsets = [0, 0], sizes = [8, 128], strides = [1, 1]} : vector<8x512xf32> to vector<8x128xf32>
    %cst_31 = arith.constant 5.000000e-01 : f32
    %55 = vector.broadcast %cst_31 : f32 to vector<8x128xf32>
    %56 = arith.mulf %55, %54 : vector<8x128xf32>
    %57 = math.tanh %56 : vector<8x128xf32>
    %cst_32 = arith.constant 5.000000e-01 : f32
    %58 = vector.broadcast %cst_32 : f32 to vector<8x128xf32>
    %59 = arith.mulf %58, %57 : vector<8x128xf32>
    %cst_33 = arith.constant 5.000000e-01 : f32
    %60 = vector.broadcast %cst_33 : f32 to vector<8x128xf32>
    %61 = arith.addf %59, %60 : vector<8x128xf32>
    %62 = vector.extract_strided_slice %53 {offsets = [0, 128], sizes = [8, 128], strides = [1, 1]} : vector<8x512xf32> to vector<8x128xf32>
    %cst_34 = arith.constant 5.000000e-01 : f32
    %63 = vector.broadcast %cst_34 : f32 to vector<8x128xf32>
    %64 = arith.mulf %63, %62 : vector<8x128xf32>
    %65 = math.tanh %64 : vector<8x128xf32>
    %cst_35 = arith.constant 5.000000e-01 : f32
    %66 = vector.broadcast %cst_35 : f32 to vector<8x128xf32>
    %67 = arith.mulf %66, %65 : vector<8x128xf32>
    %cst_36 = arith.constant 5.000000e-01 : f32
    %68 = vector.broadcast %cst_36 : f32 to vector<8x128xf32>
    %69 = arith.addf %67, %68 : vector<8x128xf32>
    %70 = vector.extract_strided_slice %53 {offsets = [0, 256], sizes = [8, 128], strides = [1, 1]} : vector<8x512xf32> to vector<8x128xf32>
    %71 = math.tanh %70 : vector<8x128xf32>
    %72 = vector.extract_strided_slice %53 {offsets = [0, 384], sizes = [8, 128], strides = [1, 1]} : vector<8x512xf32> to vector<8x128xf32>
    %cst_37 = arith.constant 5.000000e-01 : f32
    %73 = vector.broadcast %cst_37 : f32 to vector<8x128xf32>
    %74 = arith.mulf %73, %72 : vector<8x128xf32>
    %75 = math.tanh %74 : vector<8x128xf32>
    %cst_38 = arith.constant 5.000000e-01 : f32
    %76 = vector.broadcast %cst_38 : f32 to vector<8x128xf32>
    %77 = arith.mulf %76, %75 : vector<8x128xf32>
    %cst_39 = arith.constant 5.000000e-01 : f32
    %78 = vector.broadcast %cst_39 : f32 to vector<8x128xf32>
    %79 = arith.addf %77, %78 : vector<8x128xf32>
    %80 = arith.mulf %69, %10 : vector<8x128xf32>
    %81 = arith.mulf %61, %71 : vector<8x128xf32>
    %82 = arith.addf %80, %81 : vector<8x128xf32>
    %83 = math.tanh %82 : vector<8x128xf32>
    %84 = arith.mulf %79, %83 : vector<8x128xf32>
    %c0_40 = arith.constant 0 : index
    %c0_41 = arith.constant 0 : index
    %c0_42 = arith.constant 0 : index
    %85 = vector.load %arg8[%c0_40, %c0_41, %c0_42] : memref<4x8x128xf32, #tpu.memory_space<vmem>>, vector<1x8x128xf32>
    %86 = vector.shape_cast %85 : vector<1x8x128xf32> to vector<8x128xf32>
    %87 = vector.shape_cast %47 : vector<8x128xf32> to vector<1x8x128xf32>
    tpu.vector_store %arg8[%c0_40, %c0_41, %c0_42], %87 {strides = array<i32>} : memref<4x8x128xf32, #tpu.memory_space<vmem>>, vector<1x8x128xf32>,
    %c3_43 = arith.constant 3 : index
    %c0_44 = arith.constant 0 : index
    %c0_45 = arith.constant 0 : index
    %88 = vector.load %arg9[%c3_43, %c0_44, %c0_45] : memref<4x8x128xf32, #tpu.memory_space<vmem>>, vector<1x8x128xf32>
    %89 = vector.shape_cast %88 : vector<1x8x128xf32> to vector<8x128xf32>
    %90 = vector.shape_cast %84 : vector<8x128xf32> to vector<1x8x128xf32>
    tpu.vector_store %arg9[%c3_43, %c0_44, %c0_45], %90 {strides = array<i32>} : memref<4x8x128xf32, #tpu.memory_space<vmem>>, vector<1x8x128xf32>,
    %c1 = arith.constant 1 : index
    %c0_46 = arith.constant 0 : index
    %c0_47 = arith.constant 0 : index
    %91 = vector.load %arg2[%c1, %c0_46, %c0_47] : memref<4x8x128xf32, #tpu.memory_space<vmem>>, vector<1x8x128xf32>
    %92 = vector.shape_cast %91 : vector<1x8x128xf32> to vector<8x128xf32>
    %93 = tpu.concatenate %92, %47 in 1 : vector<8x128xf32>, vector<8x128xf32> -> vector<8x256xf32>
    %cst_48 = arith.constant dense<0.000000e+00> : vector<8x512xf32>
    %94 = tpu.matmul %93, %3, %cst_48 {dimension_numbers = #tpu.dot_dimension_numbers<[1], [0], [0], [1], [0, 0, 1, 1], [], []>} : vector<8x256xf32>, vector<256x512xf32>, vector<8x512xf32> -> vector<8x512xf32>
    %95 = vector.broadcast %5 : vector<1x512xf32> to vector<8x512xf32>
    %96 = arith.addf %94, %95 : vector<8x512xf32>
    %97 = vector.extract_strided_slice %96 {offsets = [0, 0], sizes = [8, 128], strides = [1, 1]} : vector<8x512xf32> to vector<8x128xf32>
    %cst_49 = arith.constant 5.000000e-01 : f32
    %98 = vector.broadcast %cst_49 : f32 to vector<8x128xf32>
    %99 = arith.mulf %98, %97 : vector<8x128xf32>
    %100 = math.tanh %99 : vector<8x128xf32>
    %cst_50 = arith.constant 5.000000e-01 : f32
    %101 = vector.broadcast %cst_50 : f32 to vector<8x128xf32>
    %102 = arith.mulf %101, %100 : vector<8x128xf32>
    %cst_51 = arith.constant 5.000000e-01 : f32
    %103 = vector.broadcast %cst_51 : f32 to vector<8x128xf32>
    %104 = arith.addf %102, %103 : vector<8x128xf32>
    %105 = vector.extract_strided_slice %96 {offsets = [0, 128], sizes = [8, 128], strides = [1, 1]} : vector<8x512xf32> to vector<8x128xf32>
    %cst_52 = arith.constant 5.000000e-01 : f32
    %106 = vector.broadcast %cst_52 : f32 to vector<8x128xf32>
    %107 = arith.mulf %106, %105 : vector<8x128xf32>
    %108 = math.tanh %107 : vector<8x128xf32>
    %cst_53 = arith.constant 5.000000e-01 : f32
    %109 = vector.broadcast %cst_53 : f32 to vector<8x128xf32>
    %110 = arith.mulf %109, %108 : vector<8x128xf32>
    %cst_54 = arith.constant 5.000000e-01 : f32
    %111 = vector.broadcast %cst_54 : f32 to vector<8x128xf32>
    %112 = arith.addf %110, %111 : vector<8x128xf32>
    %113 = vector.extract_strided_slice %96 {offsets = [0, 256], sizes = [8, 128], strides = [1, 1]} : vector<8x512xf32> to vector<8x128xf32>
    %114 = math.tanh %113 : vector<8x128xf32>
    %115 = vector.extract_strided_slice %96 {offsets = [0, 384], sizes = [8, 128], strides = [1, 1]} : vector<8x512xf32> to vector<8x128xf32>
    %cst_55 = arith.constant 5.000000e-01 : f32
    %116 = vector.broadcast %cst_55 : f32 to vector<8x128xf32>
    %117 = arith.mulf %116, %115 : vector<8x128xf32>
    %118 = math.tanh %117 : vector<8x128xf32>
    %cst_56 = arith.constant 5.000000e-01 : f32
    %119 = vector.broadcast %cst_56 : f32 to vector<8x128xf32>
    %120 = arith.mulf %119, %118 : vector<8x128xf32>
    %cst_57 = arith.constant 5.000000e-01 : f32
    %121 = vector.broadcast %cst_57 : f32 to vector<8x128xf32>
    %122 = arith.addf %120, %121 : vector<8x128xf32>
    %123 = arith.mulf %112, %45 : vector<8x128xf32>
    %124 = arith.mulf %104, %114 : vector<8x128xf32>
    %125 = arith.addf %123, %124 : vector<8x128xf32>
    %126 = math.tanh %125 : vector<8x128xf32>
    %127 = arith.mulf %122, %126 : vector<8x128xf32>
    %c2 = arith.constant 2 : index
    %c0_58 = arith.constant 0 : index
    %c0_59 = arith.constant 0 : index
    %128 = vector.load %arg3[%c2, %c0_58, %c0_59] : memref<4x8x128xf32, #tpu.memory_space<vmem>>, vector<1x8x128xf32>
    %129 = vector.shape_cast %128 : vector<1x8x128xf32> to vector<8x128xf32>
    %130 = tpu.concatenate %129, %84 in 1 : vector<8x128xf32>, vector<8x128xf32> -> vector<8x256xf32>
    %cst_60 = arith.constant dense<0.000000e+00> : vector<8x512xf32>
    %131 = tpu.matmul %130, %4, %cst_60 {dimension_numbers = #tpu.dot_dimension_numbers<[1], [0], [0], [1], [0, 0, 1, 1], [], []>} : vector<8x256xf32>, vector<256x512xf32>, vector<8x512xf32> -> vector<8x512xf32>
    %132 = vector.broadcast %6 : vector<1x512xf32> to vector<8x512xf32>
    %133 = arith.addf %131, %132 : vector<8x512xf32>
    %134 = vector.extract_strided_slice %133 {offsets = [0, 0], sizes = [8, 128], strides = [1, 1]} : vector<8x512xf32> to vector<8x128xf32>
    %cst_61 = arith.constant 5.000000e-01 : f32
    %135 = vector.broadcast %cst_61 : f32 to vector<8x128xf32>
    %136 = arith.mulf %135, %134 : vector<8x128xf32>
    %137 = math.tanh %136 : vector<8x128xf32>
    %cst_62 = arith.constant 5.000000e-01 : f32
    %138 = vector.broadcast %cst_62 : f32 to vector<8x128xf32>
    %139 = arith.mulf %138, %137 : vector<8x128xf32>
    %cst_63 = arith.constant 5.000000e-01 : f32
    %140 = vector.broadcast %cst_63 : f32 to vector<8x128xf32>
    %141 = arith.addf %139, %140 : vector<8x128xf32>
    %142 = vector.extract_strided_slice %133 {offsets = [0, 128], sizes = [8, 128], strides = [1, 1]} : vector<8x512xf32> to vector<8x128xf32>
    %cst_64 = arith.constant 5.000000e-01 : f32
    %143 = vector.broadcast %cst_64 : f32 to vector<8x128xf32>
    %144 = arith.mulf %143, %142 : vector<8x128xf32>
    %145 = math.tanh %144 : vector<8x128xf32>
    %cst_65 = arith.constant 5.000000e-01 : f32
    %146 = vector.broadcast %cst_65 : f32 to vector<8x128xf32>
    %147 = arith.mulf %146, %145 : vector<8x128xf32>
    %cst_66 = arith.constant 5.000000e-01 : f32
    %148 = vector.broadcast %cst_66 : f32 to vector<8x128xf32>
    %149 = arith.addf %147, %148 : vector<8x128xf32>
    %150 = vector.extract_strided_slice %133 {offsets = [0, 256], sizes = [8, 128], strides = [1, 1]} : vector<8x512xf32> to vector<8x128xf32>
    %151 = math.tanh %150 : vector<8x128xf32>
    %152 = vector.extract_strided_slice %133 {offsets = [0, 384], sizes = [8, 128], strides = [1, 1]} : vector<8x512xf32> to vector<8x128xf32>
    %cst_67 = arith.constant 5.000000e-01 : f32
    %153 = vector.broadcast %cst_67 : f32 to vector<8x128xf32>
    %154 = arith.mulf %153, %152 : vector<8x128xf32>
    %155 = math.tanh %154 : vector<8x128xf32>
    %cst_68 = arith.constant 5.000000e-01 : f32
    %156 = vector.broadcast %cst_68 : f32 to vector<8x128xf32>
    %157 = arith.mulf %156, %155 : vector<8x128xf32>
    %cst_69 = arith.constant 5.000000e-01 : f32
    %158 = vector.broadcast %cst_69 : f32 to vector<8x128xf32>
    %159 = arith.addf %157, %158 : vector<8x128xf32>
    %160 = arith.mulf %149, %82 : vector<8x128xf32>
    %161 = arith.mulf %141, %151 : vector<8x128xf32>
    %162 = arith.addf %160, %161 : vector<8x128xf32>
    %163 = math.tanh %162 : vector<8x128xf32>
    %164 = arith.mulf %159, %163 : vector<8x128xf32>
    %c1_70 = arith.constant 1 : index
    %c0_71 = arith.constant 0 : index
    %c0_72 = arith.constant 0 : index
    %165 = vector.load %arg8[%c1_70, %c0_71, %c0_72] : memref<4x8x128xf32, #tpu.memory_space<vmem>>, vector<1x8x128xf32>
    %166 = vector.shape_cast %165 : vector<1x8x128xf32> to vector<8x128xf32>
    %167 = vector.shape_cast %127 : vector<8x128xf32> to vector<1x8x128xf32>
    tpu.vector_store %arg8[%c1_70, %c0_71, %c0_72], %167 {strides = array<i32>} : memref<4x8x128xf32, #tpu.memory_space<vmem>>, vector<1x8x128xf32>,
    %c2_73 = arith.constant 2 : index
    %c0_74 = arith.constant 0 : index
    %c0_75 = arith.constant 0 : index
    %168 = vector.load %arg9[%c2_73, %c0_74, %c0_75] : memref<4x8x128xf32, #tpu.memory_space<vmem>>, vector<1x8x128xf32>
    %169 = vector.shape_cast %168 : vector<1x8x128xf32> to vector<8x128xf32>
    %170 = vector.shape_cast %164 : vector<8x128xf32> to vector<1x8x128xf32>
    tpu.vector_store %arg9[%c2_73, %c0_74, %c0_75], %170 {strides = array<i32>} : memref<4x8x128xf32, #tpu.memory_space<vmem>>, vector<1x8x128xf32>,
    %c2_76 = arith.constant 2 : index
    %c0_77 = arith.constant 0 : index
    %c0_78 = arith.constant 0 : index
    %171 = vector.load %arg2[%c2_76, %c0_77, %c0_78] : memref<4x8x128xf32, #tpu.memory_space<vmem>>, vector<1x8x128xf32>
    %172 = vector.shape_cast %171 : vector<1x8x128xf32> to vector<8x128xf32>
    %173 = tpu.concatenate %172, %127 in 1 : vector<8x128xf32>, vector<8x128xf32> -> vector<8x256xf32>
    %cst_79 = arith.constant dense<0.000000e+00> : vector<8x512xf32>
    %174 = tpu.matmul %173, %3, %cst_79 {dimension_numbers = #tpu.dot_dimension_numbers<[1], [0], [0], [1], [0, 0, 1, 1], [], []>} : vector<8x256xf32>, vector<256x512xf32>, vector<8x512xf32> -> vector<8x512xf32>
    %175 = vector.broadcast %5 : vector<1x512xf32> to vector<8x512xf32>
    %176 = arith.addf %174, %175 : vector<8x512xf32>
    %177 = vector.extract_strided_slice %176 {offsets = [0, 0], sizes = [8, 128], strides = [1, 1]} : vector<8x512xf32> to vector<8x128xf32>
    %cst_80 = arith.constant 5.000000e-01 : f32
    %178 = vector.broadcast %cst_80 : f32 to vector<8x128xf32>
    %179 = arith.mulf %178, %177 : vector<8x128xf32>
    %180 = math.tanh %179 : vector<8x128xf32>
    %cst_81 = arith.constant 5.000000e-01 : f32
    %181 = vector.broadcast %cst_81 : f32 to vector<8x128xf32>
    %182 = arith.mulf %181, %180 : vector<8x128xf32>
    %cst_82 = arith.constant 5.000000e-01 : f32
    %183 = vector.broadcast %cst_82 : f32 to vector<8x128xf32>
    %184 = arith.addf %182, %183 : vector<8x128xf32>
    %185 = vector.extract_strided_slice %176 {offsets = [0, 128], sizes = [8, 128], strides = [1, 1]} : vector<8x512xf32> to vector<8x128xf32>
    %cst_83 = arith.constant 5.000000e-01 : f32
    %186 = vector.broadcast %cst_83 : f32 to vector<8x128xf32>
    %187 = arith.mulf %186, %185 : vector<8x128xf32>
    %188 = math.tanh %187 : vector<8x128xf32>
    %cst_84 = arith.constant 5.000000e-01 : f32
    %189 = vector.broadcast %cst_84 : f32 to vector<8x128xf32>
    %190 = arith.mulf %189, %188 : vector<8x128xf32>
    %cst_85 = arith.constant 5.000000e-01 : f32
    %191 = vector.broadcast %cst_85 : f32 to vector<8x128xf32>
    %192 = arith.addf %190, %191 : vector<8x128xf32>
    %193 = vector.extract_strided_slice %176 {offsets = [0, 256], sizes = [8, 128], strides = [1, 1]} : vector<8x512xf32> to vector<8x128xf32>
    %194 = math.tanh %193 : vector<8x128xf32>
    %195 = vector.extract_strided_slice %176 {offsets = [0, 384], sizes = [8, 128], strides = [1, 1]} : vector<8x512xf32> to vector<8x128xf32>
    %cst_86 = arith.constant 5.000000e-01 : f32
    %196 = vector.broadcast %cst_86 : f32 to vector<8x128xf32>
    %197 = arith.mulf %196, %195 : vector<8x128xf32>
    %198 = math.tanh %197 : vector<8x128xf32>
    %cst_87 = arith.constant 5.000000e-01 : f32
    %199 = vector.broadcast %cst_87 : f32 to vector<8x128xf32>
    %200 = arith.mulf %199, %198 : vector<8x128xf32>
    %cst_88 = arith.constant 5.000000e-01 : f32
    %201 = vector.broadcast %cst_88 : f32 to vector<8x128xf32>
    %202 = arith.addf %200, %201 : vector<8x128xf32>
    %203 = arith.mulf %192, %125 : vector<8x128xf32>
    %204 = arith.mulf %184, %194 : vector<8x128xf32>
    %205 = arith.addf %203, %204 : vector<8x128xf32>
    %206 = math.tanh %205 : vector<8x128xf32>
    %207 = arith.mulf %202, %206 : vector<8x128xf32>
    %c1_89 = arith.constant 1 : index
    %c0_90 = arith.constant 0 : index
    %c0_91 = arith.constant 0 : index
    %208 = vector.load %arg3[%c1_89, %c0_90, %c0_91] : memref<4x8x128xf32, #tpu.memory_space<vmem>>, vector<1x8x128xf32>
    %209 = vector.shape_cast %208 : vector<1x8x128xf32> to vector<8x128xf32>
    %210 = tpu.concatenate %209, %164 in 1 : vector<8x128xf32>, vector<8x128xf32> -> vector<8x256xf32>
    %cst_92 = arith.constant dense<0.000000e+00> : vector<8x512xf32>
    %211 = tpu.matmul %210, %4, %cst_92 {dimension_numbers = #tpu.dot_dimension_numbers<[1], [0], [0], [1], [0, 0, 1, 1], [], []>} : vector<8x256xf32>, vector<256x512xf32>, vector<8x512xf32> -> vector<8x512xf32>
    %212 = vector.broadcast %6 : vector<1x512xf32> to vector<8x512xf32>
    %213 = arith.addf %211, %212 : vector<8x512xf32>
    %214 = vector.extract_strided_slice %213 {offsets = [0, 0], sizes = [8, 128], strides = [1, 1]} : vector<8x512xf32> to vector<8x128xf32>
    %cst_93 = arith.constant 5.000000e-01 : f32
    %215 = vector.broadcast %cst_93 : f32 to vector<8x128xf32>
    %216 = arith.mulf %215, %214 : vector<8x128xf32>
    %217 = math.tanh %216 : vector<8x128xf32>
    %cst_94 = arith.constant 5.000000e-01 : f32
    %218 = vector.broadcast %cst_94 : f32 to vector<8x128xf32>
    %219 = arith.mulf %218, %217 : vector<8x128xf32>
    %cst_95 = arith.constant 5.000000e-01 : f32
    %220 = vector.broadcast %cst_95 : f32 to vector<8x128xf32>
    %221 = arith.addf %219, %220 : vector<8x128xf32>
    %222 = vector.extract_strided_slice %213 {offsets = [0, 128], sizes = [8, 128], strides = [1, 1]} : vector<8x512xf32> to vector<8x128xf32>
    %cst_96 = arith.constant 5.000000e-01 : f32
    %223 = vector.broadcast %cst_96 : f32 to vector<8x128xf32>
    %224 = arith.mulf %223, %222 : vector<8x128xf32>
    %225 = math.tanh %224 : vector<8x128xf32>
    %cst_97 = arith.constant 5.000000e-01 : f32
    %226 = vector.broadcast %cst_97 : f32 to vector<8x128xf32>
    %227 = arith.mulf %226, %225 : vector<8x128xf32>
    %cst_98 = arith.constant 5.000000e-01 : f32
    %228 = vector.broadcast %cst_98 : f32 to vector<8x128xf32>
    %229 = arith.addf %227, %228 : vector<8x128xf32>
    %230 = vector.extract_strided_slice %213 {offsets = [0, 256], sizes = [8, 128], strides = [1, 1]} : vector<8x512xf32> to vector<8x128xf32>
    %231 = math.tanh %230 : vector<8x128xf32>
    %232 = vector.extract_strided_slice %213 {offsets = [0, 384], sizes = [8, 128], strides = [1, 1]} : vector<8x512xf32> to vector<8x128xf32>
    %cst_99 = arith.constant 5.000000e-01 : f32
    %233 = vector.broadcast %cst_99 : f32 to vector<8x128xf32>
    %234 = arith.mulf %233, %232 : vector<8x128xf32>
    %235 = math.tanh %234 : vector<8x128xf32>
    %cst_100 = arith.constant 5.000000e-01 : f32
    %236 = vector.broadcast %cst_100 : f32 to vector<8x128xf32>
    %237 = arith.mulf %236, %235 : vector<8x128xf32>
    %cst_101 = arith.constant 5.000000e-01 : f32
    %238 = vector.broadcast %cst_101 : f32 to vector<8x128xf32>
    %239 = arith.addf %237, %238 : vector<8x128xf32>
    %240 = arith.mulf %229, %162 : vector<8x128xf32>
    %241 = arith.mulf %221, %231 : vector<8x128xf32>
    %242 = arith.addf %240, %241 : vector<8x128xf32>
    %243 = math.tanh %242 : vector<8x128xf32>
    %244 = arith.mulf %239, %243 : vector<8x128xf32>
    %c2_102 = arith.constant 2 : index
    %c0_103 = arith.constant 0 : index
    %c0_104 = arith.constant 0 : index
    %245 = vector.load %arg8[%c2_102, %c0_103, %c0_104] : memref<4x8x128xf32, #tpu.memory_space<vmem>>, vector<1x8x128xf32>
    %246 = vector.shape_cast %245 : vector<1x8x128xf32> to vector<8x128xf32>
    %247 = vector.shape_cast %207 : vector<8x128xf32> to vector<1x8x128xf32>
    tpu.vector_store %arg8[%c2_102, %c0_103, %c0_104], %247 {strides = array<i32>} : memref<4x8x128xf32, #tpu.memory_space<vmem>>, vector<1x8x128xf32>,
    %c1_105 = arith.constant 1 : index
    %c0_106 = arith.constant 0 : index
    %c0_107 = arith.constant 0 : index
    %248 = vector.load %arg9[%c1_105, %c0_106, %c0_107] : memref<4x8x128xf32, #tpu.memory_space<vmem>>, vector<1x8x128xf32>
    %249 = vector.shape_cast %248 : vector<1x8x128xf32> to vector<8x128xf32>
    %250 = vector.shape_cast %244 : vector<8x128xf32> to vector<1x8x128xf32>
    tpu.vector_store %arg9[%c1_105, %c0_106, %c0_107], %250 {strides = array<i32>} : memref<4x8x128xf32, #tpu.memory_space<vmem>>, vector<1x8x128xf32>,
    %c3_108 = arith.constant 3 : index
    %c0_109 = arith.constant 0 : index
    %c0_110 = arith.constant 0 : index
    %251 = vector.load %arg2[%c3_108, %c0_109, %c0_110] : memref<4x8x128xf32, #tpu.memory_space<vmem>>, vector<1x8x128xf32>
    %252 = vector.shape_cast %251 : vector<1x8x128xf32> to vector<8x128xf32>
    %253 = tpu.concatenate %252, %207 in 1 : vector<8x128xf32>, vector<8x128xf32> -> vector<8x256xf32>
    %cst_111 = arith.constant dense<0.000000e+00> : vector<8x512xf32>
    %254 = tpu.matmul %253, %3, %cst_111 {dimension_numbers = #tpu.dot_dimension_numbers<[1], [0], [0], [1], [0, 0, 1, 1], [], []>} : vector<8x256xf32>, vector<256x512xf32>, vector<8x512xf32> -> vector<8x512xf32>
    %255 = vector.broadcast %5 : vector<1x512xf32> to vector<8x512xf32>
    %256 = arith.addf %254, %255 : vector<8x512xf32>
    %257 = vector.extract_strided_slice %256 {offsets = [0, 0], sizes = [8, 128], strides = [1, 1]} : vector<8x512xf32> to vector<8x128xf32>
    %cst_112 = arith.constant 5.000000e-01 : f32
    %258 = vector.broadcast %cst_112 : f32 to vector<8x128xf32>
    %259 = arith.mulf %258, %257 : vector<8x128xf32>
    %260 = math.tanh %259 : vector<8x128xf32>
    %cst_113 = arith.constant 5.000000e-01 : f32
    %261 = vector.broadcast %cst_113 : f32 to vector<8x128xf32>
    %262 = arith.mulf %261, %260 : vector<8x128xf32>
    %cst_114 = arith.constant 5.000000e-01 : f32
    %263 = vector.broadcast %cst_114 : f32 to vector<8x128xf32>
    %264 = arith.addf %262, %263 : vector<8x128xf32>
    %265 = vector.extract_strided_slice %256 {offsets = [0, 128], sizes = [8, 128], strides = [1, 1]} : vector<8x512xf32> to vector<8x128xf32>
    %cst_115 = arith.constant 5.000000e-01 : f32
    %266 = vector.broadcast %cst_115 : f32 to vector<8x128xf32>
    %267 = arith.mulf %266, %265 : vector<8x128xf32>
    %268 = math.tanh %267 : vector<8x128xf32>
    %cst_116 = arith.constant 5.000000e-01 : f32
    %269 = vector.broadcast %cst_116 : f32 to vector<8x128xf32>
    %270 = arith.mulf %269, %268 : vector<8x128xf32>
    %cst_117 = arith.constant 5.000000e-01 : f32
    %271 = vector.broadcast %cst_117 : f32 to vector<8x128xf32>
    %272 = arith.addf %270, %271 : vector<8x128xf32>
    %273 = vector.extract_strided_slice %256 {offsets = [0, 256], sizes = [8, 128], strides = [1, 1]} : vector<8x512xf32> to vector<8x128xf32>
    %274 = math.tanh %273 : vector<8x128xf32>
    %275 = vector.extract_strided_slice %256 {offsets = [0, 384], sizes = [8, 128], strides = [1, 1]} : vector<8x512xf32> to vector<8x128xf32>
    %cst_118 = arith.constant 5.000000e-01 : f32
    %276 = vector.broadcast %cst_118 : f32 to vector<8x128xf32>
    %277 = arith.mulf %276, %275 : vector<8x128xf32>
    %278 = math.tanh %277 : vector<8x128xf32>
    %cst_119 = arith.constant 5.000000e-01 : f32
    %279 = vector.broadcast %cst_119 : f32 to vector<8x128xf32>
    %280 = arith.mulf %279, %278 : vector<8x128xf32>
    %cst_120 = arith.constant 5.000000e-01 : f32
    %281 = vector.broadcast %cst_120 : f32 to vector<8x128xf32>
    %282 = arith.addf %280, %281 : vector<8x128xf32>
    %283 = arith.mulf %272, %205 : vector<8x128xf32>
    %284 = arith.mulf %264, %274 : vector<8x128xf32>
    %285 = arith.addf %283, %284 : vector<8x128xf32>
    %286 = math.tanh %285 : vector<8x128xf32>
    %287 = arith.mulf %282, %286 : vector<8x128xf32>
    %c0_121 = arith.constant 0 : index
    %c0_122 = arith.constant 0 : index
    %c0_123 = arith.constant 0 : index
    %288 = vector.load %arg3[%c0_121, %c0_122, %c0_123] : memref<4x8x128xf32, #tpu.memory_space<vmem>>, vector<1x8x128xf32>
    %289 = vector.shape_cast %288 : vector<1x8x128xf32> to vector<8x128xf32>
    %290 = tpu.concatenate %289, %244 in 1 : vector<8x128xf32>, vector<8x128xf32> -> vector<8x256xf32>
    %cst_124 = arith.constant dense<0.000000e+00> : vector<8x512xf32>
    %291 = tpu.matmul %290, %4, %cst_124 {dimension_numbers = #tpu.dot_dimension_numbers<[1], [0], [0], [1], [0, 0, 1, 1], [], []>} : vector<8x256xf32>, vector<256x512xf32>, vector<8x512xf32> -> vector<8x512xf32>
    %292 = vector.broadcast %6 : vector<1x512xf32> to vector<8x512xf32>
    %293 = arith.addf %291, %292 : vector<8x512xf32>
    %294 = vector.extract_strided_slice %293 {offsets = [0, 0], sizes = [8, 128], strides = [1, 1]} : vector<8x512xf32> to vector<8x128xf32>
    %cst_125 = arith.constant 5.000000e-01 : f32
    %295 = vector.broadcast %cst_125 : f32 to vector<8x128xf32>
    %296 = arith.mulf %295, %294 : vector<8x128xf32>
    %297 = math.tanh %296 : vector<8x128xf32>
    %cst_126 = arith.constant 5.000000e-01 : f32
    %298 = vector.broadcast %cst_126 : f32 to vector<8x128xf32>
    %299 = arith.mulf %298, %297 : vector<8x128xf32>
    %cst_127 = arith.constant 5.000000e-01 : f32
    %300 = vector.broadcast %cst_127 : f32 to vector<8x128xf32>
    %301 = arith.addf %299, %300 : vector<8x128xf32>
    %302 = vector.extract_strided_slice %293 {offsets = [0, 128], sizes = [8, 128], strides = [1, 1]} : vector<8x512xf32> to vector<8x128xf32>
    %cst_128 = arith.constant 5.000000e-01 : f32
    %303 = vector.broadcast %cst_128 : f32 to vector<8x128xf32>
    %304 = arith.mulf %303, %302 : vector<8x128xf32>
    %305 = math.tanh %304 : vector<8x128xf32>
    %cst_129 = arith.constant 5.000000e-01 : f32
    %306 = vector.broadcast %cst_129 : f32 to vector<8x128xf32>
    %307 = arith.mulf %306, %305 : vector<8x128xf32>
    %cst_130 = arith.constant 5.000000e-01 : f32
    %308 = vector.broadcast %cst_130 : f32 to vector<8x128xf32>
    %309 = arith.addf %307, %308 : vector<8x128xf32>
    %310 = vector.extract_strided_slice %293 {offsets = [0, 256], sizes = [8, 128], strides = [1, 1]} : vector<8x512xf32> to vector<8x128xf32>
    %311 = math.tanh %310 : vector<8x128xf32>
    %312 = vector.extract_strided_slice %293 {offsets = [0, 384], sizes = [8, 128], strides = [1, 1]} : vector<8x512xf32> to vector<8x128xf32>
    %cst_131 = arith.constant 5.000000e-01 : f32
    %313 = vector.broadcast %cst_131 : f32 to vector<8x128xf32>
    %314 = arith.mulf %313, %312 : vector<8x128xf32>
    %315 = math.tanh %314 : vector<8x128xf32>
    %cst_132 = arith.constant 5.000000e-01 : f32
    %316 = vector.broadcast %cst_132 : f32 to vector<8x128xf32>
    %317 = arith.mulf %316, %315 : vector<8x128xf32>
    %cst_133 = arith.constant 5.000000e-01 : f32
    %318 = vector.broadcast %cst_133 : f32 to vector<8x128xf32>
    %319 = arith.addf %317, %318 : vector<8x128xf32>
    %320 = arith.mulf %309, %242 : vector<8x128xf32>
    %321 = arith.mulf %301, %311 : vector<8x128xf32>
    %322 = arith.addf %320, %321 : vector<8x128xf32>
    %323 = math.tanh %322 : vector<8x128xf32>
    %324 = arith.mulf %319, %323 : vector<8x128xf32>
    %c3_134 = arith.constant 3 : index
    %c0_135 = arith.constant 0 : index
    %c0_136 = arith.constant 0 : index
    %325 = vector.load %arg8[%c3_134, %c0_135, %c0_136] : memref<4x8x128xf32, #tpu.memory_space<vmem>>, vector<1x8x128xf32>
    %326 = vector.shape_cast %325 : vector<1x8x128xf32> to vector<8x128xf32>
    %327 = vector.shape_cast %287 : vector<8x128xf32> to vector<1x8x128xf32>
    tpu.vector_store %arg8[%c3_134, %c0_135, %c0_136], %327 {strides = array<i32>} : memref<4x8x128xf32, #tpu.memory_space<vmem>>, vector<1x8x128xf32>,
    %c0_137 = arith.constant 0 : index
    %c0_138 = arith.constant 0 : index
    %c0_139 = arith.constant 0 : index
    %328 = vector.load %arg9[%c0_137, %c0_138, %c0_139] : memref<4x8x128xf32, #tpu.memory_space<vmem>>, vector<1x8x128xf32>
    %329 = vector.shape_cast %328 : vector<1x8x128xf32> to vector<8x128xf32>
    %330 = vector.shape_cast %324 : vector<8x128xf32> to vector<1x8x128xf32>
    tpu.vector_store %arg9[%c0_137, %c0_138, %c0_139], %330 {strides = array<i32>} : memref<4x8x128xf32, #tpu.memory_space<vmem>>, vector<1x8x128xf32>,
    %c0_140 = arith.constant 0 : index
    %c0_141 = arith.constant 0 : index
    %331 = vector.load %arg10[%c0_140, %c0_141] : memref<8x128xf32, #tpu.memory_space<vmem>>, vector<8x128xf32>
    tpu.vector_store %arg10[%c0_140, %c0_141], %287 {strides = array<i32>} : memref<8x128xf32, #tpu.memory_space<vmem>>, vector<8x128xf32>,
    %c0_142 = arith.constant 0 : index
    %c0_143 = arith.constant 0 : index
    %332 = vector.load %arg11[%c0_142, %c0_143] : memref<8x128xf32, #tpu.memory_space<vmem>>, vector<8x128xf32>
    tpu.vector_store %arg11[%c0_142, %c0_143], %285 {strides = array<i32>} : memref<8x128xf32, #tpu.memory_space<vmem>>, vector<8x128xf32>,
    %c0_144 = arith.constant 0 : index
    %c0_145 = arith.constant 0 : index
    %333 = vector.load %arg12[%c0_144, %c0_145] : memref<8x128xf32, #tpu.memory_space<vmem>>, vector<8x128xf32>
    tpu.vector_store %arg12[%c0_144, %c0_145], %324 {strides = array<i32>} : memref<8x128xf32, #tpu.memory_space<vmem>>, vector<8x128xf32>,
    %c0_146 = arith.constant 0 : index
    %c0_147 = arith.constant 0 : index
    %334 = vector.load %arg13[%c0_146, %c0_147] : memref<8x128xf32, #tpu.memory_space<vmem>>, vector<8x128xf32>
    tpu.vector_store %arg13[%c0_146, %c0_147], %322 {strides = array<i32>} : memref<8x128xf32, #tpu.memory_space<vmem>>, vector<8x128xf32>,
    return
  }
  func.func @transform_0(%arg0: i32, %arg1: i32) -> (i32, i32, i32) {
    %c0_i32 = arith.constant 0 : i32
    %c0_i32_0 = arith.constant 0 : i32
    return %arg1, %arg0, %c0_i32 : i32, i32, i32
  }
  func.func @transform_1(%arg0: i32, %arg1: i32) -> (i32, i32, i32) {
    %c2_i32 = arith.constant 2 : i32
    %0 = arith.subi %c2_i32, %arg1 : i32
    %c0_i32 = arith.constant 0 : i32
    %c0_i32_0 = arith.constant 0 : i32
    return %0, %arg0, %c0_i32 : i32, i32, i32
  }
  func.func @transform_2(%arg0: i32, %arg1: i32) -> (i32, i32) {
    %c0_i32 = arith.constant 0 : i32
    %c0_i32_0 = arith.constant 0 : i32
    %c0_i32_1 = arith.constant 0 : i32
    return %c0_i32, %c0_i32_0 : i32, i32
  }
  func.func @transform_3(%arg0: i32, %arg1: i32) -> (i32, i32) {
    %c0_i32 = arith.constant 0 : i32
    %c0_i32_0 = arith.constant 0 : i32
    %c0_i32_1 = arith.constant 0 : i32
    return %c0_i32, %c0_i32_0 : i32, i32
  }
  func.func @transform_4(%arg0: i32, %arg1: i32) -> (i32, i32) {
    %c0_i32 = arith.constant 0 : i32
    %c0_i32_0 = arith.constant 0 : i32
    %c0_i32_1 = arith.constant 0 : i32
    return %c0_i32, %c0_i32_0 : i32, i32
  }
  func.func @transform_5(%arg0: i32, %arg1: i32) -> (i32, i32) {
    %c0_i32 = arith.constant 0 : i32
    %c0_i32_0 = arith.constant 0 : i32
    %c0_i32_1 = arith.constant 0 : i32
    return %c0_i32, %c0_i32_0 : i32, i32
  }
  func.func @transform_6(%arg0: i32, %arg1: i32) -> (i32, i32, i32) {
    %c0_i32 = arith.constant 0 : i32
    %c0_i32_0 = arith.constant 0 : i32
    return %arg1, %arg0, %c0_i32 : i32, i32, i32
  }
  func.func @transform_7(%arg0: i32, %arg1: i32) -> (i32, i32, i32) {
    %c2_i32 = arith.constant 2 : i32
    %0 = arith.subi %c2_i32, %arg1 : i32
    %c0_i32 = arith.constant 0 : i32
    %c0_i32_0 = arith.constant 0 : i32
    return %0, %arg0, %c0_i32 : i32, i32, i32
  }
}

</mosaic_0001>

<bundles_post_ra>
// kernel: tpu_custom_call.1
= control target key start
LH: loop header
LB: loop body
LE: loop exit
PB: predicated region body
PF: predicated region fallthrough
CT: control target
= control target key end

     0   :  { %s5129_s0 = inlined_call_operand.hbm [shape: f32[12,8,128], index: 0, kind: input, shape index: {}]   ;;  %s5130_s1 = inlined_call_operand.hbm [shape: f32[12,8,128], index: 1, kind: input, shape index: {}]   ;;  %s5131_s2 = inlined_call_operand.hbm [shape: f32[256,512], index: 2, kind: input, shape index: {}]   ;;  %s5132_s3 = inlined_call_operand.vmem [shape: f32[1,512], index: 3, kind: input, shape index: {}]   ;;  %s5133_s4 = inlined_call_operand.hbm [shape: f32[256,512], index: 4, kind: input, shape index: {}]   ;;  %s5134_s5 = inlined_call_operand.vmem [shape: f32[1,512], index: 5, kind: input, shape index: {}]   ;;  %s5135_s6 = inlined_call_operand.hbm [shape: f32[12,8,128], index: 6, kind: output, shape index: {0}]   ;;  %s5136_s7 = inlined_call_operand.hbm [shape: f32[12,8,128], index: 7, kind: output, shape index: {1}]  }
   0x1   :  { %5352 = sst [smem:[#allocation130_spill]] %s5129_s0 }
   0x2   :  { %5353 = sst [smem:[#allocation131_spill]] %s5131_s2 }
   0x3   :  { %5354 = sst [smem:[#allocation132_spill]] %s5133_s4 }
   0x4   :  { %5355 = sst [smem:[#allocation133_spill]] %s5135_s6 }
   0x5   :  { %5356 = sst [smem:[#allocation134_spill]] %s5136_s7 }
   0x6   :  { %13 = vsyncpa [#allocation7], 0 }
   0x7   :  { %15 = vsyncpa [#allocation7 + $0x1], 0 }
   0x8   :  { %16 = vsyncpa [#allocation10], 0 }
   0x9   :  { %18 = vsyncpa [#allocation10 + $0x1], 0 }
   0xa   :  { %19 = vsyncpa [#allocation13], 0 }
   0xb   :  { %20 = vsyncpa [#allocation8], 0 }
   0xc   :  { %22 = vsyncpa [#allocation8 + $0x1], 0 }
   0xd   :  { %23 = vsyncpa [#allocation16], 0 }
   0xe   :  { %25 = vsyncpa [#allocation16 + $0x1], 0  ;;  %s3828_s24 = smov 0   ;;  %s3830_s25 = smov 0  }
   0xf   :  { %s3832_s26 = smov 0   ;;  %s3834_s27 = smov 0  }
  0x10   :  { %s3836_s28 = smov 0   ;;  %s3838_s29 = smov 0  }
  0x11   :  { %s3840_s30 = smov 0   ;;  %s3842_s8 = smov 0  }
  0x12   :  { %s3844_s9 = smov 0  }
  0x13 LB: > { %5357 = sst [smem:[#allocation23_spill]] %s3741_s24  ;;  %s3874_s10 = sadd.s32 4294967295, %s3773_s9   ;;  %s3773_s9 = sphi %s3844_s9, %s31_s9   ;;  %s3769_s8 = sphi %s3842_s8, %s5751_s8   ;;  %s3765_s30 = sphi %s3840_s30, %s5750_s30   ;;  %s3761_s29 = sphi %s3838_s29, %s5749_s29   ;;  %s3757_s28 = sphi %s3836_s28, %s5748_s28   ;;  %s3753_s27 = sphi %s3834_s27, %s5747_s27   ;;  %s3749_s26 = sphi %s3832_s26, %s5746_s26   ;;  %s3745_s25 = sphi %s3830_s25, %s5745_s25   ;;  %s3741_s24 = sphi %s3828_s24, %s5744_s24  }
  0x14   : > { %5358 = sst [smem:[#allocation24_spill]] %s3753_s27  ;;  %s2236_s11 = sadd.s32 4294967294, %s3773_s9  }
  0x15   : > { %p65_p0 = scmp.ne.s32.totalorder %s3757_s28, %s3753_s27  ;;  %p5140_p1 = scmp.eq.s32.totalorder %s3874_s10, 0 }
  0x16   : > { %p95_p2 = scmp.ne.s32.totalorder %s3745_s25, %s3741_s24  ;;  %p211_p5 = scmp.eq.s32.totalorder %s2236_s11, 2 }
  0x17   : > { %p3885_p4 = por %p5140_p1, %p65_p0  ;;  %p2237_p7 = scmp.ge.s32.totalorder %s3773_s9, 1 }
  0x18   : > { %p3891_p6 = por %p95_p2, %p5140_p1  ;;  %p3896_p8 = por %p211_p5, %p65_p0 }
  0x19   : > { %s5359_s12 = scalar_select %p3885_p4, 1, 0 }
  0x1a   : > { %s5360_s13 = scalar_select %p3891_p6, 1, 0 }
  0x1b   : > { %s5361_s14 = scalar_select %p3896_p8, 1, 0 }
  0x1c   : > { %p3900_p9 = por %p211_p5, %p95_p2  ;;  %p248_p10 = scmp.lt.s32.totalorder %s3773_s9, 4 }
  0x1d   : > { %5362 = sst [smem:[#allocation25_spill]] %s5361_s14  ;;  %s3775_s17 = smov [#allocation11]  }
  0x1e   : > { %s5363_s15 = scalar_select %p3900_p9, 1, 0 }
  0x1f   : > { %p3905_p11 = pnand %p2237_p7, %p248_p10  ;;  %s260_s18 = sshll.u32 %s3775_s17, 4  ;;  %s261_s18 = int_to_ptr.vmem [resolvable:$true] %s260_s18 }
  0x20   : > { %5364 = sst [smem:[#allocation26_spill]] %s5363_s15  ;;  %s3776_s20 = smov [#allocation12]  }
  0x21   : > { %s5365_s16 = scalar_select %p3905_p11, 1, 0 }
  0x22   : > { %p3319_p12 = pneg %p3905_p11  ;;  %s276_s21 = sshll.u32 %s3776_s20, 4  ;;  %s3917_s21 = int_to_ptr.vmem [resolvable:$true] %s276_s21 }
  0x23   : > { %s5367_s2 = sld [smem:[#allocation131_spill]] }
  0x24   : > { %p3913_p13 = pnand %p3319_p12, %p5140_p1 }
  0x26   : > { %p3509_p2 = pneg %p3913_p13 }
  0x29   : > { %s3507_s11 = scalar_lea.hbm %s5367_s2, 16384 }
  0x2a   : > { %p3508_p0 = scmp.ne.s32.totalorder %s5367_s2, %s3507_s11  ;;  %p3514_p10 = scmp.lt.u32.totalorder %s3507_s11, %s5367_s2 }
  0x2c   : > { %p3510_p5 = pnand %p3509_p2, %p3508_p0 }
  0x2e   : > { %p3511_p7 = pneg %p3510_p5 }
  0x30   : > { %p3516_p12 = pnand %p3514_p10, %p3511_p7 }
  0x32   : > { %3519 = shalt.err (!%p3516_p12)
}
  0x33   : > { %s3520_s20 = scalar_lea.vmem %s261_s18, 16384  ;;  %p3528_p8 = scmp.lt.s32.totalorder %s261_s18, %s261_s18 }
  0x34   : > { %p3521_p1 = scmp.ne.s32.totalorder %s261_s18, %s3520_s20  ;;  %p3529_p6 = scmp.lt.s32.totalorder %s3520_s20, %s3520_s20 }
  0x36   : > { %p3523_p3 = pnand %p3521_p1, %p3509_p2  ;;  %p3530_p4 = por %p3529_p6, %p3528_p8 }
  0x38   : > { %p3524_p9 = pneg %p3523_p3 }
  0x3a   : > { %p3531_p11 = pnand %p3530_p4, %p3524_p9 }
  0x3c   : > { %3534 = shalt.err (!%p3531_p11)
}
  0x3d   : > { %s3777_s15 = smov 512   ;;  %s3778_s22 = smov 32  }
  0x3e   : > { %3322 = dma.hbm_to_vmem [thread:$0]  (!%p3913_p13), %s5367_s2, 16384, %s261_s18, [#allocation10], %s3777_s15, %s3777_s15, %s3778_s22  }
  0x3f   : > { %s5368_s4 = sld [smem:[#allocation132_spill]] }
  0x45   : > { %s3535_s17 = scalar_lea.hbm %s5368_s4, 16384 }
  0x46   : > { %p3536_p1 = scmp.ne.s32.totalorder %s5368_s4, %s3535_s17  ;;  %p3542_p6 = scmp.lt.u32.totalorder %s3535_s17, %s5368_s4 }
  0x48   : > { %p3538_p3 = pnand %p3536_p1, %p3509_p2 }
  0x4a   : > { %p3539_p4 = pneg %p3538_p3 }
  0x4c   : > { %p3544_p8 = pnand %p3542_p6, %p3539_p4 }
  0x4e   : > { %3547 = shalt.err (!%p3544_p8)
}
  0x4f   : > { %s3548_s18 = scalar_lea.vmem %s3917_s21, 16384  ;;  %p3556_p5 = scmp.lt.s32.totalorder %s3917_s21, %s3917_s21 }
  0x50   : > { %p3549_p9 = scmp.ne.s32.totalorder %s3917_s21, %s3548_s18  ;;  %p3557_p7 = scmp.lt.s32.totalorder %s3548_s18, %s3548_s18 }
  0x52   : > { %p3551_p11 = pnand %p3549_p9, %p3509_p2  ;;  %p3558_p10 = por %p3557_p7, %p3556_p5 }
  0x54   : > { %p3552_p0 = pneg %p3551_p11 }
  0x56   : > { %p3559_p12 = pnand %p3558_p10, %p3552_p0 }
  0x58   : > { %3562 = shalt.err (!%p3559_p12)
}
  0x59   : > { %3325 = dma.hbm_to_vmem [thread:$0]  (!%p3913_p13), %s5368_s4, 16384, %s3917_s21, [#allocation13], %s3777_s15, %s3777_s15, %s3778_s22  }
  0x5a   : > { %s40_s27 = sadd.s32 1, %s3769_s8  ;;  %s52_s19 = sadd.s32 1, %s3761_s29 }
  0x5b   : > { %p41_p2 = scmp.ge.s32.totalorder %s40_s27, 3  ;;  %p59_p1 = scmp.ne.s32.totalorder %s3761_s29, %s3757_s28 }
  0x5c   : > { %p5148_p3 = scmp.eq.s32.totalorder %s3773_s9, 0  ;;  %p5370_p6 = scmp.eq.s32.totalorder %s3874_s10, 2 }
  0x5d   : > { %s5753_s27 = smov (%p41_p2, %s40_s27), 0  ;;  %p5147_p13 = scmp.lt.s32.totalorder %s3773_s9, 3 }
  0x5e   : > { %p3975_p4 = por %p5148_p3, %p59_p1  ;;  %p3981_p8 = por %p5370_p6, %p59_p1 }
  0x5f   : > { %s47_s21 = ssub.s32 %s3769_s8, %s5753_s27  ;;  %s293_s15 = sand.u32 1, %s3761_s29  }
  0x60   : > { %p50_p9 = scmp.eq.s32.totalorder %s47_s21, 0  ;;  %s2241_s22 = sshll.u32 %s293_s15, 5 }
  0x61   : > { %s2275_s11 = sshll.u32 %s3769_s8, 9  ;;  %s5372_s0 = sld [smem:[#allocation130_spill]] }
  0x62   : > { %s3990_s23 = scalar_select %p50_p9, %s3761_s29, %s52_s19  }
  0x63   : > { %s297_s6 = scalar_lea.vmem [#allocation6], %s2241_s22  ;;  %p4004_p11 = pnand %p5147_p13, %p3975_p4 }
  0x64   : > { %s305_s7 = sshll.u32 %s297_s6, 4  ;;  %s4008_s19 = scalar_lea.sflag [#allocation7], %s293_s15  ;;  %s3998_s7 = int_to_ptr.vmem [resolvable:$true] %s305_s7 }
  0x65   : > { %p3565_p5 = pneg %p4004_p11 }
  0x67   : > { %s3996_s18 = scalar_lea.hbm %s5372_s0, %s2275_s11  ;;  %s3568_s24 = scalar_lea.hbm %s5372_s0, 1536 }
  0x68   : > { %s3563_s11 = scalar_lea.hbm %s3996_s18, 512  ;;  %p3569_p12 = scmp.lt.u32.totalorder %s3996_s18, %s5372_s0 }
  0x69   : > { %p3564_p0 = scmp.ne.s32.totalorder %s3996_s18, %s3563_s11  ;;  %p3570_p2 = scmp.lt.u32.totalorder %s3568_s24, %s3563_s11 }
  0x6a   : > { %p3572_p4 = scmp.lt.u32.totalorder %s3563_s11, %s3996_s18 }
  0x6b   : > { %p3566_p7 = pnand %p3565_p5, %p3564_p0  ;;  %p3571_p1 = por %p3570_p2, %p3569_p12 }
  0x6d   : > { %p3567_p10 = pneg %p3566_p7  ;;  %p3573_p6 = por %p3572_p4, %p3571_p1 }
  0x6f   : > { %p3574_p9 = pnand %p3573_p6, %p3567_p10 }
  0x71   : > { %3577 = shalt.err (!%p3574_p9)
}
  0x72   : > { %s3578_s15 = scalar_lea.vmem %s3998_s7, 512  ;;  %s3779_s22 = smov [#allocation6]  }
  0x73   : > { %p3579_p0 = scmp.ne.s32.totalorder %s3998_s7, %s3578_s15  ;;  %s3583_s17 = sshll.u32 %s3779_s22, 4  ;;  %s3584_s17 = int_to_ptr.vmem [resolvable:$false] %s3583_s17 }
  0x74   : > { %s3585_s20 = scalar_lea.vmem %s3584_s17, 1024  ;;  %p3586_p3 = scmp.lt.s32.totalorder %s3998_s7, %s3584_s17 }
  0x75   : > { %p3581_p7 = pnand %p3579_p0, %p3565_p5  ;;  %p3587_p12 = scmp.lt.s32.totalorder %s3585_s20, %s3578_s15 }
  0x77   : > { %p3582_p13 = pneg %p3581_p7  ;;  %p3588_p2 = por %p3587_p12, %p3586_p3 }
  0x79   : > { %p3589_p1 = pnand %p3588_p2, %p3582_p13 }
  0x7b   : > { %3592 = shalt.err (!%p3589_p1)
}
  0x7c   : > { %s5149_s11 = smov 128   ;;  %s5150_s24 = smov 8  }
  0x7d   : > { %3329 = dma.hbm_to_vmem [thread:$0]  (!%p4004_p11), %s3996_s18, 512, %s3998_s7, %s4008_s19, %s5149_s11, %s5149_s11, %s5150_s24  }
  0x7e   : > { %s75_s6 = ssub.s32 2, %s3769_s8  ;;  %s76_s15 = ssub.s32 2, %s5753_s27 }
  0x7f   : > { %s82_s22 = sadd.s32 1, %s3749_s26  ;;  %s77_s17 = ssub.s32 %s75_s6, %s76_s15 }
  0x80   : > { %p89_p3 = scmp.ne.s32.totalorder %s3749_s26, %s3745_s25  ;;  %p80_p13 = scmp.eq.s32.totalorder %s77_s17, 0 }
  0x81   : > { %s315_s20 = sand.u32 1, %s3773_s9   ;;  %p5374_p5 = scmp.eq.s32.totalorder %s3773_s9, 0 }
  0x82   : > { %p5375_p4 = scmp.eq.s32.totalorder %s3874_s10, 2  ;;  %s317_s2 = sand.u32 1, %s3749_s26  }
  0x83   : > { %p91_p10 = por %p89_p3, %p5374_p5  ;;  %s2244_s4 = sshll.u32 %s317_s2, 5 }
  0x84   : > { %p4049_p6 = por %p5375_p4, %p89_p3  ;;  %s2276_s18 = sshll.u32 %s75_s6, 9 }
  0x85   : > { %s4054_s21 = scalar_select %p80_p13, %s3749_s26, %s82_s22  }
  0x86   : > { %s5376_s0 = scalar_select %p4049_p6, 1, 0 }
  0x87   : > { %s4060_s11 = scalar_lea.hbm %s5130_s1, %s2276_s18  ;;  %s319_s15 = scalar_lea.vmem [#allocation9], %s2244_s4 }
  0x88   : > { %s328_s17 = sshll.u32 %s319_s15, 4  ;;  %p5377_p11 = scmp.lt.s32.totalorder %s3773_s9, 3  ;;  %s4068_s17 = int_to_ptr.vmem [resolvable:$true] %s328_s17 }
  0x89   : > { %s4070_s2 = scalar_lea.sflag [#allocation10], %s315_s20  ;;  %s3593_s6 = scalar_lea.hbm %s4060_s11, 512 }
  0x8a   : > { %p4064_p9 = pnand %p5377_p11, %p91_p10  ;;  %p3594_p0 = scmp.ne.s32.totalorder %s4060_s11, %s3593_s6 }
  0x8b   : > { %s3598_s18 = scalar_lea.hbm %s5130_s1, 1536  ;;  %p3599_p1 = scmp.lt.u32.totalorder %s4060_s11, %s5130_s1 }
  0x8c   : > { %p3595_p7 = pneg %p4064_p9  ;;  %p3600_p3 = scmp.lt.u32.totalorder %s3598_s18, %s3593_s6 }
  0x8d   : > { %p3602_p5 = scmp.lt.u32.totalorder %s3593_s6, %s4060_s11 }
  0x8e   : > { %p3596_p12 = pnand %p3595_p7, %p3594_p0  ;;  %p3601_p13 = por %p3600_p3, %p3599_p1 }
  0x90   : > { %p3597_p2 = pneg %p3596_p12  ;;  %p3603_p10 = por %p3602_p5, %p3601_p13 }
  0x92   : > { %p3604_p4 = pnand %p3603_p10, %p3597_p2 }
  0x94   : > { %3607 = shalt.err (!%p3604_p4)
}
  0x95   : > { %s3608_s20 = scalar_lea.vmem %s4068_s17, 512  ;;  %s3782_s15 = smov [#allocation9]  }
  0x96   : > { %p3609_p11 = scmp.ne.s32.totalorder %s4068_s17, %s3608_s20  ;;  %s3613_s4 = sshll.u32 %s3782_s15, 4  ;;  %s3614_s4 = int_to_ptr.vmem [resolvable:$false] %s3613_s4 }
  0x97   : > { %s3615_s22 = scalar_lea.vmem %s3614_s4, 1024  ;;  %p3616_p6 = scmp.lt.s32.totalorder %s4068_s17, %s3614_s4 }
  0x98   : > { %p3611_p0 = pnand %p3609_p11, %p3595_p7  ;;  %p3617_p1 = scmp.lt.s32.totalorder %s3615_s22, %s3608_s20 }
  0x9a   : > { %p3612_p12 = pneg %p3611_p0  ;;  %p3618_p3 = por %p3617_p1, %p3616_p6 }
  0x9c   : > { %p3619_p13 = pnand %p3618_p3, %p3612_p12 }
  0x9e   : > { %3622 = shalt.err (!%p3619_p13)
}
  0x9f   : > { %s5379_s6 = smov 8   ;;  %s5380_s18 = smov 128  }
  0xa0   : > { %3332 = dma.hbm_to_vmem [thread:$0]  (!%p4064_p9), %s4060_s11, 512, %s4068_s17, %s4070_s2, %s5380_s18, %s5380_s18, %s5379_s6  }
  0xa1   : > { %p5381_p7 = scmp.ne.s32.totalorder %s5365_s16, 0 }
  0xa3   : > { %340 = sbr.rel (%p5381_p7) target bundleno = 1340 (0x53c), region = 44 }
  0xaa   : > { %s4104_s7 = sand.u32 1, %s3757_s28   ;;  %p5382_p6 = scmp.ne.s32.totalorder %s5359_s12, 0 }
  0xab   : > { %s2248_s19 = sshll.u32 %s4104_s7, 5  ;;  %s343_s20 = scalar_lea.sflag [#allocation7], %s4104_s7 }
  0xac   : > { %s4108_s15 = scalar_lea.vmem [#allocation6], %s2248_s19 }
  0xad   : > { %3716 = dma.done.wait (%p5382_p6), %s343_s20, 512  }
  0xae   : > { %3718 = vsyncadd (%p5382_p6), %s343_s20, 4294966784  ;;  %s351_s16 = sand.u32 1, %s3874_s10   ;;  %s353_s11 = sand.u32 1, %s3745_s25  }
  0xaf   : > { %s2249_s24 = sshll.u32 %s353_s11, 5  ;;  %s352_s17 = scalar_lea.sflag [#allocation10], %s351_s16 }
  0xb0   : > { %s4118_s2 = scalar_lea.vmem [#allocation9], %s2249_s24  ;;  %p5383_p9 = scmp.ne.s32.totalorder %s5360_s13, 0 }
  0xb2   : > { %3720 = dma.done.wait (%p5383_p9), %s352_s17, 512  }
  0xb3   : > { %3722 = vsyncadd (%p5383_p9), %s352_s17, 4294966784  ;;  %p5384_p2 = scmp.eq.s32.totalorder %s3874_s10, 0 }
  0xb5   : > { %3724 = dma.done.wait (%p5384_p2), [#allocation10], 16384   ;;  %p5385_p5 = pmov %p5384_p2 }
  0xb6   : > { %p5386_p10 = pmov %p5384_p2 }
  0xb7   : > { %3726 = vsyncadd (%p5385_p5), [#allocation10], 4294950912 }
  0xb8   : > { %3728 = dma.done.wait (%p5386_p10), [#allocation13], 16384   ;;  %p5387_p4 = pmov %p5384_p2 }
  0xb9   : > { %s4132_s12 = scalar_lea.vmem [#allocation14], %s2248_s19  ;;  %s4134_s4 = scalar_lea.vmem [#allocation15], %s2249_s24 }
  0xba   : > { %3730 = vsyncadd (%p5387_p4), [#allocation13], 4294950912  ;;  %p2254_p11 = scmp.ne.s32.totalorder %s3765_s30, 0 }
  0xbb   : > { %v3783_v0 = vmov (!%p2254_p11), 0.0  }
  0xbc   : > { %413 = sbr.rel (%p2254_p11) target bundleno = 195 (0xc3), region = 64  ;;  %414 = vst [vmem:[#allocation2] sm:$0xff] (!%p2254_p11), %v3783_v0  ;;  %415 = vst [vmem:[#allocation3] sm:$0xff] (!%p2254_p11), %v3783_v0 }
  0xbd   : > { %416 = vst [vmem:[#allocation4] sm:$0xff] (!%p2254_p11), %v3783_v0  ;;  %417 = vst [vmem:[#allocation5] sm:$0xff] (!%p2254_p11), %v3783_v0 }
  0xc3 PF: > { %v419_v1 = vld [vmem:[#allocation11 + $0x8] sm:$0xff]  ;;  %v418_v3 = vld [vmem:[#allocation11] sm:$0xff]  ;;  %v421_v12 = vld [vmem:[#allocation11 + $0x18] sm:$0xff]  ;;  %s2277_s18 = sshll.u32 %s3765_s30, 9  ;;  %s2054_s19 = sshll.u32 %s4132_s12, 4  ;;  %s5021_s19 = int_to_ptr.vmem [resolvable:$true] %s2054_s19 }
  0xc4   : > { %v423_v2 = vld [vmem:[#allocation11 + $0x28] sm:$0xff]  ;;  %v422_v5 = vld [vmem:[#allocation11 + $0x20] sm:$0xff]  ;;  %v425_v13 = vld [vmem:[#allocation11 + $0x38] sm:$0xff]  ;;  %s5734_s16 = sld [smem:[#allocation133_spill]]  ;;  %s2035_s17 = scalar_lea.sflag [#allocation8], %s4104_s7 }
  0xc5   : > { %v4137_v4 = vpack.c.bf16 %v423_v2, %v419_v1  ;;  %v427_v6 = vld [vmem:[#allocation11 + $0x48] sm:$0xff]  ;;  %v4139_v8 = vpack.c.bf16 %v422_v5, %v418_v3  ;;  %v426_v10 = vld [vmem:[#allocation11 + $0x40] sm:$0xff]  ;;  %v420_v14 = vld [vmem:[#allocation11 + $0x10] sm:$0xff]  ;;  %v4147_v17 = vpack.c.bf16 %v425_v13, %v421_v12  ;;  %s3784_s10 = smov [#allocation14]  }
  0xc6   : > { %v431_v7 = vld [vmem:[#allocation11 + $0x68] sm:$0xff]  ;;  %v430_v11 = vld [vmem:[#allocation11 + $0x60] sm:$0xff]  ;;  %v424_v15 = vld [vmem:[#allocation11 + $0x30] sm:$0xff]  ;;  %s3627_s13 = sshll.u32 %s3784_s10, 4  ;;  %s3628_s13 = int_to_ptr.vmem [resolvable:$false] %s3627_s13 }
  0xc7   : > { %v4141_v9 = vpack.c.bf16 %v431_v7, %v427_v6  ;;  %2280 = vmatprep.subr.bf16.mxu0 %v4137_v4  ;;  %v4145_v16 = vpack.c.bf16 %v430_v11, %v426_v10  ;;  %v4149_v18 = vpack.c.bf16 %v424_v15, %v420_v14  ;;  %v435_v19 = vld [vmem:[#allocation11 + $0x88] sm:$0xff]  ;;  %v434_v21 = vld [vmem:[#allocation11 + $0x80] sm:$0xff]  ;;  %v429_v24 = vld [vmem:[#allocation11 + $0x58] sm:$0xff]  ;;  %2344 = vmatprep.subr.bf16.mxu1 %v4147_v17  ;;  %s3629_s22 = scalar_lea.vmem %s3628_s13, 1024  ;;  %p3630_p3 = scmp.lt.s32.totalorder %s5021_s19, %s3628_s13 }
  0xc8   : > { %2282 = vmatpush1.bf16.msra.mxu0 %v4139_v8  ;;  %v439_v20 = vld [vmem:[#allocation11 + $0xa8] sm:$0xff]  ;;  %v438_v23 = vld [vmem:[#allocation11 + $0xa0] sm:$0xff]  ;;  %v433_v25 = vld [vmem:[#allocation11 + $0x78] sm:$0xff] }
  0xc9   : > { %2284 = vmatprep.subr.bf16.mxu0 %v4141_v9  ;;  %v4152_v22 = vpack.c.bf16 %v439_v20, %v435_v19  ;;  %v4155_v26 = vpack.c.bf16 %v433_v25, %v429_v24  ;;  %v428_v27 = vld [vmem:[#allocation11 + $0x50] sm:$0xff]  ;;  %v443_v29 = vld [vmem:[#allocation11 + $0xc8] sm:$0xff]  ;;  %2346 = vmatpush1.bf16.msra.mxu1 %v4149_v18  ;;  %v4161_v32 = vpack.c.bf16 %v438_v23, %v434_v21  ;;  %v437_v33 = vld [vmem:[#allocation11 + $0x98] sm:$0xff] }
  0xca   : > { %v432_v28 = vld [vmem:[#allocation11 + $0x70] sm:$0xff]  ;;  %v447_v31 = vld [vmem:[#allocation11 + $0xe8] sm:$0xff]  ;;  %v441_v34 = vld [vmem:[#allocation11 + $0xb8] sm:$0xff]  ;;  %s5019_s24 = scalar_lea.hbm %s5734_s16, %s2277_s18 }
  0xcb   : > { %v4158_v30 = vpack.c.bf16 %v432_v28, %v428_v27  ;;  %2348 = vmatprep.subr.bf16.mxu1 %v4155_v26  ;;  %v436_v35 = vld [vmem:[#allocation11 + $0x90] sm:$0xff]  ;;  %v4165_v36 = vpack.c.bf16 %v447_v31, %v443_v29  ;;  %v442_v37 = vld [vmem:[#allocation11 + $0xc0] sm:$0xff]  ;;  %v4167_v39 = vpack.c.bf16 %v441_v34, %v437_v33  ;;  %v451_v41 = vld [vmem:[#allocation11 + $0x108] sm:$0xff] }
  0xcc   : > { %2286 = vmatpush1.bf16.msra.mxu0 %v4145_v16  ;;  %v446_v38 = vld [vmem:[#allocation11 + $0xe0] sm:$0xff]  ;;  %v440_v40 = vld [vmem:[#allocation11 + $0xb0] sm:$0xff]  ;;  %v455_v42 = vld [vmem:[#allocation11 + $0x128] sm:$0xff] }
  0xcd   : > { %2288 = vmatprep.subr.bf16.mxu0 %v4152_v22  ;;  %v445_v43 = vld [vmem:[#allocation11 + $0xd8] sm:$0xff]  ;;  %2350 = vmatpush1.bf16.msra.mxu1 %v4158_v30  ;;  %v4170_v44 = vpack.c.bf16 %v440_v40, %v436_v35  ;;  %v4173_v46 = vpack.c.bf16 %v446_v38, %v442_v37  ;;  %v450_v47 = vld [vmem:[#allocation11 + $0x100] sm:$0xff]  ;;  %v444_v49 = vld [vmem:[#allocation11 + $0xd0] sm:$0xff]  ;;  %v4179_v51 = vpack.c.bf16 %v455_v42, %v451_v41 }
  0xce   : > { %v449_v45 = vld [vmem:[#allocation11 + $0xf8] sm:$0xff]  ;;  %2352 = vmatprep.subr.bf16.mxu1 %v4167_v39  ;;  %v448_v50 = vld [vmem:[#allocation11 + $0xf0] sm:$0xff]  ;;  %v454_v52 = vld [vmem:[#allocation11 + $0x120] sm:$0xff] }
  0xcf   : > { %v4176_v48 = vpack.c.bf16 %v449_v45, %v445_v43  ;;  %v453_v53 = vld [vmem:[#allocation11 + $0x118] sm:$0xff]  ;;  %v459_v55 = vld [vmem:[#allocation11 + $0x148] sm:$0xff]  ;;  %v4182_v57 = vpack.c.bf16 %v448_v50, %v444_v49  ;;  %v4185_v58 = vpack.c.bf16 %v454_v52, %v450_v47  ;;  %v458_v59 = vld [vmem:[#allocation11 + $0x140] sm:$0xff] }
  0xd0   : > { %2290 = vmatpush1.bf16.msra.mxu0 %v4161_v32  ;;  %v457_v54 = vld [vmem:[#allocation11 + $0x138] sm:$0xff]  ;;  %v463_v56 = vld [vmem:[#allocation11 + $0x168] sm:$0xff]  ;;  %v452_v61 = vld [vmem:[#allocation11 + $0x110] sm:$0xff] }
  0xd1   : > { %2292 = vmatprep.subr.bf16.mxu0 %v4165_v36  ;;  %2354 = vmatpush1.bf16.msra.mxu1 %v4170_v44  ;;  %v4188_v60 = vpack.c.bf16 %v457_v54, %v453_v53  ;;  %v456_v62 = vld [vmem:[#allocation11 + $0x130] sm:$0xff]  ;;  %v4191_v63 = vpack.c.bf16 %v463_v56, %v459_v55  ;;  %v462_v0 = vld [vmem:[#allocation11 + $0x160] sm:$0xff]  ;;  %v461_v1 = vld [vmem:[#allocation11 + $0x158] sm:$0xff] }
  0xd2   : > { %2356 = vmatprep.subr.bf16.mxu1 %v4176_v48  ;;  %v465_v2 = vld [vmem:[#allocation11 + $0x178] sm:$0xff]  ;;  %v467_v3 = vld [vmem:[#allocation11 + $0x188] sm:$0xff]  ;;  %v4194_v6 = vpack.c.bf16 %v456_v62, %v452_v61  ;;  %v4197_v7 = vpack.c.bf16 %v462_v0, %v458_v59  ;;  %v466_v10 = vld [vmem:[#allocation11 + $0x180] sm:$0xff] }
  0xd3   : > { %v471_v5 = vld [vmem:[#allocation11 + $0x1a8] sm:$0xff]  ;;  %v4200_v11 = vpack.c.bf16 %v465_v2, %v461_v1  ;;  %v460_v12 = vld [vmem:[#allocation11 + $0x150] sm:$0xff]  ;;  %v470_v15 = vld [vmem:[#allocation11 + $0x1a0] sm:$0xff] }
  0xd4   : > { %2294 = vmatpush1.bf16.msra.mxu0 %v4173_v46  ;;  %5388 = vst [vmem:[#allocation27_spill] sm:$0xff] %v4197_v7  ;;  %v464_v13 = vld [vmem:[#allocation11 + $0x170] sm:$0xff]  ;;  %v4203_v14 = vpack.c.bf16 %v471_v5, %v467_v3  ;;  %v469_v19 = vld [vmem:[#allocation11 + $0x198] sm:$0xff]  ;;  %v475_v21 = vld [vmem:[#allocation11 + $0x1c8] sm:$0xff]  ;;  %v4209_v25 = vpack.c.bf16 %v470_v15, %v466_v10 }
  0xd5   : > { %2296 = vmatprep.subr.bf16.mxu0 %v4179_v51  ;;  %2358 = vmatpush1.bf16.msra.mxu1 %v4182_v57  ;;  %v473_v20 = vld [vmem:[#allocation11 + $0x1b8] sm:$0xff]  ;;  %v479_v23 = vld [vmem:[#allocation11 + $0x1e8] sm:$0xff]  ;;  %v4206_v24 = vpack.c.bf16 %v464_v13, %v460_v12  ;;  %v474_v27 = vld [vmem:[#allocation11 + $0x1c0] sm:$0xff] }
  0xd6   : > { %2360 = vmatprep.subr.bf16.mxu1 %v4188_v60  ;;  %5389 = vst [vmem:[#allocation28_spill] sm:$0xff] %v4203_v14  ;;  %5391 = vst [vmem:[#allocation30_spill] sm:$0xff] %v4209_v25  ;;  %v4212_v28 = vpack.c.bf16 %v473_v20, %v469_v19  ;;  %v468_v29 = vld [vmem:[#allocation11 + $0x190] sm:$0xff]  ;;  %v4215_v33 = vpack.c.bf16 %v479_v23, %v475_v21  ;;  %v478_v34 = vld [vmem:[#allocation11 + $0x1e0] sm:$0xff] }
  0xd7   : > { %5390 = vst [vmem:[#allocation29_spill] sm:$0xff] %v4206_v24  ;;  %v472_v31 = vld [vmem:[#allocation11 + $0x1b0] sm:$0xff]  ;;  %v477_v35 = vld [vmem:[#allocation11 + $0x1d8] sm:$0xff]  ;;  %v483_v38 = vld [vmem:[#allocation11 + $0x208] sm:$0xff]  ;;  %v4221_v42 = vpack.c.bf16 %v478_v34, %v474_v27 }
  0xd8   : > { %2298 = vmatpush1.bf16.msra.mxu0 %v4185_v58  ;;  %5392 = vst [vmem:[#allocation31_spill] sm:$0xff] %v4212_v28  ;;  %5393 = vst [vmem:[#allocation32_spill] sm:$0xff] %v4215_v33  ;;  %v481_v37 = vld [vmem:[#allocation11 + $0x1f8] sm:$0xff]  ;;  %v487_v40 = vld [vmem:[#allocation11 + $0x228] sm:$0xff]  ;;  %v4218_v41 = vpack.c.bf16 %v472_v31, %v468_v29 }
  0xd9   : > { %2300 = vmatprep.subr.bf16.mxu0 %v4191_v63  ;;  %2362 = vmatpush1.bf16.msra.mxu1 %v4194_v6  ;;  %5395 = vst [vmem:[#allocation34_spill] sm:$0xff] %v4221_v42  ;;  %v482_v43 = vld [vmem:[#allocation11 + $0x200] sm:$0xff]  ;;  %v4224_v45 = vpack.c.bf16 %v481_v37, %v477_v35  ;;  %v476_v47 = vld [vmem:[#allocation11 + $0x1d0] sm:$0xff]  ;;  %v4227_v50 = vpack.c.bf16 %v487_v40, %v483_v38  ;;  %v485_v53 = vld [vmem:[#allocation11 + $0x218] sm:$0xff] }
  0xda   : > { %2364 = vmatprep.subr.bf16.mxu1 %v4200_v11  ;;  %5394 = vst [vmem:[#allocation33_spill] sm:$0xff] %v4218_v41  ;;  %v480_v49 = vld [vmem:[#allocation11 + $0x1f0] sm:$0xff]  ;;  %v486_v52 = vld [vmem:[#allocation11 + $0x220] sm:$0xff]  ;;  %v489_v54 = vld [vmem:[#allocation11 + $0x238] sm:$0xff] }
  0xdb   : > { %5396 = vst [vmem:[#allocation35_spill] sm:$0xff] %v4224_v45  ;;  %5397 = vst [vmem:[#allocation36_spill] sm:$0xff] %v4227_v50  ;;  %v491_v55 = vld [vmem:[#allocation11 + $0x248] sm:$0xff]  ;;  %v4230_v59 = vpack.c.bf16 %v480_v49, %v476_v47  ;;  %v4233_v61 = vpack.c.bf16 %v486_v52, %v482_v43  ;;  %v490_v62 = vld [vmem:[#allocation11 + $0x240] sm:$0xff]  ;;  %v4236_v0 = vpack.c.bf16 %v489_v54, %v485_v53 }
  0xdc   : > { %2302 = vmatpush1.bf16.msra.mxu0 %v4197_v7  ;;  %v495_v56 = vld [vmem:[#allocation11 + $0x268] sm:$0xff]  ;;  %v484_v1 = vld [vmem:[#allocation11 + $0x210] sm:$0xff]  ;;  %v494_v5 = vld [vmem:[#allocation11 + $0x260] sm:$0xff] }
  0xdd   : > { %2304 = vmatprep.subr.bf16.mxu0 %v4203_v14  ;;  %2366 = vmatpush1.bf16.msra.mxu1 %v4206_v24  ;;  %5398 = vst [vmem:[#allocation37_spill] sm:$0xff] %v4230_v59  ;;  %5399 = vst [vmem:[#allocation38_spill] sm:$0xff] %v4233_v61  ;;  %v488_v2 = vld [vmem:[#allocation11 + $0x230] sm:$0xff]  ;;  %v4239_v3 = vpack.c.bf16 %v495_v56, %v491_v55  ;;  %v493_v10 = vld [vmem:[#allocation11 + $0x258] sm:$0xff]  ;;  %v4245_v20 = vpack.c.bf16 %v494_v5, %v490_v62 }
  0xde   : > { %2368 = vmatprep.subr.bf16.mxu1 %v4212_v28  ;;  %5400 = vst [vmem:[#allocation39_spill] sm:$0xff] %v4236_v0  ;;  %v497_v12 = vld [vmem:[#allocation11 + $0x278] sm:$0xff]  ;;  %v499_v13 = vld [vmem:[#allocation11 + $0x288] sm:$0xff]  ;;  %v4242_v19 = vpack.c.bf16 %v488_v2, %v484_v1  ;;  %v498_v21 = vld [vmem:[#allocation11 + $0x280] sm:$0xff] }
  0xdf   : > { %5401 = vst [vmem:[#allocation40_spill] sm:$0xff] %v4239_v3  ;;  %v503_v15 = vld [vmem:[#allocation11 + $0x2a8] sm:$0xff]  ;;  %5403 = vst [vmem:[#allocation42_spill] sm:$0xff] %v4245_v20  ;;  %v4248_v23 = vpack.c.bf16 %v497_v12, %v493_v10  ;;  %v492_v27 = vld [vmem:[#allocation11 + $0x250] sm:$0xff] }
  0xe0   : > { %2306 = vmatpush1.bf16.msra.mxu0 %v4209_v25  ;;  %5402 = vst [vmem:[#allocation41_spill] sm:$0xff] %v4242_v19  ;;  %v496_v29 = vld [vmem:[#allocation11 + $0x270] sm:$0xff]  ;;  %v4251_v31 = vpack.c.bf16 %v503_v15, %v499_v13  ;;  %v502_v34 = vld [vmem:[#allocation11 + $0x2a0] sm:$0xff]  ;;  %v501_v35 = vld [vmem:[#allocation11 + $0x298] sm:$0xff] }
  0xe1   : > { %2308 = vmatprep.subr.bf16.mxu0 %v4215_v33  ;;  %2370 = vmatpush1.bf16.msra.mxu1 %v4218_v41  ;;  %5404 = vst [vmem:[#allocation43_spill] sm:$0xff] %v4248_v23  ;;  %v505_v37 = vld [vmem:[#allocation11 + $0x2b8] sm:$0xff]  ;;  %v507_v38 = vld [vmem:[#allocation11 + $0x2c8] sm:$0xff]  ;;  %v4254_v43 = vpack.c.bf16 %v496_v29, %v492_v27  ;;  %v506_v47 = vld [vmem:[#allocation11 + $0x2c0] sm:$0xff]  ;;  %v4257_v49 = vpack.c.bf16 %v502_v34, %v498_v21 }
  0xe2   : > { %2372 = vmatprep.subr.bf16.mxu1 %v4224_v45  ;;  %5405 = vst [vmem:[#allocation44_spill] sm:$0xff] %v4251_v31  ;;  %v511_v40 = vld [vmem:[#allocation11 + $0x2e8] sm:$0xff]  ;;  %v4260_v52 = vpack.c.bf16 %v505_v37, %v501_v35  ;;  %v500_v53 = vld [vmem:[#allocation11 + $0x290] sm:$0xff]  ;;  %v676_v55 = vld [vmem:[#allocation2] sm:$0xff] }
  0xe3   : > { %5406 = vst [vmem:[#allocation45_spill] sm:$0xff] %v4254_v43  ;;  %5407 = vst [vmem:[#allocation46_spill] sm:$0xff] %v4257_v49  ;;  %v504_v54 = vld [vmem:[#allocation11 + $0x2b0] sm:$0xff]  ;;  %v4263_v56 = vpack.c.bf16 %v511_v40, %v507_v38  ;;  %v510_v62 = vld [vmem:[#allocation11 + $0x2e0] sm:$0xff]  ;;  %766 = vmatprep.mubr.f32.mxu0 %v676_v55  ;;  %837 = vmatprep.mubr.f32.mxu1 %v676_v55 }
  0xe4   : > { %2310 = vmatpush1.bf16.msra.mxu0 %v4221_v42  ;;  %5408 = vst [vmem:[#allocation47_spill] sm:$0xff] %v4260_v52  ;;  %v509_v1 = vld [vmem:[#allocation11 + $0x2d8] sm:$0xff]  ;;  %v515_v5 = vld [vmem:[#allocation11 + $0x308] sm:$0xff]  ;;  %v4266_v12 = vpack.c.bf16 %v504_v54, %v500_v53  ;;  %v4269_v13 = vpack.c.bf16 %v510_v62, %v506_v47  ;;  %v514_v15 = vld [vmem:[#allocation11 + $0x300] sm:$0xff] }
  0xe5   : > { %2312 = vmatprep.subr.bf16.mxu0 %v4227_v50  ;;  %2374 = vmatpush1.bf16.msra.mxu1 %v4230_v59  ;;  %5409 = vst [vmem:[#allocation48_spill] sm:$0xff] %v4263_v56  ;;  %v513_v2 = vld [vmem:[#allocation11 + $0x2f8] sm:$0xff]  ;;  %v519_v10 = vld [vmem:[#allocation11 + $0x328] sm:$0xff]  ;;  %v508_v27 = vld [vmem:[#allocation11 + $0x2d0] sm:$0xff] }
  0xe6   : > { %2376 = vmatprep.subr.bf16.mxu1 %v4236_v0  ;;  %5410 = vst [vmem:[#allocation49_spill] sm:$0xff] %v4266_v12  ;;  %5411 = vst [vmem:[#allocation50_spill] sm:$0xff] %v4269_v13  ;;  %v4272_v21 = vpack.c.bf16 %v513_v2, %v509_v1  ;;  %v512_v29 = vld [vmem:[#allocation11 + $0x2f0] sm:$0xff]  ;;  %v4275_v34 = vpack.c.bf16 %v519_v10, %v515_v5  ;;  %v518_v35 = vld [vmem:[#allocation11 + $0x320] sm:$0xff] }
  0xe7   : > { %v517_v37 = vld [vmem:[#allocation11 + $0x318] sm:$0xff]  ;;  %v523_v40 = vld [vmem:[#allocation11 + $0x348] sm:$0xff]  ;;  %v4278_v47 = vpack.c.bf16 %v512_v29, %v508_v27  ;;  %v4281_v54 = vpack.c.bf16 %v518_v35, %v514_v15  ;;  %v522_v55 = vld [vmem:[#allocation11 + $0x340] sm:$0xff] }
  0xe8   : > { %2314 = vmatpush1.bf16.msra.mxu0 %v4233_v61  ;;  %5412 = vst [vmem:[#allocation51_spill] sm:$0xff] %v4272_v21  ;;  %5413 = vst [vmem:[#allocation52_spill] sm:$0xff] %v4275_v34  ;;  %v521_v38 = vld [vmem:[#allocation11 + $0x338] sm:$0xff]  ;;  %v527_v53 = vld [vmem:[#allocation11 + $0x368] sm:$0xff] }
  0xe9   : > { %2316 = vmatprep.subr.bf16.mxu0 %v4239_v3  ;;  %2378 = vmatpush1.bf16.msra.mxu1 %v4242_v19  ;;  %5414 = vst [vmem:[#allocation53_spill] sm:$0xff] %v4278_v47  ;;  %5415 = vst [vmem:[#allocation54_spill] sm:$0xff] %v4281_v54  ;;  %v4284_v62 = vpack.c.bf16 %v521_v38, %v517_v37  ;;  %v516_v1 = vld [vmem:[#allocation11 + $0x310] sm:$0xff]  ;;  %v4287_v5 = vpack.c.bf16 %v527_v53, %v523_v40  ;;  %v526_v10 = vld [vmem:[#allocation11 + $0x360] sm:$0xff] }
  0xea   : > { %2380 = vmatprep.subr.bf16.mxu1 %v4248_v23  ;;  %v520_v2 = vld [vmem:[#allocation11 + $0x330] sm:$0xff]  ;;  %v531_v27 = vld [vmem:[#allocation11 + $0x388] sm:$0xff]  ;;  %v4293_v35 = vpack.c.bf16 %v526_v10, %v522_v55  ;;  %v530_v37 = vld [vmem:[#allocation11 + $0x380] sm:$0xff] }
  0xeb   : > { %5416 = vst [vmem:[#allocation55_spill] sm:$0xff] %v4284_v62  ;;  %5417 = vst [vmem:[#allocation56_spill] sm:$0xff] %v4287_v5  ;;  %v535_v29 = vld [vmem:[#allocation11 + $0x3a8] sm:$0xff]  ;;  %v4290_v15 = vpack.c.bf16 %v520_v2, %v516_v1  ;;  %v524_v40 = vld [vmem:[#allocation11 + $0x350] sm:$0xff] }
  0xec   : > { %2318 = vmatpush1.bf16.msra.mxu0 %v4245_v20  ;;  %5419 = vst [vmem:[#allocation58_spill] sm:$0xff] %v4293_v35  ;;  %v528_v53 = vld [vmem:[#allocation11 + $0x370] sm:$0xff]  ;;  %v539_v1 = vld [vmem:[#allocation11 + $0x3c8] sm:$0xff] }
  0xed   : > { %2320 = vmatprep.subr.bf16.mxu0 %v4251_v31  ;;  %2382 = vmatpush1.bf16.msra.mxu1 %v4254_v43  ;;  %5418 = vst [vmem:[#allocation57_spill] sm:$0xff] %v4290_v15  ;;  %v543_v2 = vld [vmem:[#allocation11 + $0x3e8] sm:$0xff]  ;;  %v4302_v55 = vpack.c.bf16 %v528_v53, %v524_v40 }
  0xee   : > { %2384 = vmatprep.subr.bf16.mxu1 %v4260_v52  ;;  %v547_v40 = vld [vmem:[#allocation12 + $0x8] sm:$0xff]  ;;  %v561_v52 = vld [vmem:[#allocation12 + $0x78] sm:$0xff] }
  0xef   : > { %5422 = vst [vmem:[#allocation61_spill] sm:$0xff] %v4302_v55  ;;  %v551_v53 = vld [vmem:[#allocation12 + $0x28] sm:$0xff] }
  0xf0   : > { %2322 = vmatpush1.bf16.msra.mxu0 %v4257_v49 }
  0xf1   : > { %2324 = vmatprep.subr.bf16.mxu0 %v4263_v56  ;;  %2386 = vmatpush1.bf16.msra.mxu1 %v4266_v12  ;;  %v525_v56 = vld [vmem:[#allocation11 + $0x358] sm:$0xff] }
  0xf2   : > { %2388 = vmatprep.subr.bf16.mxu1 %v4272_v21  ;;  %v529_v12 = vld [vmem:[#allocation11 + $0x378] sm:$0xff]  ;;  %v534_v21 = vld [vmem:[#allocation11 + $0x3a0] sm:$0xff] }
  0xf3   : > { %v4296_v38 = vpack.c.bf16 %v529_v12, %v525_v56  ;;  %v4305_v10 = vpack.c.bf16 %v534_v21, %v530_v37  ;;  %v538_v56 = vld [vmem:[#allocation11 + $0x3c0] sm:$0xff] }
  0xf4   : > { %2326 = vmatpush1.bf16.msra.mxu0 %v4269_v13  ;;  %v533_v13 = vld [vmem:[#allocation11 + $0x398] sm:$0xff] }
  0xf5   : > { %2328 = vmatprep.subr.bf16.mxu0 %v4275_v34  ;;  %2390 = vmatpush1.bf16.msra.mxu1 %v4278_v47  ;;  %5420 = vst [vmem:[#allocation59_spill] sm:$0xff] %v4296_v38  ;;  %v4299_v34 = vpack.c.bf16 %v535_v29, %v531_v27  ;;  %v537_v47 = vld [vmem:[#allocation11 + $0x3b8] sm:$0xff]  ;;  %5423 = vst [vmem:[#allocation62_spill] sm:$0xff] %v4305_v10  ;;  %v532_v27 = vld [vmem:[#allocation11 + $0x390] sm:$0xff] }
  0xf6   : > { %2392 = vmatprep.subr.bf16.mxu1 %v4284_v62  ;;  %v4308_v12 = vpack.c.bf16 %v537_v47, %v533_v13  ;;  %v536_v29 = vld [vmem:[#allocation11 + $0x3b0] sm:$0xff]  ;;  %v542_v62 = vld [vmem:[#allocation11 + $0x3e0] sm:$0xff] }
  0xf7   : > { %5421 = vst [vmem:[#allocation60_spill] sm:$0xff] %v4299_v34  ;;  %v4314_v21 = vpack.c.bf16 %v536_v29, %v532_v27  ;;  %v4317_v13 = vpack.c.bf16 %v542_v62, %v538_v56  ;;  %v546_v47 = vld [vmem:[#allocation12] sm:$0xff]  ;;  %v553_v27 = vld [vmem:[#allocation12 + $0x38] sm:$0xff]  ;;  %v555_v29 = vld [vmem:[#allocation12 + $0x48] sm:$0xff] }
  0xf8   : > { %2330 = vmatpush1.bf16.msra.mxu0 %v4281_v54  ;;  %5424 = vst [vmem:[#allocation63_spill] sm:$0xff] %v4308_v12  ;;  %v541_v54 = vld [vmem:[#allocation11 + $0x3d8] sm:$0xff]  ;;  %v680_v62 = vld [vmem:[%s4108_s15] sm:$0xff] }
  0xf9   : > { %2332 = vmatprep.subr.bf16.mxu0 %v4287_v5  ;;  %2394 = vmatpush1.bf16.msra.mxu1 %v4290_v15  ;;  %v4311_v5 = vpack.c.bf16 %v543_v2, %v539_v1  ;;  %v545_v15 = vld [vmem:[#allocation11 + $0x3f8] sm:$0xff]  ;;  %5426 = vst [vmem:[#allocation65_spill] sm:$0xff] %v4314_v21  ;;  %5427 = vst [vmem:[#allocation66_spill] sm:$0xff] %v4317_v13  ;;  %v540_v1 = vld [vmem:[#allocation11 + $0x3d0] sm:$0xff] }
  0xfa   : > { %2396 = vmatprep.subr.bf16.mxu1 %v4296_v38  ;;  %v4320_v37 = vpack.c.bf16 %v545_v15, %v541_v54  ;;  %v544_v2 = vld [vmem:[#allocation11 + $0x3f0] sm:$0xff]  ;;  %v550_v38 = vld [vmem:[#allocation12 + $0x20] sm:$0xff] }
  0xfb   : > { %5425 = vst [vmem:[#allocation64_spill] sm:$0xff] %v4311_v5  ;;  %v4327_v56 = vpack.c.bf16 %v544_v2, %v540_v1  ;;  %v4330_v54 = vpack.c.bf16 %v550_v38, %v546_v47  ;;  %v554_v15 = vld [vmem:[#allocation12 + $0x40] sm:$0xff]  ;;  %v563_v1 = vld [vmem:[#allocation12 + $0x88] sm:$0xff] }
  0xfc   : > { %2334 = vmatpush1.bf16.msra.mxu0 %v4293_v35  ;;  %5428 = vst [vmem:[#allocation67_spill] sm:$0xff] %v4320_v37  ;;  %v559_v35 = vld [vmem:[#allocation12 + $0x68] sm:$0xff]  ;;  %v562_v47 = vld [vmem:[#allocation12 + $0x80] sm:$0xff] }
  0xfd   : > { %2336 = vmatprep.subr.bf16.mxu0 %v4299_v34  ;;  %2398 = vmatpush1.bf16.msra.mxu1 %v4302_v55  ;;  %v4323_v34 = vpack.c.bf16 %v551_v53, %v547_v40  ;;  %v549_v55 = vld [vmem:[#allocation12 + $0x18] sm:$0xff]  ;;  %5430 = vst [vmem:[#allocation69_spill] sm:$0xff] %v4327_v56  ;;  %5431 = vst [vmem:[#allocation70_spill] sm:$0xff] %v4330_v54  ;;  %v548_v40 = vld [vmem:[#allocation12 + $0x10] sm:$0xff] }
  0xfe   : > { %2400 = vmatprep.subr.bf16.mxu1 %v4308_v12  ;;  %v552_v53 = vld [vmem:[#allocation12 + $0x30] sm:$0xff]  ;;  %v4336_v12 = vpack.c.bf16 %v559_v35, %v555_v29  ;;  %v567_v2 = vld [vmem:[#allocation12 + $0xa8] sm:$0xff] }
  0xff   : > { %5429 = vst [vmem:[#allocation68_spill] sm:$0xff] %v4323_v34  ;;  %v4339_v38 = vpack.c.bf16 %v552_v53, %v548_v40  ;;  %v556_v35 = vld [vmem:[#allocation12 + $0x50] sm:$0xff]  ;;  %v571_v40 = vld [vmem:[#allocation12 + $0xc8] sm:$0xff] }
 0x100   : > { %2338 = vmatpush1.bf16.msra.mxu0 %v4305_v10  ;;  %5433 = vst [vmem:[#allocation72_spill] sm:$0xff] %v4336_v12  ;;  %v558_v10 = vld [vmem:[#allocation12 + $0x60] sm:$0xff]  ;;  %v560_v29 = vld [vmem:[#allocation12 + $0x70] sm:$0xff]  ;;  %v575_v53 = vld [vmem:[#allocation12 + $0xe8] sm:$0xff] }
 0x101   : > { %2340 = vmatprep.subr.bf16.mxu0 %v4311_v5  ;;  %2402 = vmatpush1.bf16.msra.mxu1 %v4314_v21  ;;  %v4333_v5 = vpack.c.bf16 %v553_v27, %v549_v55  ;;  %v557_v21 = vld [vmem:[#allocation12 + $0x58] sm:$0xff]  ;;  %5434 = vst [vmem:[#allocation73_spill] sm:$0xff] %v4339_v38  ;;  %v4342_v55 = vpack.c.bf16 %v558_v10, %v554_v15 }
 0x102   : > { %2404 = vmatprep.subr.bf16.mxu1 %v4320_v37  ;;  %v4345_v27 = vpack.c.bf16 %v561_v52, %v557_v21  ;;  %v566_v37 = vld [vmem:[#allocation12 + $0xa0] sm:$0xff]  ;;  %v4351_v10 = vpack.c.bf16 %v560_v29, %v556_v35  ;;  %v579_v35 = vld [vmem:[#allocation12 + $0x108] sm:$0xff] }
 0x103   : > { %5432 = vst [vmem:[#allocation71_spill] sm:$0xff] %v4333_v5  ;;  %5435 = vst [vmem:[#allocation74_spill] sm:$0xff] %v4342_v55  ;;  %v4354_v52 = vpack.c.bf16 %v566_v37, %v562_v47  ;;  %v570_v21 = vld [vmem:[#allocation12 + $0xc0] sm:$0xff]  ;;  %v583_v29 = vld [vmem:[#allocation12 + $0x128] sm:$0xff] }
 0x104   : > { %2342 = vmatpush1.bf16.msra.mxu0 %v4317_v13  ;;  %5436 = vst [vmem:[#allocation75_spill] sm:$0xff] %v4345_v27  ;;  %v565_v13 = vld [vmem:[#allocation12 + $0x98] sm:$0xff]  ;;  %5438 = vst [vmem:[#allocation77_spill] sm:$0xff] %v4351_v10 }
 0x105   : > { %2408 = vmatprep.subr.bf16.mxu0 %v4323_v34  ;;  %2406 = vmatpush1.bf16.msra.mxu1 %v4327_v56  ;;  %v4348_v34 = vpack.c.bf16 %v567_v2, %v563_v1  ;;  %v569_v56 = vld [vmem:[#allocation12 + $0xb8] sm:$0xff]  ;;  %5439 = vst [vmem:[#allocation78_spill] sm:$0xff] %v4354_v52  ;;  %v564_v1 = vld [vmem:[#allocation12 + $0x90] sm:$0xff] }
 0x106   : > { %2472 = vmatprep.subr.bf16.mxu1 %v4333_v5  ;;  %v4357_v15 = vpack.c.bf16 %v569_v56, %v565_v13  ;;  %v568_v2 = vld [vmem:[#allocation12 + $0xb0] sm:$0xff]  ;;  %v578_v13 = vld [vmem:[#allocation12 + $0x100] sm:$0xff]  ;;  %v607_v5 = vld [vmem:[#allocation12 + $0x1e8] sm:$0xff] }
 0x107   : > { %767 = vmatmul.mubr.f32.vlgmr.msra.gmra.mrb[0].mxu0 %v680_v62  ;;  %5437 = vst [vmem:[#allocation76_spill] sm:$0xff] %v4348_v34  ;;  %v4363_v37 = vpack.c.bf16 %v568_v2, %v564_v1  ;;  %v587_v1 = vld [vmem:[#allocation12 + $0x148] sm:$0xff] }
 0x108   : > { %2410 = vmatpush1.bf16.msra.mxu0 %v4330_v54  ;;  %838 = vmatmul.mubr.f32.vlgmr.msra.gmra.mrb[0].mxu1 %v680_v62  ;;  %5440 = vst [vmem:[#allocation79_spill] sm:$0xff] %v4357_v15  ;;  %v4360_v62 = vpack.c.bf16 %v575_v53, %v571_v40  ;;  %v573_v54 = vld [vmem:[#allocation12 + $0xd8] sm:$0xff]  ;;  %v572_v40 = vld [vmem:[#allocation12 + $0xd0] sm:$0xff]  ;;  %v591_v2 = vld [vmem:[#allocation12 + $0x168] sm:$0xff] }
 0x109   : > { %2412 = vmatprep.subr.bf16.mxu0 %v4336_v12  ;;  %2474 = vmatpush1.bf16.msra.mxu1 %v4339_v38  ;;  %v574_v12 = vld [vmem:[#allocation12 + $0xe0] sm:$0xff]  ;;  %v577_v38 = vld [vmem:[#allocation12 + $0xf8] sm:$0xff]  ;;  %5442 = vst [vmem:[#allocation81_spill] sm:$0xff] %v4363_v37  ;;  %v576_v53 = vld [vmem:[#allocation12 + $0xf0] sm:$0xff] }
 0x10a   : > { %2476 = vmatprep.subr.bf16.mxu1 %v4345_v27  ;;  %5441 = vst [vmem:[#allocation80_spill] sm:$0xff] %v4360_v62  ;;  %v4366_v47 = vpack.c.bf16 %v574_v12, %v570_v21  ;;  %v4369_v56 = vpack.c.bf16 %v577_v38, %v573_v54  ;;  %v581_v27 = vld [vmem:[#allocation12 + $0x118] sm:$0xff]  ;;  %v4375_v12 = vpack.c.bf16 %v576_v53, %v572_v40  ;;  %v586_v54 = vld [vmem:[#allocation12 + $0x140] sm:$0xff]  ;;  %v595_v40 = vld [vmem:[#allocation12 + $0x188] sm:$0xff] }
 0x10b   : > { %v599_v53 = vld [vmem:[#allocation12 + $0x1a8] sm:$0xff] }
 0x10c   : > { %2414 = vmatpush1.bf16.msra.mxu0 %v4342_v55  ;;  %5443 = vst [vmem:[#allocation82_spill] sm:$0xff] %v4366_v47  ;;  %5444 = vst [vmem:[#allocation83_spill] sm:$0xff] %v4369_v56  ;;  %v582_v55 = vld [vmem:[#allocation12 + $0x120] sm:$0xff] }
 0x10d   : > { %2416 = vmatprep.subr.bf16.mxu0 %v4348_v34  ;;  %2478 = vmatpush1.bf16.msra.mxu1 %v4351_v10  ;;  %v4372_v34 = vpack.c.bf16 %v583_v29, %v579_v35  ;;  %v585_v10 = vld [vmem:[#allocation12 + $0x138] sm:$0xff]  ;;  %5446 = vst [vmem:[#allocation85_spill] sm:$0xff] %v4375_v12  ;;  %v4378_v21 = vpack.c.bf16 %v582_v55, %v578_v13  ;;  %v580_v35 = vld [vmem:[#allocation12 + $0x110] sm:$0xff]  ;;  %v594_v13 = vld [vmem:[#allocation12 + $0x180] sm:$0xff] }
 0x10e   : > { %2480 = vmatprep.subr.bf16.mxu1 %v4357_v15  ;;  %v4381_v38 = vpack.c.bf16 %v585_v10, %v581_v27  ;;  %v584_v29 = vld [vmem:[#allocation12 + $0x130] sm:$0xff]  ;;  %v589_v15 = vld [vmem:[#allocation12 + $0x158] sm:$0xff] }
 0x10f   : > { %5445 = vst [vmem:[#allocation84_spill] sm:$0xff] %v4372_v34  ;;  %5447 = vst [vmem:[#allocation86_spill] sm:$0xff] %v4378_v21  ;;  %v4387_v55 = vpack.c.bf16 %v584_v29, %v580_v35  ;;  %v601_v35 = vld [vmem:[#allocation12 + $0x1b8] sm:$0xff]  ;;  %v603_v29 = vld [vmem:[#allocation12 + $0x1c8] sm:$0xff] }
 0x110   : > { %2418 = vmatpush1.bf16.msra.mxu0 %v4354_v52  ;;  %5448 = vst [vmem:[#allocation87_spill] sm:$0xff] %v4381_v38  ;;  %v590_v52 = vld [vmem:[#allocation12 + $0x160] sm:$0xff] }
 0x111   : > { %2420 = vmatprep.subr.bf16.mxu0 %v4360_v62  ;;  %2482 = vmatpush1.bf16.msra.mxu1 %v4363_v37  ;;  %v4384_v62 = vpack.c.bf16 %v591_v2, %v587_v1  ;;  %v593_v37 = vld [vmem:[#allocation12 + $0x178] sm:$0xff]  ;;  %5450 = vst [vmem:[#allocation89_spill] sm:$0xff] %v4387_v55  ;;  %v4390_v27 = vpack.c.bf16 %v590_v52, %v586_v54  ;;  %v588_v1 = vld [vmem:[#allocation12 + $0x150] sm:$0xff] }
 0x112   : > { %2484 = vmatprep.subr.bf16.mxu1 %v4369_v56  ;;  %v4393_v10 = vpack.c.bf16 %v593_v37, %v589_v15  ;;  %v592_v2 = vld [vmem:[#allocation12 + $0x170] sm:$0xff]  ;;  %v598_v56 = vld [vmem:[#allocation12 + $0x1a0] sm:$0xff] }
 0x113   : > { %5449 = vst [vmem:[#allocation88_spill] sm:$0xff] %v4384_v62  ;;  %5451 = vst [vmem:[#allocation90_spill] sm:$0xff] %v4390_v27  ;;  %v4399_v52 = vpack.c.bf16 %v592_v2, %v588_v1  ;;  %v4402_v15 = vpack.c.bf16 %v598_v56, %v594_v13  ;;  %v602_v37 = vld [vmem:[#allocation12 + $0x1c0] sm:$0xff]  ;;  %v611_v1 = vld [vmem:[#allocation12 + $0x208] sm:$0xff] }
 0x114   : > { %2422 = vmatpush1.bf16.msra.mxu0 %v4366_v47  ;;  %5452 = vst [vmem:[#allocation91_spill] sm:$0xff] %v4393_v10  ;;  %v4396_v47 = vpack.c.bf16 %v599_v53, %v595_v40  ;;  %v596_v40 = vld [vmem:[#allocation12 + $0x190] sm:$0xff]  ;;  %v615_v2 = vld [vmem:[#allocation12 + $0x228] sm:$0xff] }
 0x115   : > { %2424 = vmatprep.subr.bf16.mxu0 %v4372_v34  ;;  %2486 = vmatpush1.bf16.msra.mxu1 %v4375_v12  ;;  %v678_v34 = vld [vmem:[#allocation4] sm:$0xff]  ;;  %v597_v12 = vld [vmem:[#allocation12 + $0x198] sm:$0xff]  ;;  %5454 = vst [vmem:[#allocation93_spill] sm:$0xff] %v4399_v52  ;;  %5455 = vst [vmem:[#allocation94_spill] sm:$0xff] %v4402_v15 }
 0x116   : > { %2488 = vmatprep.subr.bf16.mxu1 %v4381_v38  ;;  %5453 = vst [vmem:[#allocation92_spill] sm:$0xff] %v4396_v47  ;;  %949 = vmatprep.mubr.f32.mxu0 %v678_v34  ;;  %v4405_v54 = vpack.c.bf16 %v601_v35, %v597_v12  ;;  %v600_v53 = vld [vmem:[#allocation12 + $0x1b0] sm:$0xff]  ;;  %v610_v12 = vld [vmem:[#allocation12 + $0x200] sm:$0xff] }
 0x117   : > { %1020 = vmatprep.mubr.f32.mxu1 %v678_v34  ;;  %v606_v34 = vld [vmem:[#allocation12 + $0x1e0] sm:$0xff]  ;;  %v4411_v56 = vpack.c.bf16 %v600_v53, %v596_v40  ;;  %v619_v40 = vld [vmem:[#allocation12 + $0x248] sm:$0xff] }
 0x118   : > { %2426 = vmatpush1.bf16.msra.mxu0 %v4378_v21  ;;  %5456 = vst [vmem:[#allocation95_spill] sm:$0xff] %v4405_v54  ;;  %v605_v21 = vld [vmem:[#allocation12 + $0x1d8] sm:$0xff]  ;;  %v4414_v13 = vpack.c.bf16 %v606_v34, %v602_v37  ;;  %v623_v53 = vld [vmem:[#allocation12 + $0x268] sm:$0xff] }
 0x119   : > { %2428 = vmatprep.subr.bf16.mxu0 %v4384_v62  ;;  %2490 = vmatpush1.bf16.msra.mxu1 %v4387_v55  ;;  %v4408_v62 = vpack.c.bf16 %v607_v5, %v603_v29  ;;  %v609_v55 = vld [vmem:[#allocation12 + $0x1f8] sm:$0xff]  ;;  %5458 = vst [vmem:[#allocation97_spill] sm:$0xff] %v4411_v56  ;;  %v604_v5 = vld [vmem:[#allocation12 + $0x1d0] sm:$0xff] }
 0x11a   : > { %2492 = vmatprep.subr.bf16.mxu1 %v4393_v10  ;;  %5459 = vst [vmem:[#allocation98_spill] sm:$0xff] %v4414_v13  ;;  %v4417_v35 = vpack.c.bf16 %v609_v55, %v605_v21  ;;  %v608_v29 = vld [vmem:[#allocation12 + $0x1f0] sm:$0xff]  ;;  %v613_v10 = vld [vmem:[#allocation12 + $0x218] sm:$0xff]  ;;  %v618_v21 = vld [vmem:[#allocation12 + $0x240] sm:$0xff] }
 0x11b   : > { %5457 = vst [vmem:[#allocation96_spill] sm:$0xff] %v4408_v62  ;;  %v4423_v37 = vpack.c.bf16 %v608_v29, %v604_v5  ;;  %v627_v5 = vld [vmem:[#allocation12 + $0x288] sm:$0xff] }
 0x11c   : > { %2430 = vmatpush1.bf16.msra.mxu0 %v4390_v27  ;;  %5460 = vst [vmem:[#allocation99_spill] sm:$0xff] %v4417_v35  ;;  %v614_v27 = vld [vmem:[#allocation12 + $0x220] sm:$0xff]  ;;  %v631_v29 = vld [vmem:[#allocation12 + $0x2a8] sm:$0xff] }
 0x11d   : > { %2432 = vmatprep.subr.bf16.mxu0 %v4396_v47  ;;  %2494 = vmatpush1.bf16.msra.mxu1 %v4399_v52  ;;  %v4420_v47 = vpack.c.bf16 %v615_v2, %v611_v1  ;;  %v617_v52 = vld [vmem:[#allocation12 + $0x238] sm:$0xff]  ;;  %5462 = vst [vmem:[#allocation101_spill] sm:$0xff] %v4423_v37  ;;  %v4426_v34 = vpack.c.bf16 %v614_v27, %v610_v12  ;;  %v612_v1 = vld [vmem:[#allocation12 + $0x210] sm:$0xff] }
 0x11e   : > { %2496 = vmatprep.subr.bf16.mxu1 %v4405_v54  ;;  %v4429_v55 = vpack.c.bf16 %v617_v52, %v613_v10  ;;  %v616_v2 = vld [vmem:[#allocation12 + $0x230] sm:$0xff]  ;;  %v621_v54 = vld [vmem:[#allocation12 + $0x258] sm:$0xff]  ;;  %v626_v10 = vld [vmem:[#allocation12 + $0x280] sm:$0xff] }
 0x11f   : > { %5461 = vst [vmem:[#allocation100_spill] sm:$0xff] %v4420_v47  ;;  %5463 = vst [vmem:[#allocation102_spill] sm:$0xff] %v4426_v34  ;;  %v4435_v27 = vpack.c.bf16 %v616_v2, %v612_v1  ;;  %v635_v1 = vld [vmem:[#allocation12 + $0x2c8] sm:$0xff] }
 0x120   : > { %2434 = vmatpush1.bf16.msra.mxu0 %v4402_v15  ;;  %5464 = vst [vmem:[#allocation103_spill] sm:$0xff] %v4429_v55  ;;  %v622_v15 = vld [vmem:[#allocation12 + $0x260] sm:$0xff]  ;;  %v639_v2 = vld [vmem:[#allocation12 + $0x2e8] sm:$0xff] }
 0x121   : > { %2436 = vmatprep.subr.bf16.mxu0 %v4408_v62  ;;  %2498 = vmatpush1.bf16.msra.mxu1 %v4411_v56  ;;  %v4432_v62 = vpack.c.bf16 %v623_v53, %v619_v40  ;;  %v625_v56 = vld [vmem:[#allocation12 + $0x278] sm:$0xff]  ;;  %5466 = vst [vmem:[#allocation105_spill] sm:$0xff] %v4435_v27  ;;  %v4438_v12 = vpack.c.bf16 %v622_v15, %v618_v21  ;;  %v620_v40 = vld [vmem:[#allocation12 + $0x250] sm:$0xff] }
 0x122   : > { %2500 = vmatprep.subr.bf16.mxu1 %v4417_v35  ;;  %v4441_v52 = vpack.c.bf16 %v625_v56, %v621_v54  ;;  %v624_v53 = vld [vmem:[#allocation12 + $0x270] sm:$0xff]  ;;  %v629_v35 = vld [vmem:[#allocation12 + $0x298] sm:$0xff]  ;;  %v634_v54 = vld [vmem:[#allocation12 + $0x2c0] sm:$0xff] }
 0x123   : > { %5465 = vst [vmem:[#allocation104_spill] sm:$0xff] %v4432_v62  ;;  %5467 = vst [vmem:[#allocation106_spill] sm:$0xff] %v4438_v12  ;;  %v4447_v15 = vpack.c.bf16 %v624_v53, %v620_v40  ;;  %v643_v40 = vld [vmem:[#allocation12 + $0x308] sm:$0xff] }
 0x124   : > { %2438 = vmatpush1.bf16.msra.mxu0 %v4414_v13  ;;  %5468 = vst [vmem:[#allocation107_spill] sm:$0xff] %v4441_v52  ;;  %v630_v13 = vld [vmem:[#allocation12 + $0x2a0] sm:$0xff]  ;;  %v647_v53 = vld [vmem:[#allocation12 + $0x328] sm:$0xff] }
 0x125   : > { %2440 = vmatprep.subr.bf16.mxu0 %v4420_v47  ;;  %2502 = vmatpush1.bf16.msra.mxu1 %v4423_v37  ;;  %v4444_v47 = vpack.c.bf16 %v631_v29, %v627_v5  ;;  %v633_v37 = vld [vmem:[#allocation12 + $0x2b8] sm:$0xff]  ;;  %5470 = vst [vmem:[#allocation109_spill] sm:$0xff] %v4447_v15  ;;  %v4450_v21 = vpack.c.bf16 %v630_v13, %v626_v10  ;;  %v628_v5 = vld [vmem:[#allocation12 + $0x290] sm:$0xff] }
 0x126   : > { %2504 = vmatprep.subr.bf16.mxu1 %v4429_v55  ;;  %v4453_v56 = vpack.c.bf16 %v633_v37, %v629_v35  ;;  %v632_v29 = vld [vmem:[#allocation12 + $0x2b0] sm:$0xff]  ;;  %v637_v55 = vld [vmem:[#allocation12 + $0x2d8] sm:$0xff]  ;;  %v642_v35 = vld [vmem:[#allocation12 + $0x300] sm:$0xff] }
 0x127   : > { %5469 = vst [vmem:[#allocation108_spill] sm:$0xff] %v4444_v47  ;;  %5471 = vst [vmem:[#allocation110_spill] sm:$0xff] %v4450_v21  ;;  %v4459_v13 = vpack.c.bf16 %v632_v29, %v628_v5  ;;  %v651_v5 = vld [vmem:[#allocation12 + $0x348] sm:$0xff] }
 0x128   : > { %2442 = vmatpush1.bf16.msra.mxu0 %v4426_v34  ;;  %5472 = vst [vmem:[#allocation111_spill] sm:$0xff] %v4453_v56  ;;  %v638_v34 = vld [vmem:[#allocation12 + $0x2e0] sm:$0xff]  ;;  %v655_v29 = vld [vmem:[#allocation12 + $0x368] sm:$0xff] }
 0x129   : > { %2444 = vmatprep.subr.bf16.mxu0 %v4432_v62  ;;  %2506 = vmatpush1.bf16.msra.mxu1 %v4435_v27  ;;  %v4456_v62 = vpack.c.bf16 %v639_v2, %v635_v1  ;;  %v641_v27 = vld [vmem:[#allocation12 + $0x2f8] sm:$0xff]  ;;  %5474 = vst [vmem:[#allocation113_spill] sm:$0xff] %v4459_v13  ;;  %v4462_v10 = vpack.c.bf16 %v638_v34, %v634_v54  ;;  %v636_v1 = vld [vmem:[#allocation12 + $0x2d0] sm:$0xff] }
 0x12a   : > { %2508 = vmatprep.subr.bf16.mxu1 %v4441_v52  ;;  %v4465_v37 = vpack.c.bf16 %v641_v27, %v637_v55  ;;  %v640_v2 = vld [vmem:[#allocation12 + $0x2f0] sm:$0xff]  ;;  %v645_v52 = vld [vmem:[#allocation12 + $0x318] sm:$0xff]  ;;  %v650_v55 = vld [vmem:[#allocation12 + $0x340] sm:$0xff] }
 0x12b   : > { %5473 = vst [vmem:[#allocation112_spill] sm:$0xff] %v4456_v62  ;;  %5475 = vst [vmem:[#allocation114_spill] sm:$0xff] %v4462_v10  ;;  %v4471_v34 = vpack.c.bf16 %v640_v2, %v636_v1  ;;  %v659_v1 = vld [vmem:[#allocation12 + $0x388] sm:$0xff] }
 0x12c   : > { %2446 = vmatpush1.bf16.msra.mxu0 %v4438_v12  ;;  %5476 = vst [vmem:[#allocation115_spill] sm:$0xff] %v4465_v37  ;;  %v646_v12 = vld [vmem:[#allocation12 + $0x320] sm:$0xff]  ;;  %v663_v2 = vld [vmem:[#allocation12 + $0x3a8] sm:$0xff] }
 0x12d   : > { %2448 = vmatprep.subr.bf16.mxu0 %v4444_v47  ;;  %2510 = vmatpush1.bf16.msra.mxu1 %v4447_v15  ;;  %v4468_v47 = vpack.c.bf16 %v647_v53, %v643_v40  ;;  %v649_v15 = vld [vmem:[#allocation12 + $0x338] sm:$0xff]  ;;  %5478 = vst [vmem:[#allocation117_spill] sm:$0xff] %v4471_v34  ;;  %v4474_v54 = vpack.c.bf16 %v646_v12, %v642_v35  ;;  %v644_v40 = vld [vmem:[#allocation12 + $0x310] sm:$0xff] }
 0x12e   : > { %2512 = vmatprep.subr.bf16.mxu1 %v4453_v56  ;;  %v4477_v27 = vpack.c.bf16 %v649_v15, %v645_v52  ;;  %v648_v53 = vld [vmem:[#allocation12 + $0x330] sm:$0xff]  ;;  %v653_v56 = vld [vmem:[#allocation12 + $0x358] sm:$0xff]  ;;  %v658_v52 = vld [vmem:[#allocation12 + $0x380] sm:$0xff] }
 0x12f   : > { %5477 = vst [vmem:[#allocation116_spill] sm:$0xff] %v4468_v47  ;;  %5479 = vst [vmem:[#allocation118_spill] sm:$0xff] %v4474_v54  ;;  %v4483_v12 = vpack.c.bf16 %v648_v53, %v644_v40  ;;  %v667_v40 = vld [vmem:[#allocation12 + $0x3c8] sm:$0xff] }
 0x130   : > { %2450 = vmatpush1.bf16.msra.mxu0 %v4450_v21  ;;  %v654_v21 = vld [vmem:[#allocation12 + $0x360] sm:$0xff]  ;;  %v671_v53 = vld [vmem:[#allocation12 + $0x3e8] sm:$0xff] }
 0x131   : > { %2452 = vmatprep.subr.bf16.mxu0 %v4456_v62  ;;  %2514 = vmatpush1.bf16.msra.mxu1 %v4459_v13  ;;  %v4480_v62 = vpack.c.bf16 %v655_v29, %v651_v5  ;;  %v657_v13 = vld [vmem:[#allocation12 + $0x378] sm:$0xff]  ;;  %5481 = vst [vmem:[#allocation120_spill] sm:$0xff] %v4483_v12  ;;  %v4486_v35 = vpack.c.bf16 %v654_v21, %v650_v55  ;;  %v652_v5 = vld [vmem:[#allocation12 + $0x350] sm:$0xff] }
 0x132   : > { %2516 = vmatprep.subr.bf16.mxu1 %v4465_v37  ;;  %v4489_v15 = vpack.c.bf16 %v657_v13, %v653_v56  ;;  %v656_v29 = vld [vmem:[#allocation12 + $0x370] sm:$0xff]  ;;  %v661_v37 = vld [vmem:[#allocation12 + $0x398] sm:$0xff]  ;;  %v666_v56 = vld [vmem:[#allocation12 + $0x3c0] sm:$0xff] }
 0x133   : > { %5480 = vst [vmem:[#allocation119_spill] sm:$0xff] %v4480_v62  ;;  %v4495_v21 = vpack.c.bf16 %v656_v29, %v652_v5  ;;  %v673_v5 = vld [vmem:[#allocation12 + $0x3f8] sm:$0xff] }
 0x134   : > { %2454 = vmatpush1.bf16.msra.mxu0 %v4462_v10  ;;  %v662_v10 = vld [vmem:[#allocation12 + $0x3a0] sm:$0xff] }
 0x135   : > { %2456 = vmatprep.subr.bf16.mxu0 %v4468_v47  ;;  %2518 = vmatpush1.bf16.msra.mxu1 %v4471_v34  ;;  %v4492_v47 = vpack.c.bf16 %v663_v2, %v659_v1  ;;  %v665_v34 = vld [vmem:[#allocation12 + $0x3b8] sm:$0xff]  ;;  %v4498_v55 = vpack.c.bf16 %v662_v10, %v658_v52  ;;  %v660_v1 = vld [vmem:[#allocation12 + $0x390] sm:$0xff] }
 0x136   : > { %2520 = vmatprep.subr.bf16.mxu1 %v4477_v27  ;;  %v4501_v13 = vpack.c.bf16 %v665_v34, %v661_v37  ;;  %v664_v2 = vld [vmem:[#allocation12 + $0x3b0] sm:$0xff] }
 0x137   : > { %v4507_v29 = vpack.c.bf16 %v664_v2, %v660_v1  ;;  %v668_v34 = vld [vmem:[#allocation12 + $0x3d0] sm:$0xff]  ;;  %v5485_v1 = vld [vmem:[#allocation50_spill] sm:$0xff]  ;;  %v5486_v2 = vld [vmem:[#allocation51_spill] sm:$0xff] }
 0x138   : > { %2458 = vmatpush1.bf16.msra.mxu0 %v4474_v54  ;;  %v670_v54 = vld [vmem:[#allocation12 + $0x3e0] sm:$0xff]  ;;  %v672_v52 = vld [vmem:[#allocation12 + $0x3f0] sm:$0xff] }
 0x139   : > { %2460 = vmatprep.subr.bf16.mxu0 %v4480_v62  ;;  %2522 = vmatpush1.bf16.msra.mxu1 %v4483_v12  ;;  %v4504_v62 = vpack.c.bf16 %v671_v53, %v667_v40  ;;  %v669_v12 = vld [vmem:[#allocation12 + $0x3d8] sm:$0xff]  ;;  %v4510_v10 = vpack.c.bf16 %v670_v54, %v666_v56  ;;  %v4517_v40 = vpack.c.bf16 %v672_v52, %v668_v34  ;;  %v5482_v54 = vld [vmem:[#allocation47_spill] sm:$0xff]  ;;  %v5484_v56 = vld [vmem:[#allocation49_spill] sm:$0xff] }
 0x13a   : > { %2524 = vmatprep.subr.bf16.mxu1 %v4489_v15  ;;  %v4513_v37 = vpack.c.bf16 %v673_v5, %v669_v12  ;;  %v2255_v53 = vld [vmem:[%s4118_s2 + $0x18] sm:$0xff]  ;;  %v5483_v12 = vld [vmem:[#allocation48_spill] sm:$0xff]  ;;  %v5488_v34 = vld [vmem:[#allocation53_spill] sm:$0xff] }
 0x13b   : > { %v5487_v5 = vld [vmem:[#allocation52_spill] sm:$0xff]  ;;  %v5489_v52 = vld [vmem:[#allocation54_spill] sm:$0xff] }
 0x13c   : > { %2462 = vmatpush1.bf16.msra.mxu0 %v4486_v35 }
 0x13d   : > { %2464 = vmatprep.subr.bf16.mxu0 %v4492_v47  ;;  %2526 = vmatpush1.bf16.msra.mxu1 %v4495_v21 }
 0x13e   : > { %2528 = vmatprep.subr.bf16.mxu1 %v4501_v13 }
 0x140   : > { %2466 = vmatpush1.bf16.msra.mxu0 %v4498_v55 }
 0x141   : > { %2468 = vmatprep.subr.bf16.mxu0 %v4504_v62  ;;  %2530 = vmatpush1.bf16.msra.mxu1 %v4507_v29 }
 0x142   : > { %2532 = vmatprep.subr.bf16.mxu1 %v4513_v37 }
 0x144   : > { %2470 = vmatpush1.bf16.msra.mxu0 %v4510_v10 }
 0x145   : > { %2536 = vmatprep.subr.bf16.mxu0 %v4137_v4  ;;  %2534 = vmatpush1.bf16.msra.mxu1 %v4517_v40 }
 0x146   : > { %2600 = vmatprep.subr.bf16.mxu1 %v4147_v17 }
 0x147   : > { %950 = vmatmul.mubr.f32.vlgmr.msra.gmra.mrb[2].mxu0 %v2255_v53 }
 0x148   : > { %2538 = vmatpush1.bf16.msra.mxu0 %v4139_v8  ;;  %1021 = vmatmul.mubr.f32.vlgmr.msra.gmra.mrb[2].mxu1 %v2255_v53  ;;  %v5490_v53 = vld [vmem:[#allocation55_spill] sm:$0xff] }
 0x149   : > { %2540 = vmatprep.subr.bf16.mxu0 %v4141_v9  ;;  %2602 = vmatpush1.bf16.msra.mxu1 %v4149_v18 }
 0x14a   : > { %2604 = vmatprep.subr.bf16.mxu1 %v4155_v26 }
 0x14c   : > { %2542 = vmatpush1.bf16.msra.mxu0 %v4145_v16 }
 0x14d   : > { %2544 = vmatprep.subr.bf16.mxu0 %v4152_v22  ;;  %2606 = vmatpush1.bf16.msra.mxu1 %v4158_v30 }
 0x14e   : > { %2608 = vmatprep.subr.bf16.mxu1 %v4167_v39 }
 0x150   : > { %2546 = vmatpush1.bf16.msra.mxu0 %v4161_v32 }
 0x151   : > { %2548 = vmatprep.subr.bf16.mxu0 %v4165_v36  ;;  %2610 = vmatpush1.bf16.msra.mxu1 %v4170_v44 }
 0x152   : > { %2612 = vmatprep.subr.bf16.mxu1 %v4176_v48 }
 0x154   : > { %2550 = vmatpush1.bf16.msra.mxu0 %v4173_v46 }
 0x155   : > { %2552 = vmatprep.subr.bf16.mxu0 %v4179_v51  ;;  %2614 = vmatpush1.bf16.msra.mxu1 %v4182_v57 }
 0x156   : > { %2616 = vmatprep.subr.bf16.mxu1 %v4188_v60 }
 0x158   : > { %2554 = vmatpush1.bf16.msra.mxu0 %v4185_v58 }
 0x159   : > { %2556 = vmatprep.subr.bf16.mxu0 %v4191_v63  ;;  %2618 = vmatpush1.bf16.msra.mxu1 %v4194_v6 }
 0x15a   : > { %2620 = vmatprep.subr.bf16.mxu1 %v4200_v11 }
 0x15c   : > { %2558 = vmatpush1.bf16.msra.mxu0 %v4197_v7 }
 0x15d   : > { %2560 = vmatprep.subr.bf16.mxu0 %v4203_v14  ;;  %2622 = vmatpush1.bf16.msra.mxu1 %v4206_v24 }
 0x15e   : > { %2624 = vmatprep.subr.bf16.mxu1 %v4212_v28 }
 0x160   : > { %2562 = vmatpush1.bf16.msra.mxu0 %v4209_v25 }
 0x161   : > { %2564 = vmatprep.subr.bf16.mxu0 %v4215_v33  ;;  %2626 = vmatpush1.bf16.msra.mxu1 %v4218_v41 }
 0x162   : > { %2628 = vmatprep.subr.bf16.mxu1 %v4224_v45 }
 0x164   : > { %2566 = vmatpush1.bf16.msra.mxu0 %v4221_v42 }
 0x165   : > { %2568 = vmatprep.subr.bf16.mxu0 %v4227_v50  ;;  %2630 = vmatpush1.bf16.msra.mxu1 %v4230_v59 }
 0x166   : > { %2632 = vmatprep.subr.bf16.mxu1 %v4236_v0 }
 0x168   : > { %2570 = vmatpush1.bf16.msra.mxu0 %v4233_v61 }
 0x169   : > { %2572 = vmatprep.subr.bf16.mxu0 %v4239_v3  ;;  %2634 = vmatpush1.bf16.msra.mxu1 %v4242_v19 }
 0x16a   : > { %2636 = vmatprep.subr.bf16.mxu1 %v4248_v23 }
 0x16c   : > { %2574 = vmatpush1.bf16.msra.mxu0 %v4245_v20 }
 0x16d   : > { %2576 = vmatprep.subr.bf16.mxu0 %v4251_v31  ;;  %2638 = vmatpush1.bf16.msra.mxu1 %v4254_v43  ;;  %v5491_v31 = vld [vmem:[#allocation56_spill] sm:$0xff] }
 0x16e   : > { %2640 = vmatprep.subr.bf16.mxu1 %v5482_v54  ;;  %v5493_v54 = vld [vmem:[#allocation58_spill] sm:$0xff] }
 0x170   : > { %2578 = vmatpush1.bf16.msra.mxu0 %v4257_v49  ;;  %v5492_v49 = vld [vmem:[#allocation57_spill] sm:$0xff] }
 0x171   : > { %2580 = vmatprep.subr.bf16.mxu0 %v5483_v12  ;;  %2642 = vmatpush1.bf16.msra.mxu1 %v5484_v56  ;;  %v5494_v12 = vld [vmem:[#allocation59_spill] sm:$0xff]  ;;  %v5495_v56 = vld [vmem:[#allocation60_spill] sm:$0xff] }
 0x172   : > { %2644 = vmatprep.subr.bf16.mxu1 %v5486_v2  ;;  %v5497_v2 = vld [vmem:[#allocation62_spill] sm:$0xff] }
 0x174   : > { %2582 = vmatpush1.bf16.msra.mxu0 %v5485_v1  ;;  %v5496_v1 = vld [vmem:[#allocation61_spill] sm:$0xff] }
 0x175   : > { %2584 = vmatprep.subr.bf16.mxu0 %v5487_v5  ;;  %2646 = vmatpush1.bf16.msra.mxu1 %v5488_v34  ;;  %v5498_v5 = vld [vmem:[#allocation63_spill] sm:$0xff]  ;;  %v5499_v34 = vld [vmem:[#allocation64_spill] sm:$0xff] }
 0x176   : > { %2648 = vmatprep.subr.bf16.mxu1 %v5490_v53  ;;  %v5501_v53 = vld [vmem:[#allocation66_spill] sm:$0xff] }
 0x178   : > { %2586 = vmatpush1.bf16.msra.mxu0 %v5489_v52  ;;  %v5500_v52 = vld [vmem:[#allocation65_spill] sm:$0xff] }
 0x179   : > { %2588 = vmatprep.subr.bf16.mxu0 %v5491_v31  ;;  %2650 = vmatpush1.bf16.msra.mxu1 %v5492_v49  ;;  %v5502_v31 = vld [vmem:[#allocation67_spill] sm:$0xff]  ;;  %v5503_v49 = vld [vmem:[#allocation68_spill] sm:$0xff] }
 0x17a   : > { %2652 = vmatprep.subr.bf16.mxu1 %v5494_v12  ;;  %v5505_v12 = vld [vmem:[#allocation71_spill] sm:$0xff] }
 0x17c   : > { %2590 = vmatpush1.bf16.msra.mxu0 %v5493_v54  ;;  %v5504_v54 = vld [vmem:[#allocation69_spill] sm:$0xff] }
 0x17d   : > { %2592 = vmatprep.subr.bf16.mxu0 %v5495_v56  ;;  %2654 = vmatpush1.bf16.msra.mxu1 %v5496_v1  ;;  %v682_v56 = vlaneseq }
 0x17e   : > { %2656 = vmatprep.subr.bf16.mxu1 %v5498_v5 }
 0x17f   : > { %v4589_v1 = vshrl.u32 %v682_v56, 7 }
 0x180   : > { %2594 = vmatpush1.bf16.msra.mxu0 %v5497_v2 }
 0x181   : > { %2596 = vmatprep.subr.bf16.mxu0 %v5499_v34  ;;  %2658 = vmatpush1.bf16.msra.mxu1 %v5500_v52  ;;  %v5310_v2 = vsub.s32 0, %v4589_v1  ;;  %v674_v34 = vld [vmem:[%s5132_s3] sm:$0xf]  ;;  %v5315_v52 = vsub.s32 1, %v4589_v1  ;;  %v5327_v43 = vsub.s32 3, %v4589_v1 }
 0x182   : > { %2660 = vmatprep.subr.bf16.mxu1 %v5502_v31 }
 0x184   : > { %2598 = vmatpush1.bf16.msra.mxu0 %v5501_v53  ;;  %v5316_v53 = vsub.s32 2, %v4589_v1 }
 0x185   : > { %2664 = vmatprep.subr.bf16.mxu0 %v5503_v49  ;;  %2662 = vmatpush1.bf16.msra.mxu1 %v5504_v54  ;;  %v4599_v49 = vrot.slane %v674_v34, %v5310_v2 }
 0x186   : > { %2728 = vmatprep.subr.bf16.mxu1 %v5505_v12  ;;  %v4603_v12 = vrot.slane %v674_v34, %v5315_v52  ;;  %v4607_v54 = vrot.slane %v674_v34, %v5316_v53  ;;  %v4615_v52 = vrot.slane %v674_v34, %v5327_v43 }
 0x187   : > { %5506 = vst [vmem:[#allocation121_spill] sm:$0xff] %v4599_v49 }
 0x188   : > { %5507 = vst [vmem:[#allocation122_spill] sm:$0xff] %v4603_v12  ;;  %5508 = vst [vmem:[#allocation123_spill] sm:$0xff] %v4607_v54 }
 0x189   : > { %5509 = vst [vmem:[#allocation124_spill] sm:$0xff] %v4615_v52 }
 0x1da   : > { %v768_v56 = vpop.f32.mrb[0].mxu0 }
 0x1db   : > { %v769_v31 = vadd.f32 %v768_v56, %v4599_v49  ;;  %v770_v5 = vpop.f32.mrb[1].mxu0  ;;  %v839_v3 = vpop.f32.mrb[0].mxu1 }
 0x1dc   : > { %v771_v20 = vadd.f32 %v770_v5, %v4603_v12  ;;  %v840_v19 = vadd.f32 %v839_v3, %v4607_v54  ;;  %v841_v61 = vpop.f32.mrb[1].mxu1  ;;  %v677_v5 = vld [vmem:[#allocation3] sm:$0xff] }
 0x1dd   : > { %v844_v23 = vmul.f32 0.5, %v769_v31  ;;  %v842_v56 = vadd.f32 %v841_v61, %v4615_v52 }
 0x1de   : > { %v848_v2 = vmul.f32 0.5, %v771_v20 }
 0x1df   : > { %3427 = vtanh.f32 %v844_v23  ;;  %v853_v53 = vmul.f32 0.5, %v842_v56 }
 0x1e0   : > { %3429 = vtanh.f32 %v848_v2 }
 0x1e1   : > { %3431 = vtanh.f32 %v840_v19 }
 0x1e2   : > { %3433 = vtanh.f32 %v853_v53  ;;  %v5513_v53 = vld [vmem:[#allocation72_spill] sm:$0xff] }
 0x1e9   : > { %v3428_v49 = vpop.eup %3427 }
 0x1ea   : > { %v3430_v0 = vpop.eup %3429  ;;  %v846_v50 = vmul.f32 0.5, %v3428_v49  ;;  %v2257_v49 = vld [vmem:[%s4108_s15 + $0x8] sm:$0xff] }
 0x1eb   : > { %v3432_v31 = vpop.eup %3431  ;;  %v850_v20 = vmul.f32 0.5, %v3430_v0  ;;  %v5512_v0 = vld [vmem:[#allocation73_spill] sm:$0xff] }
 0x1ec   : > { %v847_v3 = vadd.f32 0.5, %v846_v50  ;;  %v3434_v19 = vpop.eup %3433  ;;  %v5511_v50 = vld [vmem:[#allocation70_spill] sm:$0xff] }
 0x1ed   : > { %v851_v23 = vadd.f32 0.5, %v850_v20  ;;  %v855_v61 = vmul.f32 0.5, %v3434_v19  ;;  %v5517_v20 = vld [vmem:[#allocation76_spill] sm:$0xff]  ;;  %v5522_v19 = vld [vmem:[#allocation83_spill] sm:$0xff] }
 0x1ee   : > { %v858_v54 = vmul.f32 %v3432_v31, %v847_v3  ;;  %v5516_v31 = vld [vmem:[#allocation77_spill] sm:$0xff]  ;;  %v5518_v3 = vld [vmem:[#allocation79_spill] sm:$0xff] }
 0x1ef   : > { %v857_v12 = vmul.f32 %v851_v23, %v677_v5  ;;  %v856_v2 = vadd.f32 0.5, %v855_v61  ;;  %v5519_v5 = vld [vmem:[#allocation78_spill] sm:$0xff]  ;;  %v5521_v23 = vld [vmem:[#allocation80_spill] sm:$0xff] }
 0x1f0   : > { %v5523_v61 = vld [vmem:[#allocation82_spill] sm:$0xff] }
 0x1f1   : > { %v4618_v34 = vadd.f32 %v858_v54, %v857_v12  ;;  %v5514_v54 = vld [vmem:[#allocation75_spill] sm:$0xff]  ;;  %v5515_v12 = vld [vmem:[#allocation74_spill] sm:$0xff] }
 0x1f3   : > { %5510 = vst [vmem:[#allocation125_spill] sm:$0xff] %v4618_v34  ;;  %3435 = vtanh.f32 %v4618_v34  ;;  %v5545_v34 = vld [vmem:[#allocation101_spill] sm:$0xff] }
 0x1fd   : > { %v3436_v56 = vpop.eup %3435 }
 0x1fe   : > { %v861_v43 = vmul.f32 %v3436_v56, %v856_v2  ;;  %v5524_v2 = vld [vmem:[#allocation85_spill] sm:$0xff]  ;;  %v5525_v56 = vld [vmem:[#allocation84_spill] sm:$0xff] }
 0x200   : > { %1045 = vst [vmem:[%s4132_s12] sm:$0xff] %v861_v43  ;;  %1114 = vmatprep.mubr.f32.mxu0 %v861_v43  ;;  %1185 = vmatprep.mubr.f32.mxu1 %v861_v43  ;;  %v5520_v43 = vld [vmem:[#allocation81_spill] sm:$0xff] }
 0x201   : > { %1115 = vmatmul.mubr.f32.vlgmr.msra.gmra.mrb[4].mxu0 %v2257_v49  ;;  %1186 = vmatmul.mubr.f32.vlgmr.msra.gmra.mrb[4].mxu1 %v2257_v49  ;;  %v5526_v49 = vld [vmem:[#allocation86_spill] sm:$0xff] }
 0x202   : > { %2666 = vmatpush1.bf16.msra.mxu0 %v5511_v50  ;;  %2730 = vmatpush1.bf16.msra.mxu1 %v5512_v0  ;;  %v5544_v50 = vld [vmem:[#allocation98_spill] sm:$0xff] }
 0x203   : > { %2668 = vmatprep.subr.bf16.mxu0 %v5513_v53  ;;  %2732 = vmatprep.subr.bf16.mxu1 %v5514_v54  ;;  %v5543_v54 = vld [vmem:[#allocation99_spill] sm:$0xff] }
 0x206   : > { %2670 = vmatpush1.bf16.msra.mxu0 %v5515_v12  ;;  %2734 = vmatpush1.bf16.msra.mxu1 %v5516_v31  ;;  %v5539_v31 = vsub.s32 2, %v4589_v1 }
 0x207   : > { %2672 = vmatprep.subr.bf16.mxu0 %v5517_v20  ;;  %2736 = vmatprep.subr.bf16.mxu1 %v5518_v3  ;;  %v5527_v20 = vld [vmem:[#allocation89_spill] sm:$0xff]  ;;  %v5528_v3 = vld [vmem:[#allocation88_spill] sm:$0xff] }
 0x20a   : > { %2674 = vmatpush1.bf16.msra.mxu0 %v5519_v5  ;;  %2738 = vmatpush1.bf16.msra.mxu1 %v5520_v43  ;;  %v5529_v5 = vld [vmem:[#allocation91_spill] sm:$0xff]  ;;  %v5538_v43 = vld [vmem:[#allocation94_spill] sm:$0xff] }
 0x20b   : > { %2676 = vmatprep.subr.bf16.mxu0 %v5521_v23  ;;  %2740 = vmatprep.subr.bf16.mxu1 %v5522_v19  ;;  %v675_v19 = vld [vmem:[%s5134_s5] sm:$0xf]  ;;  %v5530_v23 = vld [vmem:[#allocation90_spill] sm:$0xff] }
 0x20e   : > { %2678 = vmatpush1.bf16.msra.mxu0 %v5523_v61  ;;  %2742 = vmatpush1.bf16.msra.mxu1 %v5524_v2  ;;  %v5531_v61 = vld [vmem:[#allocation93_spill] sm:$0xff]  ;;  %v5532_v2 = vld [vmem:[#allocation92_spill] sm:$0xff] }
 0x20f   : > { %2680 = vmatprep.subr.bf16.mxu0 %v5525_v56  ;;  %2744 = vmatprep.subr.bf16.mxu1 %v4381_v38  ;;  %v5533_v38 = vsub.s32 0, %v4589_v1 }
 0x211   : > { %v4651_v56 = vrot.slane %v675_v19, %v5533_v38  ;;  %v5542_v38 = vld [vmem:[#allocation96_spill] sm:$0xff] }
 0x212   : > { %2682 = vmatpush1.bf16.msra.mxu0 %v5526_v49  ;;  %2746 = vmatpush1.bf16.msra.mxu1 %v5527_v20  ;;  %v5535_v49 = vld [vmem:[#allocation95_spill] sm:$0xff] }
 0x213   : > { %2684 = vmatprep.subr.bf16.mxu0 %v5528_v3  ;;  %2748 = vmatprep.subr.bf16.mxu1 %v5529_v5  ;;  %5534 = vst [vmem:[#allocation126_spill] sm:$0xff] %v4651_v56  ;;  %v5536_v3 = vsub.s32 1, %v4589_v1 }
 0x215   : > { %v4656_v20 = vrot.slane %v675_v19, %v5536_v3 }
 0x216   : > { %2686 = vmatpush1.bf16.msra.mxu0 %v5530_v23  ;;  %2750 = vmatpush1.bf16.msra.mxu1 %v5531_v61  ;;  %v4661_v23 = vrot.slane %v675_v19, %v5539_v31  ;;  %v5541_v61 = vld [vmem:[#allocation97_spill] sm:$0xff] }
 0x217   : > { %2688 = vmatprep.subr.bf16.mxu0 %v5532_v2  ;;  %2752 = vmatprep.subr.bf16.mxu1 %v5535_v49  ;;  %5537 = vst [vmem:[#allocation127_spill] sm:$0xff] %v4656_v20 }
 0x218   : > { %5540 = vst [vmem:[#allocation128_spill] sm:$0xff] %v4661_v23 }
 0x21a   : > { %v951_v5 = vpop.f32.mrb[2].mxu0  ;;  %2690 = vmatpush1.bf16.msra.mxu0 %v5538_v43  ;;  %2754 = vmatpush1.bf16.msra.mxu1 %v5541_v61 }
 0x21b   : > { %v952_v2 = vadd.f32 %v951_v5, %v4651_v56  ;;  %v953_v12 = vpop.f32.mrb[3].mxu0  ;;  %2692 = vmatprep.subr.bf16.mxu0 %v5542_v38  ;;  %2756 = vmatprep.subr.bf16.mxu1 %v5543_v54  ;;  %v1022_v53 = vpop.f32.mrb[2].mxu1  ;;  %v5546_v5 = vsub.s32 3, %v4589_v1  ;;  %v5548_v38 = vld [vmem:[#allocation100_spill] sm:$0xff]  ;;  %v5549_v54 = vld [vmem:[#allocation103_spill] sm:$0xff]  ;;  %v5555_v1 = vld [vmem:[#allocation109_spill] sm:$0xff] }
 0x21c   : > { %v954_v49 = vadd.f32 %v953_v12, %v4656_v20  ;;  %v1023_v43 = vadd.f32 %v1022_v53, %v4661_v23  ;;  %v1024_v31 = vpop.f32.mrb[3].mxu1  ;;  %v5550_v12 = vld [vmem:[#allocation102_spill] sm:$0xff]  ;;  %v5564_v23 = vld [vmem:[#allocation116_spill] sm:$0xff] }
 0x21d   : > { %v1027_v3 = vmul.f32 0.5, %v952_v2  ;;  %v4673_v56 = vrot.slane %v675_v19, %v5546_v5  ;;  %v5551_v2 = vld [vmem:[#allocation105_spill] sm:$0xff]  ;;  %v5556_v5 = vld [vmem:[#allocation108_spill] sm:$0xff] }
 0x21e   : > { %v1031_v0 = vmul.f32 0.5, %v954_v49  ;;  %2694 = vmatpush1.bf16.msra.mxu0 %v5544_v50  ;;  %2758 = vmatpush1.bf16.msra.mxu1 %v5545_v34  ;;  %v5552_v49 = vld [vmem:[#allocation104_spill] sm:$0xff]  ;;  %v5553_v34 = vld [vmem:[#allocation107_spill] sm:$0xff]  ;;  %v5562_v50 = vld [vmem:[#allocation114_spill] sm:$0xff] }
 0x21f   : > { %3437 = vtanh.f32 %v1027_v3  ;;  %5547 = vst [vmem:[#allocation129_spill] sm:$0xff] %v4673_v56  ;;  %2696 = vmatprep.subr.bf16.mxu0 %v5548_v38  ;;  %2760 = vmatprep.subr.bf16.mxu1 %v5549_v54  ;;  %v1025_v53 = vadd.f32 %v1024_v31, %v4673_v56  ;;  %v5554_v3 = vld [vmem:[#allocation106_spill] sm:$0xff]  ;;  %v5557_v54 = vld [vmem:[#allocation111_spill] sm:$0xff] }
 0x220   : > { %3439 = vtanh.f32 %v1031_v0  ;;  %v5558_v38 = vld [vmem:[#allocation110_spill] sm:$0xff] }
 0x221   : > { %3441 = vtanh.f32 %v1023_v43  ;;  %v1036_v19 = vmul.f32 0.5, %v1025_v53  ;;  %v679_v53 = vld [vmem:[#allocation5] sm:$0xff] }
 0x222   : > { %2698 = vmatpush1.bf16.msra.mxu0 %v5550_v12  ;;  %2762 = vmatpush1.bf16.msra.mxu1 %v5551_v2  ;;  %v5559_v2 = vld [vmem:[#allocation113_spill] sm:$0xff] }
 0x223   : > { %2700 = vmatprep.subr.bf16.mxu0 %v5552_v49  ;;  %2764 = vmatprep.subr.bf16.mxu1 %v5553_v34  ;;  %3443 = vtanh.f32 %v1036_v19  ;;  %v5560_v34 = vld [vmem:[#allocation112_spill] sm:$0xff]  ;;  %v5565_v19 = vld [vmem:[#allocation118_spill] sm:$0xff] }
 0x226   : > { %2702 = vmatpush1.bf16.msra.mxu0 %v5554_v3  ;;  %2766 = vmatpush1.bf16.msra.mxu1 %v5555_v1  ;;  %v5561_v3 = vld [vmem:[#allocation115_spill] sm:$0xff] }
 0x227   : > { %2704 = vmatprep.subr.bf16.mxu0 %v5556_v5  ;;  %2768 = vmatprep.subr.bf16.mxu1 %v5557_v54  ;;  %v5563_v54 = vld [vmem:[#allocation117_spill] sm:$0xff] }
 0x229   : > { %v3438_v0 = vpop.eup %3437 }
 0x22a   : > { %v3440_v43 = vpop.eup %3439  ;;  %v1029_v12 = vmul.f32 0.5, %v3438_v0  ;;  %2706 = vmatpush1.bf16.msra.mxu0 %v5558_v38  ;;  %2770 = vmatpush1.bf16.msra.mxu1 %v5559_v2 }
 0x22b   : > { %v3442_v31 = vpop.eup %3441  ;;  %v1033_v49 = vmul.f32 0.5, %v3440_v43  ;;  %2708 = vmatprep.subr.bf16.mxu0 %v5560_v34  ;;  %2772 = vmatprep.subr.bf16.mxu1 %v5561_v3  ;;  %v5566_v43 = vld [vmem:[#allocation120_spill] sm:$0xff]  ;;  %v5567_v3 = vld [vmem:[#allocation119_spill] sm:$0xff] }
 0x22c   : > { %v1030_v1 = vadd.f32 0.5, %v1029_v12 }
 0x22d   : > { %v1034_v56 = vadd.f32 0.5, %v1033_v49  ;;  %v3444_v12 = vpop.eup %3443 }
 0x22e   : > { %v1041_v5 = vmul.f32 %v3442_v31, %v1030_v1  ;;  %2710 = vmatpush1.bf16.msra.mxu0 %v5562_v50  ;;  %2774 = vmatpush1.bf16.msra.mxu1 %v5563_v54  ;;  %v2258_v31 = vld [vmem:[%s4118_s2 + $0x10] sm:$0xff] }
 0x22f   : > { %v1040_v0 = vmul.f32 %v1034_v56, %v679_v53  ;;  %2712 = vmatprep.subr.bf16.mxu0 %v5564_v23  ;;  %2776 = vmatprep.subr.bf16.mxu1 %v4477_v27  ;;  %v1038_v56 = vmul.f32 0.5, %v3444_v12  ;;  %v5568_v53 = vld [vmem:[#allocation36_spill] sm:$0xff]  ;;  %v5570_v12 = vld [vmem:[#allocation38_spill] sm:$0xff] }
 0x231   : > { %v4694_v2 = vadd.f32 %v1041_v5, %v1040_v0  ;;  %v1039_v49 = vadd.f32 0.5, %v1038_v56  ;;  %v5569_v0 = vld [vmem:[#allocation39_spill] sm:$0xff]  ;;  %v5571_v56 = vld [vmem:[#allocation41_spill] sm:$0xff] }
 0x232   : > { %2714 = vmatpush1.bf16.msra.mxu0 %v5565_v19  ;;  %2778 = vmatpush1.bf16.msra.mxu1 %v5566_v43 }
 0x233   : > { %2716 = vmatprep.subr.bf16.mxu0 %v5567_v3  ;;  %2780 = vmatprep.subr.bf16.mxu1 %v4489_v15  ;;  %3445 = vtanh.f32 %v4694_v2 }
 0x236   : > { %2718 = vmatpush1.bf16.msra.mxu0 %v4486_v35  ;;  %2782 = vmatpush1.bf16.msra.mxu1 %v4495_v21 }
 0x237   : > { %2720 = vmatprep.subr.bf16.mxu0 %v4492_v47  ;;  %2784 = vmatprep.subr.bf16.mxu1 %v4501_v13 }
 0x23a   : > { %2722 = vmatpush1.bf16.msra.mxu0 %v4498_v55  ;;  %2786 = vmatpush1.bf16.msra.mxu1 %v4507_v29 }
 0x23b   : > { %2724 = vmatprep.subr.bf16.mxu0 %v4504_v62  ;;  %2788 = vmatprep.subr.bf16.mxu1 %v4513_v37 }
 0x23d   : > { %v3446_v1 = vpop.eup %3445 }
 0x23e   : > { %2726 = vmatpush1.bf16.msra.mxu0 %v4510_v10  ;;  %v1044_v5 = vmul.f32 %v3446_v1, %v1039_v49  ;;  %2790 = vmatpush1.bf16.msra.mxu1 %v4517_v40  ;;  %v5572_v49 = vld [vmem:[#allocation40_spill] sm:$0xff]  ;;  %v5573_v1 = vld [vmem:[#allocation43_spill] sm:$0xff] }
 0x23f   : > { %2792 = vmatprep.subr.bf16.mxu0 %v4137_v4  ;;  %2856 = vmatprep.subr.bf16.mxu1 %v4147_v17 }
 0x240   : > { %2256 = vst [vmem:[%s4134_s4 + $0x18] sm:$0xff] %v1044_v5  ;;  %1276 = vmatprep.mubr.f32.mxu0 %v1044_v5  ;;  %1347 = vmatprep.mubr.f32.mxu1 %v1044_v5  ;;  %v5574_v5 = vld [vmem:[#allocation42_spill] sm:$0xff] }
 0x241   : > { %1277 = vmatmul.mubr.f32.vlgmr.msra.gmra.mrb[6].mxu0 %v2258_v31  ;;  %1348 = vmatmul.mubr.f32.vlgmr.msra.gmra.mrb[6].mxu1 %v2258_v31  ;;  %v5575_v31 = vld [vmem:[#allocation45_spill] sm:$0xff] }
 0x242   : > { %2794 = vmatpush1.bf16.msra.mxu0 %v4139_v8  ;;  %2858 = vmatpush1.bf16.msra.mxu1 %v4149_v18 }
 0x243   : > { %2796 = vmatprep.subr.bf16.mxu0 %v4141_v9  ;;  %2860 = vmatprep.subr.bf16.mxu1 %v4155_v26 }
 0x246   : > { %2798 = vmatpush1.bf16.msra.mxu0 %v4145_v16  ;;  %2862 = vmatpush1.bf16.msra.mxu1 %v4158_v30 }
 0x247   : > { %2800 = vmatprep.subr.bf16.mxu0 %v4152_v22  ;;  %2864 = vmatprep.subr.bf16.mxu1 %v4167_v39 }
 0x24a   : > { %2802 = vmatpush1.bf16.msra.mxu0 %v4161_v32  ;;  %2866 = vmatpush1.bf16.msra.mxu1 %v4170_v44 }
 0x24b   : > { %2804 = vmatprep.subr.bf16.mxu0 %v4165_v36  ;;  %2868 = vmatprep.subr.bf16.mxu1 %v4176_v48 }
 0x24e   : > { %2806 = vmatpush1.bf16.msra.mxu0 %v4173_v46  ;;  %2870 = vmatpush1.bf16.msra.mxu1 %v4182_v57 }
 0x24f   : > { %2808 = vmatprep.subr.bf16.mxu0 %v4179_v51  ;;  %2872 = vmatprep.subr.bf16.mxu1 %v4188_v60 }
 0x252   : > { %2810 = vmatpush1.bf16.msra.mxu0 %v4185_v58  ;;  %2874 = vmatpush1.bf16.msra.mxu1 %v4194_v6 }
 0x253   : > { %2812 = vmatprep.subr.bf16.mxu0 %v4191_v63  ;;  %2876 = vmatprep.subr.bf16.mxu1 %v4200_v11 }
 0x256   : > { %2814 = vmatpush1.bf16.msra.mxu0 %v4197_v7  ;;  %2878 = vmatpush1.bf16.msra.mxu1 %v4206_v24 }
 0x257   : > { %2816 = vmatprep.subr.bf16.mxu0 %v4203_v14  ;;  %2880 = vmatprep.subr.bf16.mxu1 %v4212_v28 }
 0x25a   : > { %2818 = vmatpush1.bf16.msra.mxu0 %v4209_v25  ;;  %2882 = vmatpush1.bf16.msra.mxu1 %v4218_v41  ;;  %v5603_v25 = vld [vmem:[#allocation122_spill] sm:$0xff] }
 0x25b   : > { %2820 = vmatprep.subr.bf16.mxu0 %v4215_v33  ;;  %2884 = vmatprep.subr.bf16.mxu1 %v4224_v45  ;;  %v5576_v45 = vld [vmem:[#allocation44_spill] sm:$0xff]  ;;  %v5602_v33 = vld [vmem:[#allocation121_spill] sm:$0xff] }
 0x25e   : > { %2822 = vmatpush1.bf16.msra.mxu0 %v4221_v42  ;;  %2886 = vmatpush1.bf16.msra.mxu1 %v4230_v59  ;;  %v5577_v42 = vld [vmem:[#allocation47_spill] sm:$0xff]  ;;  %v5578_v59 = vld [vmem:[#allocation46_spill] sm:$0xff] }
 0x25f   : > { %2824 = vmatprep.subr.bf16.mxu0 %v5568_v53  ;;  %2888 = vmatprep.subr.bf16.mxu1 %v5569_v0  ;;  %v5579_v53 = vld [vmem:[#allocation49_spill] sm:$0xff]  ;;  %v5580_v0 = vld [vmem:[#allocation48_spill] sm:$0xff] }
 0x262   : > { %2826 = vmatpush1.bf16.msra.mxu0 %v5570_v12  ;;  %2890 = vmatpush1.bf16.msra.mxu1 %v5571_v56  ;;  %v5581_v12 = vld [vmem:[#allocation51_spill] sm:$0xff]  ;;  %v5582_v56 = vld [vmem:[#allocation50_spill] sm:$0xff] }
 0x263   : > { %2828 = vmatprep.subr.bf16.mxu0 %v5572_v49  ;;  %2892 = vmatprep.subr.bf16.mxu1 %v5573_v1  ;;  %v5583_v49 = vld [vmem:[#allocation53_spill] sm:$0xff]  ;;  %v5584_v1 = vld [vmem:[#allocation52_spill] sm:$0xff] }
 0x266   : > { %2830 = vmatpush1.bf16.msra.mxu0 %v5574_v5  ;;  %2894 = vmatpush1.bf16.msra.mxu1 %v5575_v31  ;;  %v5585_v5 = vld [vmem:[#allocation55_spill] sm:$0xff]  ;;  %v5586_v31 = vld [vmem:[#allocation54_spill] sm:$0xff] }
 0x267   : > { %2832 = vmatprep.subr.bf16.mxu0 %v5576_v45  ;;  %2896 = vmatprep.subr.bf16.mxu1 %v5577_v42  ;;  %v5587_v45 = vld [vmem:[#allocation57_spill] sm:$0xff]  ;;  %v5588_v42 = vld [vmem:[#allocation56_spill] sm:$0xff] }
 0x26a   : > { %2834 = vmatpush1.bf16.msra.mxu0 %v5578_v59  ;;  %2898 = vmatpush1.bf16.msra.mxu1 %v5579_v53  ;;  %v5589_v59 = vld [vmem:[#allocation59_spill] sm:$0xff]  ;;  %v5590_v53 = vld [vmem:[#allocation58_spill] sm:$0xff] }
 0x26b   : > { %2836 = vmatprep.subr.bf16.mxu0 %v5580_v0  ;;  %2900 = vmatprep.subr.bf16.mxu1 %v5581_v12  ;;  %v5591_v0 = vld [vmem:[#allocation61_spill] sm:$0xff]  ;;  %v5592_v12 = vld [vmem:[#allocation60_spill] sm:$0xff] }
 0x26e   : > { %2838 = vmatpush1.bf16.msra.mxu0 %v5582_v56  ;;  %2902 = vmatpush1.bf16.msra.mxu1 %v5583_v49  ;;  %v5593_v56 = vld [vmem:[#allocation63_spill] sm:$0xff]  ;;  %v5594_v49 = vld [vmem:[#allocation62_spill] sm:$0xff] }
 0x26f   : > { %2840 = vmatprep.subr.bf16.mxu0 %v5584_v1  ;;  %2904 = vmatprep.subr.bf16.mxu1 %v5585_v5  ;;  %v5595_v1 = vld [vmem:[#allocation65_spill] sm:$0xff]  ;;  %v5596_v5 = vld [vmem:[#allocation64_spill] sm:$0xff] }
 0x272   : > { %2842 = vmatpush1.bf16.msra.mxu0 %v5586_v31  ;;  %2906 = vmatpush1.bf16.msra.mxu1 %v5587_v45  ;;  %v5597_v31 = vld [vmem:[#allocation67_spill] sm:$0xff]  ;;  %v5598_v45 = vld [vmem:[#allocation66_spill] sm:$0xff] }
 0x273   : > { %2844 = vmatprep.subr.bf16.mxu0 %v5588_v42  ;;  %2908 = vmatprep.subr.bf16.mxu1 %v5589_v59  ;;  %v5599_v42 = vld [vmem:[#allocation69_spill] sm:$0xff]  ;;  %v5600_v59 = vld [vmem:[#allocation68_spill] sm:$0xff] }
 0x276   : > { %2846 = vmatpush1.bf16.msra.mxu0 %v5590_v53  ;;  %2910 = vmatpush1.bf16.msra.mxu1 %v5591_v0  ;;  %v5601_v53 = vld [vmem:[#allocation71_spill] sm:$0xff] }
 0x277   : > { %2848 = vmatprep.subr.bf16.mxu0 %v5592_v12  ;;  %2912 = vmatprep.subr.bf16.mxu1 %v5593_v56 }
 0x27a   : > { %2850 = vmatpush1.bf16.msra.mxu0 %v5594_v49  ;;  %2914 = vmatpush1.bf16.msra.mxu1 %v5595_v1 }
 0x27b   : > { %2852 = vmatprep.subr.bf16.mxu0 %v5596_v5  ;;  %2916 = vmatprep.subr.bf16.mxu1 %v5597_v31  ;;  %v5604_v5 = vld [vmem:[#allocation123_spill] sm:$0xff] }
 0x27e   : > { %2854 = vmatpush1.bf16.msra.mxu0 %v5598_v45  ;;  %2918 = vmatpush1.bf16.msra.mxu1 %v5599_v42 }
 0x27f   : > { %2920 = vmatprep.subr.bf16.mxu0 %v5600_v59  ;;  %2984 = vmatprep.subr.bf16.mxu1 %v5601_v53 }
 0x2d4   : > { %v1116_v0 = vpop.f32.mrb[4].mxu0  ;;  %v1187_v12 = vpop.f32.mrb[4].mxu1 }
 0x2d5   : > { %v1117_v56 = vadd.f32 %v1116_v0, %v5602_v33  ;;  %v1118_v41 = vpop.f32.mrb[5].mxu0  ;;  %v1189_v49 = vpop.f32.mrb[5].mxu1  ;;  %v1188_v14 = vadd.f32 %v1187_v12, %v5604_v5 }
 0x2d6   : > { %v1119_v1 = vadd.f32 %v1118_v41, %v5603_v25  ;;  %v1190_v42 = vadd.f32 %v1189_v49, %v4615_v52  ;;  %v5605_v25 = vld [vmem:[#allocation125_spill] sm:$0xff] }
 0x2d7   : > { %v1192_v28 = vmul.f32 0.5, %v1117_v56  ;;  %v2261_v52 = vld [vmem:[%s4108_s15 + $0x10] sm:$0xff] }
 0x2d8   : > { %v1196_v31 = vmul.f32 0.5, %v1119_v1  ;;  %v1201_v59 = vmul.f32 0.5, %v1190_v42 }
 0x2d9   : > { %3447 = vtanh.f32 %v1192_v28 }
 0x2da   : > { %3449 = vtanh.f32 %v1196_v31 }
 0x2db   : > { %3451 = vtanh.f32 %v1188_v14 }
 0x2dc   : > { %3453 = vtanh.f32 %v1201_v59  ;;  %v5611_v59 = vld [vmem:[#allocation77_spill] sm:$0xff] }
 0x2e3   : > { %v3448_v45 = vpop.eup %3447 }
 0x2e4   : > { %v3450_v53 = vpop.eup %3449  ;;  %v1194_v24 = vmul.f32 0.5, %v3448_v45  ;;  %v5610_v45 = vld [vmem:[#allocation74_spill] sm:$0xff] }
 0x2e5   : > { %v3452_v0 = vpop.eup %3451  ;;  %v1198_v33 = vmul.f32 0.5, %v3450_v53  ;;  %v5612_v53 = vld [vmem:[#allocation76_spill] sm:$0xff] }
 0x2e6   : > { %v1195_v7 = vadd.f32 0.5, %v1194_v24  ;;  %v3454_v14 = vpop.eup %3453  ;;  %v5606_v24 = vld [vmem:[#allocation70_spill] sm:$0xff] }
 0x2e7   : > { %v1199_v41 = vadd.f32 0.5, %v1198_v33  ;;  %v1203_v28 = vmul.f32 0.5, %v3454_v14  ;;  %v5609_v33 = vld [vmem:[#allocation75_spill] sm:$0xff]  ;;  %v5618_v14 = vld [vmem:[#allocation82_spill] sm:$0xff] }
 0x2e8   : > { %v1206_v56 = vmul.f32 %v3452_v0, %v1195_v7  ;;  %v5607_v7 = vld [vmem:[#allocation73_spill] sm:$0xff]  ;;  %v5613_v0 = vld [vmem:[#allocation79_spill] sm:$0xff] }
 0x2e9   : > { %v1205_v12 = vmul.f32 %v1199_v41, %v5605_v25  ;;  %v1204_v42 = vadd.f32 0.5, %v1203_v28  ;;  %v5608_v25 = vld [vmem:[#allocation72_spill] sm:$0xff]  ;;  %v5614_v41 = vld [vmem:[#allocation78_spill] sm:$0xff]  ;;  %v5619_v28 = vld [vmem:[#allocation85_spill] sm:$0xff] }
 0x2eb   : > { %v4784_v1 = vadd.f32 %v1206_v56, %v1205_v12  ;;  %v5615_v56 = vld [vmem:[#allocation81_spill] sm:$0xff]  ;;  %v5617_v12 = vld [vmem:[#allocation83_spill] sm:$0xff] }
 0x2ed   : > { %3455 = vtanh.f32 %v4784_v1 }
 0x2f7   : > { %v3456_v49 = vpop.eup %3455 }
 0x2f8   : > { %v1209_v31 = vmul.f32 %v3456_v49, %v1204_v42  ;;  %v5620_v42 = vld [vmem:[#allocation84_spill] sm:$0xff]  ;;  %v5621_v49 = vld [vmem:[#allocation87_spill] sm:$0xff] }
 0x2fa   : > { %2259 = vst [vmem:[%s4132_s12 + $0x8] sm:$0xff] %v1209_v31  ;;  %1442 = vmatprep.mubr.f32.mxu0 %v1209_v31  ;;  %1513 = vmatprep.mubr.f32.mxu1 %v1209_v31  ;;  %v5622_v31 = vld [vmem:[#allocation86_spill] sm:$0xff] }
 0x2fb   : > { %1443 = vmatmul.mubr.f32.vlgmr.msra.gmra.mrb[8].mxu0 %v2261_v52  ;;  %1514 = vmatmul.mubr.f32.vlgmr.msra.gmra.mrb[8].mxu1 %v2261_v52  ;;  %v5616_v52 = vld [vmem:[#allocation80_spill] sm:$0xff] }
 0x2fc   : > { %2922 = vmatpush1.bf16.msra.mxu0 %v5606_v24  ;;  %2986 = vmatpush1.bf16.msra.mxu1 %v5607_v7 }
 0x2fd   : > { %2924 = vmatprep.subr.bf16.mxu0 %v5608_v25  ;;  %2988 = vmatprep.subr.bf16.mxu1 %v5609_v33  ;;  %v5635_v25 = vld [vmem:[#allocation98_spill] sm:$0xff] }
 0x300   : > { %2926 = vmatpush1.bf16.msra.mxu0 %v5610_v45  ;;  %2990 = vmatpush1.bf16.msra.mxu1 %v5611_v59  ;;  %v5633_v45 = vld [vmem:[#allocation99_spill] sm:$0xff] }
 0x301   : > { %2928 = vmatprep.subr.bf16.mxu0 %v5612_v53  ;;  %2992 = vmatprep.subr.bf16.mxu1 %v5613_v0  ;;  %v5623_v53 = vld [vmem:[#allocation89_spill] sm:$0xff]  ;;  %v5624_v0 = vld [vmem:[#allocation88_spill] sm:$0xff] }
 0x304   : > { %2930 = vmatpush1.bf16.msra.mxu0 %v5614_v41  ;;  %2994 = vmatpush1.bf16.msra.mxu1 %v5615_v56  ;;  %v5625_v41 = vld [vmem:[#allocation91_spill] sm:$0xff]  ;;  %v5626_v56 = vld [vmem:[#allocation90_spill] sm:$0xff] }
 0x305   : > { %2932 = vmatprep.subr.bf16.mxu0 %v5616_v52  ;;  %2996 = vmatprep.subr.bf16.mxu1 %v5617_v12  ;;  %v5627_v52 = vld [vmem:[#allocation93_spill] sm:$0xff]  ;;  %v5628_v12 = vld [vmem:[#allocation92_spill] sm:$0xff] }
 0x308   : > { %2934 = vmatpush1.bf16.msra.mxu0 %v5618_v14  ;;  %2998 = vmatpush1.bf16.msra.mxu1 %v5619_v28  ;;  %v5629_v14 = vld [vmem:[#allocation95_spill] sm:$0xff] }
 0x309   : > { %2936 = vmatprep.subr.bf16.mxu0 %v5620_v42  ;;  %3000 = vmatprep.subr.bf16.mxu1 %v5621_v49  ;;  %v5630_v42 = vld [vmem:[#allocation94_spill] sm:$0xff] }
 0x30c   : > { %2938 = vmatpush1.bf16.msra.mxu0 %v5622_v31  ;;  %3002 = vmatpush1.bf16.msra.mxu1 %v5623_v53  ;;  %v5631_v31 = vld [vmem:[#allocation126_spill] sm:$0xff] }
 0x30d   : > { %2940 = vmatprep.subr.bf16.mxu0 %v5624_v0  ;;  %3004 = vmatprep.subr.bf16.mxu1 %v5625_v41  ;;  %v5632_v0 = vld [vmem:[#allocation96_spill] sm:$0xff] }
 0x310   : > { %2942 = vmatpush1.bf16.msra.mxu0 %v5626_v56  ;;  %3006 = vmatpush1.bf16.msra.mxu1 %v5627_v52 }
 0x311   : > { %2944 = vmatprep.subr.bf16.mxu0 %v5628_v12  ;;  %3008 = vmatprep.subr.bf16.mxu1 %v5629_v14  ;;  %v5634_v12 = vld [vmem:[#allocation128_spill] sm:$0xff] }
 0x314   : > { %v1278_v28 = vpop.f32.mrb[6].mxu0  ;;  %2946 = vmatpush1.bf16.msra.mxu0 %v5630_v42  ;;  %v1349_v49 = vpop.f32.mrb[6].mxu1  ;;  %3010 = vmatpush1.bf16.msra.mxu1 %v5541_v61  ;;  %v5636_v42 = vld [vmem:[#allocation101_spill] sm:$0xff]  ;;  %v5637_v61 = vld [vmem:[#allocation100_spill] sm:$0xff] }
 0x315   : > { %v1279_v53 = vadd.f32 %v1278_v28, %v5631_v31  ;;  %v1280_v59 = vpop.f32.mrb[7].mxu0  ;;  %2948 = vmatprep.subr.bf16.mxu0 %v5632_v0  ;;  %v1351_v41 = vpop.f32.mrb[7].mxu1  ;;  %3012 = vmatprep.subr.bf16.mxu1 %v5633_v45  ;;  %v1350_v33 = vadd.f32 %v1349_v49, %v5634_v12  ;;  %v5638_v28 = vld [vmem:[#allocation103_spill] sm:$0xff]  ;;  %v5639_v0 = vld [vmem:[#allocation102_spill] sm:$0xff]  ;;  %v5640_v45 = vld [vmem:[#allocation105_spill] sm:$0xff] }
 0x316   : > { %v1281_v52 = vadd.f32 %v1280_v59, %v4656_v20  ;;  %v5641_v59 = vld [vmem:[#allocation129_spill] sm:$0xff]  ;;  %v5642_v20 = vld [vmem:[#allocation104_spill] sm:$0xff]  ;;  %v5644_v49 = vld [vmem:[#allocation106_spill] sm:$0xff] }
 0x317   : > { %v1354_v56 = vmul.f32 0.5, %v1279_v53  ;;  %v1352_v53 = vadd.f32 %v1351_v41, %v5641_v59 }
 0x318   : > { %v1358_v14 = vmul.f32 0.5, %v1281_v52  ;;  %2950 = vmatpush1.bf16.msra.mxu0 %v5635_v25  ;;  %3014 = vmatpush1.bf16.msra.mxu1 %v5636_v42  ;;  %v5643_v52 = vld [vmem:[#allocation107_spill] sm:$0xff]  ;;  %v5645_v42 = vld [vmem:[#allocation109_spill] sm:$0xff] }
 0x319   : > { %3457 = vtanh.f32 %v1354_v56  ;;  %2952 = vmatprep.subr.bf16.mxu0 %v5637_v61  ;;  %3016 = vmatprep.subr.bf16.mxu1 %v5638_v28  ;;  %v1363_v56 = vmul.f32 0.5, %v1352_v53  ;;  %v5646_v61 = vld [vmem:[#allocation108_spill] sm:$0xff]  ;;  %v5647_v28 = vld [vmem:[#allocation111_spill] sm:$0xff] }
 0x31a   : > { %3459 = vtanh.f32 %v1358_v14 }
 0x31b   : > { %3461 = vtanh.f32 %v1350_v33 }
 0x31c   : > { %2954 = vmatpush1.bf16.msra.mxu0 %v5639_v0  ;;  %3018 = vmatpush1.bf16.msra.mxu1 %v5640_v45  ;;  %v5648_v45 = vld [vmem:[#allocation113_spill] sm:$0xff]  ;;  %3463 = vtanh.f32 %v1363_v56  ;;  %v2262_v56 = vld [vmem:[%s4118_s2 + $0x8] sm:$0xff] }
 0x31d   : > { %2956 = vmatprep.subr.bf16.mxu0 %v5642_v20  ;;  %3020 = vmatprep.subr.bf16.mxu1 %v5643_v52 }
 0x320   : > { %2958 = vmatpush1.bf16.msra.mxu0 %v5644_v49  ;;  %3022 = vmatpush1.bf16.msra.mxu1 %v5645_v42  ;;  %v5649_v49 = vld [vmem:[#allocation115_spill] sm:$0xff] }
 0x321   : > { %2960 = vmatprep.subr.bf16.mxu0 %v5646_v61  ;;  %3024 = vmatprep.subr.bf16.mxu1 %v5647_v28 }
 0x323   : > { %v3458_v33 = vpop.eup %3457 }
 0x324   : > { %v3460_v14 = vpop.eup %3459  ;;  %v1356_v0 = vmul.f32 0.5, %v3458_v33  ;;  %2962 = vmatpush1.bf16.msra.mxu0 %v5558_v38  ;;  %3026 = vmatpush1.bf16.msra.mxu1 %v5648_v45 }
 0x325   : > { %v3462_v41 = vpop.eup %3461  ;;  %v1360_v20 = vmul.f32 0.5, %v3460_v14  ;;  %2964 = vmatprep.subr.bf16.mxu0 %v5560_v34  ;;  %3028 = vmatprep.subr.bf16.mxu1 %v5649_v49  ;;  %v5672_v14 = vld [vmem:[#allocation48_spill] sm:$0xff] }
 0x326   : > { %v1357_v42 = vadd.f32 0.5, %v1356_v0 }
 0x327   : > { %v1361_v53 = vadd.f32 0.5, %v1360_v20  ;;  %v3464_v20 = vpop.eup %3463 }
 0x328   : > { %v1368_v52 = vmul.f32 %v3462_v41, %v1357_v42  ;;  %2966 = vmatpush1.bf16.msra.mxu0 %v5562_v50  ;;  %3030 = vmatpush1.bf16.msra.mxu1 %v5563_v54  ;;  %v5673_v41 = vld [vmem:[#allocation51_spill] sm:$0xff] }
 0x329   : > { %v1367_v33 = vmul.f32 %v1361_v53, %v4694_v2  ;;  %2968 = vmatprep.subr.bf16.mxu0 %v5564_v23  ;;  %3032 = vmatprep.subr.bf16.mxu1 %v4477_v27  ;;  %v1365_v2 = vmul.f32 0.5, %v3464_v20  ;;  %v5674_v53 = vld [vmem:[#allocation50_spill] sm:$0xff]  ;;  %v5676_v20 = vld [vmem:[#allocation52_spill] sm:$0xff] }
 0x32b   : > { %v4842_v45 = vadd.f32 %v1368_v52, %v1367_v33  ;;  %v1366_v0 = vadd.f32 0.5, %v1365_v2  ;;  %v5675_v33 = vld [vmem:[#allocation53_spill] sm:$0xff]  ;;  %v5677_v2 = vld [vmem:[#allocation55_spill] sm:$0xff] }
 0x32c   : > { %2970 = vmatpush1.bf16.msra.mxu0 %v5565_v19  ;;  %3034 = vmatpush1.bf16.msra.mxu1 %v5566_v43 }
 0x32d   : > { %2972 = vmatprep.subr.bf16.mxu0 %v5567_v3  ;;  %3036 = vmatprep.subr.bf16.mxu1 %v4489_v15  ;;  %3465 = vtanh.f32 %v4842_v45 }
 0x330   : > { %2974 = vmatpush1.bf16.msra.mxu0 %v4486_v35  ;;  %3038 = vmatpush1.bf16.msra.mxu1 %v4495_v21 }
 0x331   : > { %2976 = vmatprep.subr.bf16.mxu0 %v4492_v47  ;;  %3040 = vmatprep.subr.bf16.mxu1 %v4501_v13 }
 0x334   : > { %2978 = vmatpush1.bf16.msra.mxu0 %v4498_v55  ;;  %3042 = vmatpush1.bf16.msra.mxu1 %v4507_v29 }
 0x335   : > { %2980 = vmatprep.subr.bf16.mxu0 %v4504_v62  ;;  %3044 = vmatprep.subr.bf16.mxu1 %v4513_v37 }
 0x337   : > { %v3466_v42 = vpop.eup %3465 }
 0x338   : > { %2982 = vmatpush1.bf16.msra.mxu0 %v4510_v10  ;;  %v1371_v52 = vmul.f32 %v3466_v42, %v1366_v0  ;;  %3046 = vmatpush1.bf16.msra.mxu1 %v4517_v40  ;;  %v5678_v0 = vld [vmem:[#allocation54_spill] sm:$0xff]  ;;  %v5679_v42 = vld [vmem:[#allocation57_spill] sm:$0xff] }
 0x339   : > { %3048 = vmatprep.subr.bf16.mxu0 %v4137_v4  ;;  %3112 = vmatprep.subr.bf16.mxu1 %v4147_v17  ;;  %v5650_v4 = vld [vmem:[#allocation27_spill] sm:$0xff]  ;;  %v5654_v17 = vld [vmem:[#allocation30_spill] sm:$0xff] }
 0x33a   : > { %2260 = vst [vmem:[%s4134_s4 + $0x10] sm:$0xff] %v1371_v52  ;;  %1604 = vmatprep.mubr.f32.mxu0 %v1371_v52  ;;  %1675 = vmatprep.mubr.f32.mxu1 %v1371_v52  ;;  %v5680_v52 = vld [vmem:[#allocation56_spill] sm:$0xff] }
 0x33b   : > { %1605 = vmatmul.mubr.f32.vlgmr.msra.gmra.mrb[10].mxu0 %v2262_v56  ;;  %1676 = vmatmul.mubr.f32.vlgmr.msra.gmra.mrb[10].mxu1 %v2262_v56  ;;  %v5681_v56 = vld [vmem:[#allocation59_spill] sm:$0xff] }
 0x33c   : > { %3050 = vmatpush1.bf16.msra.mxu0 %v4139_v8  ;;  %3114 = vmatpush1.bf16.msra.mxu1 %v4149_v18  ;;  %v5651_v8 = vld [vmem:[#allocation29_spill] sm:$0xff] }
 0x33d   : > { %3052 = vmatprep.subr.bf16.mxu0 %v4141_v9  ;;  %3116 = vmatprep.subr.bf16.mxu1 %v4155_v26  ;;  %v5652_v9 = vld [vmem:[#allocation28_spill] sm:$0xff]  ;;  %v5655_v18 = vld [vmem:[#allocation33_spill] sm:$0xff]  ;;  %v5657_v26 = vld [vmem:[#allocation35_spill] sm:$0xff] }
 0x340   : > { %3054 = vmatpush1.bf16.msra.mxu0 %v4145_v16  ;;  %3118 = vmatpush1.bf16.msra.mxu1 %v4158_v30  ;;  %v5653_v16 = vld [vmem:[#allocation31_spill] sm:$0xff]  ;;  %v5658_v30 = vld [vmem:[#allocation34_spill] sm:$0xff] }
 0x341   : > { %3056 = vmatprep.subr.bf16.mxu0 %v4152_v22  ;;  %3120 = vmatprep.subr.bf16.mxu1 %v4167_v39  ;;  %v5656_v22 = vld [vmem:[#allocation32_spill] sm:$0xff]  ;;  %v5661_v39 = vld [vmem:[#allocation39_spill] sm:$0xff] }
 0x344   : > { %3058 = vmatpush1.bf16.msra.mxu0 %v4161_v32  ;;  %3122 = vmatpush1.bf16.msra.mxu1 %v4170_v44  ;;  %v5659_v32 = vld [vmem:[#allocation37_spill] sm:$0xff]  ;;  %v5662_v44 = vld [vmem:[#allocation38_spill] sm:$0xff] }
 0x345   : > { %3060 = vmatprep.subr.bf16.mxu0 %v4165_v36  ;;  %3124 = vmatprep.subr.bf16.mxu1 %v4176_v48  ;;  %v5660_v36 = vld [vmem:[#allocation36_spill] sm:$0xff] }
 0x346   : > { %v5664_v48 = vld [vmem:[#allocation40_spill] sm:$0xff] }
 0x348   : > { %3062 = vmatpush1.bf16.msra.mxu0 %v4173_v46  ;;  %3126 = vmatpush1.bf16.msra.mxu1 %v4182_v57  ;;  %v5663_v46 = vld [vmem:[#allocation41_spill] sm:$0xff]  ;;  %v5666_v57 = vld [vmem:[#allocation42_spill] sm:$0xff] }
 0x349   : > { %3064 = vmatprep.subr.bf16.mxu0 %v4179_v51  ;;  %3128 = vmatprep.subr.bf16.mxu1 %v4188_v60  ;;  %v5665_v51 = vld [vmem:[#allocation43_spill] sm:$0xff]  ;;  %v5668_v60 = vld [vmem:[#allocation44_spill] sm:$0xff] }
 0x34c   : > { %3066 = vmatpush1.bf16.msra.mxu0 %v4185_v58  ;;  %3130 = vmatpush1.bf16.msra.mxu1 %v4194_v6  ;;  %v5667_v58 = vld [vmem:[#allocation45_spill] sm:$0xff]  ;;  %v5670_v6 = vld [vmem:[#allocation46_spill] sm:$0xff] }
 0x34d   : > { %3068 = vmatprep.subr.bf16.mxu0 %v4191_v63  ;;  %3132 = vmatprep.subr.bf16.mxu1 %v4200_v11  ;;  %v5669_v63 = vld [vmem:[#allocation47_spill] sm:$0xff]  ;;  %v5671_v11 = vld [vmem:[#allocation49_spill] sm:$0xff] }
 0x350   : > { %3070 = vmatpush1.bf16.msra.mxu0 %v5650_v4  ;;  %3134 = vmatpush1.bf16.msra.mxu1 %v5651_v8  ;;  %v5682_v4 = vld [vmem:[#allocation58_spill] sm:$0xff]  ;;  %v5683_v8 = vld [vmem:[#allocation61_spill] sm:$0xff] }
 0x351   : > { %3072 = vmatprep.subr.bf16.mxu0 %v5652_v9  ;;  %3136 = vmatprep.subr.bf16.mxu1 %v5653_v16  ;;  %v5684_v9 = vld [vmem:[#allocation60_spill] sm:$0xff]  ;;  %v5685_v16 = vld [vmem:[#allocation63_spill] sm:$0xff] }
 0x354   : > { %3074 = vmatpush1.bf16.msra.mxu0 %v5654_v17  ;;  %3138 = vmatpush1.bf16.msra.mxu1 %v5655_v18  ;;  %v5686_v17 = vld [vmem:[#allocation62_spill] sm:$0xff]  ;;  %v5687_v18 = vld [vmem:[#allocation65_spill] sm:$0xff] }
 0x355   : > { %3076 = vmatprep.subr.bf16.mxu0 %v5656_v22  ;;  %3140 = vmatprep.subr.bf16.mxu1 %v5657_v26  ;;  %v5688_v22 = vld [vmem:[#allocation64_spill] sm:$0xff]  ;;  %v5689_v26 = vld [vmem:[#allocation67_spill] sm:$0xff] }
 0x358   : > { %3078 = vmatpush1.bf16.msra.mxu0 %v5658_v30  ;;  %3142 = vmatpush1.bf16.msra.mxu1 %v5659_v32  ;;  %v5690_v30 = vld [vmem:[#allocation66_spill] sm:$0xff]  ;;  %v5691_v32 = vld [vmem:[#allocation69_spill] sm:$0xff] }
 0x359   : > { %3080 = vmatprep.subr.bf16.mxu0 %v5660_v36  ;;  %3144 = vmatprep.subr.bf16.mxu1 %v5661_v39  ;;  %v5692_v36 = vld [vmem:[#allocation68_spill] sm:$0xff]  ;;  %v5693_v39 = vld [vmem:[#allocation71_spill] sm:$0xff] }
 0x35c   : > { %3082 = vmatpush1.bf16.msra.mxu0 %v5662_v44  ;;  %3146 = vmatpush1.bf16.msra.mxu1 %v5663_v46 }
 0x35d   : > { %3084 = vmatprep.subr.bf16.mxu0 %v5664_v48  ;;  %3148 = vmatprep.subr.bf16.mxu1 %v5665_v51  ;;  %v5694_v48 = vld [vmem:[#allocation121_spill] sm:$0xff] }
 0x360   : > { %3086 = vmatpush1.bf16.msra.mxu0 %v5666_v57  ;;  %3150 = vmatpush1.bf16.msra.mxu1 %v5667_v58 }
 0x361   : > { %3088 = vmatprep.subr.bf16.mxu0 %v5668_v60  ;;  %3152 = vmatprep.subr.bf16.mxu1 %v5669_v63  ;;  %v5695_v60 = vld [vmem:[#allocation122_spill] sm:$0xff] }
 0x364   : > { %3090 = vmatpush1.bf16.msra.mxu0 %v5670_v6  ;;  %3154 = vmatpush1.bf16.msra.mxu1 %v5671_v11 }
 0x365   : > { %3092 = vmatprep.subr.bf16.mxu0 %v5672_v14  ;;  %3156 = vmatprep.subr.bf16.mxu1 %v5673_v41  ;;  %v5696_v41 = vld [vmem:[#allocation124_spill] sm:$0xff] }
 0x368   : > { %3094 = vmatpush1.bf16.msra.mxu0 %v5674_v53  ;;  %3158 = vmatpush1.bf16.msra.mxu1 %v5675_v33 }
 0x369   : > { %3096 = vmatprep.subr.bf16.mxu0 %v5676_v20  ;;  %3160 = vmatprep.subr.bf16.mxu1 %v5677_v2 }
 0x36c   : > { %3098 = vmatpush1.bf16.msra.mxu0 %v5678_v0  ;;  %3162 = vmatpush1.bf16.msra.mxu1 %v5679_v42 }
 0x36d   : > { %3100 = vmatprep.subr.bf16.mxu0 %v5680_v52  ;;  %3164 = vmatprep.subr.bf16.mxu1 %v5681_v56 }
 0x370   : > { %3102 = vmatpush1.bf16.msra.mxu0 %v5682_v4  ;;  %3166 = vmatpush1.bf16.msra.mxu1 %v5683_v8 }
 0x371   : > { %3104 = vmatprep.subr.bf16.mxu0 %v5684_v9  ;;  %3168 = vmatprep.subr.bf16.mxu1 %v5685_v16 }
 0x374   : > { %3106 = vmatpush1.bf16.msra.mxu0 %v5686_v17  ;;  %3170 = vmatpush1.bf16.msra.mxu1 %v5687_v18 }
 0x375   : > { %3108 = vmatprep.subr.bf16.mxu0 %v5688_v22  ;;  %3172 = vmatprep.subr.bf16.mxu1 %v5689_v26 }
 0x378   : > { %3110 = vmatpush1.bf16.msra.mxu0 %v5690_v30  ;;  %3174 = vmatpush1.bf16.msra.mxu1 %v5691_v32  ;;  %v2265_v32 = vld [vmem:[%s4108_s15 + $0x18] sm:$0xff] }
 0x379   : > { %3176 = vmatprep.subr.bf16.mxu0 %v5692_v36  ;;  %3240 = vmatprep.subr.bf16.mxu1 %v5693_v39  ;;  %v5698_v36 = vld [vmem:[#allocation75_spill] sm:$0xff]  ;;  %v5699_v39 = vld [vmem:[#allocation74_spill] sm:$0xff] }
 0x3ce   : > { %v1444_v44 = vpop.f32.mrb[8].mxu0  ;;  %v1515_v46 = vpop.f32.mrb[8].mxu1 }
 0x3cf   : > { %v1445_v51 = vadd.f32 %v1444_v44, %v5694_v48  ;;  %v1446_v57 = vpop.f32.mrb[9].mxu0  ;;  %v1517_v58 = vpop.f32.mrb[9].mxu1  ;;  %v1516_v11 = vadd.f32 %v1515_v46, %v5604_v5  ;;  %v5700_v44 = vld [vmem:[#allocation77_spill] sm:$0xff]  ;;  %v5701_v46 = vld [vmem:[#allocation76_spill] sm:$0xff] }
 0x3d0   : > { %v1447_v63 = vadd.f32 %v1446_v57, %v5695_v60  ;;  %v1518_v53 = vadd.f32 %v1517_v58, %v5696_v41  ;;  %v5703_v57 = vld [vmem:[#allocation78_spill] sm:$0xff]  ;;  %v5704_v58 = vld [vmem:[#allocation81_spill] sm:$0xff] }
 0x3d1   : > { %v1520_v6 = vmul.f32 0.5, %v1445_v51  ;;  %v5702_v51 = vld [vmem:[#allocation79_spill] sm:$0xff] }
 0x3d2   : > { %v1524_v14 = vmul.f32 0.5, %v1447_v63  ;;  %v1529_v33 = vmul.f32 0.5, %v1518_v53  ;;  %v5705_v63 = vld [vmem:[#allocation80_spill] sm:$0xff]  ;;  %v5711_v53 = vld [vmem:[#allocation86_spill] sm:$0xff] }
 0x3d3   : > { %3467 = vtanh.f32 %v1520_v6  ;;  %v5708_v6 = vld [vmem:[#allocation85_spill] sm:$0xff] }
 0x3d4   : > { %3469 = vtanh.f32 %v1524_v14  ;;  %v5710_v14 = vld [vmem:[#allocation87_spill] sm:$0xff] }
 0x3d5   : > { %3471 = vtanh.f32 %v1516_v11  ;;  %v5709_v11 = vld [vmem:[#allocation84_spill] sm:$0xff] }
 0x3d6   : > { %3473 = vtanh.f32 %v1529_v33  ;;  %v5712_v33 = vld [vmem:[#allocation89_spill] sm:$0xff] }
 0x3dd   : > { %v3468_v20 = vpop.eup %3467 }
 0x3de   : > { %v3470_v2 = vpop.eup %3469  ;;  %v1522_v0 = vmul.f32 0.5, %v3468_v20  ;;  %v5713_v20 = vld [vmem:[#allocation88_spill] sm:$0xff] }
 0x3df   : > { %v3472_v42 = vpop.eup %3471  ;;  %v1526_v52 = vmul.f32 0.5, %v3470_v2  ;;  %v5714_v2 = vld [vmem:[#allocation91_spill] sm:$0xff] }
 0x3e0   : > { %v1523_v56 = vadd.f32 0.5, %v1522_v0  ;;  %v3474_v17 = vpop.eup %3473  ;;  %v5715_v0 = vld [vmem:[#allocation90_spill] sm:$0xff] }
 0x3e1   : > { %v1527_v4 = vadd.f32 0.5, %v1526_v52  ;;  %v1531_v18 = vmul.f32 0.5, %v3474_v17  ;;  %v5717_v52 = vld [vmem:[#allocation92_spill] sm:$0xff]  ;;  %v5720_v17 = vld [vmem:[#allocation97_spill] sm:$0xff] }
 0x3e2   : > { %v1534_v8 = vmul.f32 %v3472_v42, %v1523_v56  ;;  %v5716_v42 = vld [vmem:[#allocation93_spill] sm:$0xff]  ;;  %v5718_v56 = vld [vmem:[#allocation95_spill] sm:$0xff] }
 0x3e3   : > { %v1533_v9 = vmul.f32 %v1527_v4, %v4784_v1  ;;  %v1532_v22 = vadd.f32 0.5, %v1531_v18  ;;  %v5697_v1 = vld [vmem:[#allocation72_spill] sm:$0xff] }
 0x3e5   : > { %v4932_v16 = vadd.f32 %v1534_v8, %v1533_v9  ;;  %v5719_v8 = vld [vmem:[#allocation94_spill] sm:$0xff] }
 0x3e7   : > { %3475 = vtanh.f32 %v4932_v16 }
 0x3f1   : > { %v3476_v26 = vpop.eup %3475 }
 0x3f2   : > { %v1537_v30 = vmul.f32 %v3476_v26, %v1532_v22  ;;  %v5721_v26 = vld [vmem:[#allocation96_spill] sm:$0xff] }
 0x3f4   : > { %2263 = vst [vmem:[%s4132_s12 + $0x10] sm:$0xff] %v1537_v30  ;;  %1770 = vmatprep.mubr.f32.mxu0 %v1537_v30  ;;  %1841 = vmatprep.mubr.f32.mxu1 %v1537_v30 }
 0x3f5   : > { %1771 = vmatmul.mubr.f32.vlgmr.msra.gmra.mrb[12].mxu0 %v2265_v32  ;;  %1842 = vmatmul.mubr.f32.vlgmr.msra.gmra.mrb[12].mxu1 %v2265_v32  ;;  %v5722_v32 = vld [vmem:[#allocation99_spill] sm:$0xff] }
 0x3f6   : > { %3178 = vmatpush1.bf16.msra.mxu0 %v5606_v24  ;;  %3242 = vmatpush1.bf16.msra.mxu1 %v5607_v7  ;;  %v5706_v24 = vld [vmem:[#allocation83_spill] sm:$0xff]  ;;  %v5707_v7 = vld [vmem:[#allocation82_spill] sm:$0xff] }
 0x3f7   : > { %3180 = vmatprep.subr.bf16.mxu0 %v5697_v1  ;;  %3244 = vmatprep.subr.bf16.mxu1 %v5698_v36  ;;  %v5723_v1 = vld [vmem:[#allocation127_spill] sm:$0xff] }
 0x3fa   : > { %3182 = vmatpush1.bf16.msra.mxu0 %v5699_v39  ;;  %3246 = vmatpush1.bf16.msra.mxu1 %v5700_v44 }
 0x3fb   : > { %3184 = vmatprep.subr.bf16.mxu0 %v5701_v46  ;;  %3248 = vmatprep.subr.bf16.mxu1 %v5702_v51  ;;  %v5724_v51 = vld [vmem:[#allocation101_spill] sm:$0xff] }
 0x3fe   : > { %3186 = vmatpush1.bf16.msra.mxu0 %v5703_v57  ;;  %3250 = vmatpush1.bf16.msra.mxu1 %v5704_v58  ;;  %v5725_v57 = vld [vmem:[#allocation100_spill] sm:$0xff]  ;;  %v5726_v58 = vld [vmem:[#allocation103_spill] sm:$0xff] }
 0x3ff   : > { %3188 = vmatprep.subr.bf16.mxu0 %v5705_v63  ;;  %3252 = vmatprep.subr.bf16.mxu1 %v5706_v24  ;;  %v5727_v63 = vld [vmem:[#allocation102_spill] sm:$0xff]  ;;  %v5728_v24 = vld [vmem:[#allocation105_spill] sm:$0xff] }
 0x402   : > { %3190 = vmatpush1.bf16.msra.mxu0 %v5707_v7  ;;  %3254 = vmatpush1.bf16.msra.mxu1 %v5708_v6  ;;  %v5729_v6 = vld [vmem:[#allocation104_spill] sm:$0xff] }
 0x403   : > { %3192 = vmatprep.subr.bf16.mxu0 %v5709_v11  ;;  %3256 = vmatprep.subr.bf16.mxu1 %v5710_v14  ;;  %v5730_v11 = vld [vmem:[#allocation107_spill] sm:$0xff]  ;;  %v5732_v14 = vld [vmem:[#allocation109_spill] sm:$0xff] }
 0x406   : > { %3194 = vmatpush1.bf16.msra.mxu0 %v5711_v53  ;;  %3258 = vmatpush1.bf16.msra.mxu1 %v5712_v33 }
 0x407   : > { %3196 = vmatprep.subr.bf16.mxu0 %v5713_v20  ;;  %3260 = vmatprep.subr.bf16.mxu1 %v5714_v2 }
 0x40a   : > { %3198 = vmatpush1.bf16.msra.mxu0 %v5715_v0  ;;  %3262 = vmatpush1.bf16.msra.mxu1 %v5716_v42  ;;  %v5733_v0 = vld [vmem:[#allocation113_spill] sm:$0xff] }
 0x40b   : > { %3200 = vmatprep.subr.bf16.mxu0 %v5717_v52  ;;  %3264 = vmatprep.subr.bf16.mxu1 %v5718_v56 }
 0x40e   : > { %v1606_v4 = vpop.f32.mrb[10].mxu0  ;;  %3202 = vmatpush1.bf16.msra.mxu0 %v5719_v8  ;;  %v1677_v9 = vpop.f32.mrb[10].mxu1  ;;  %3266 = vmatpush1.bf16.msra.mxu1 %v5720_v17 }
 0x40f   : > { %v1607_v18 = vadd.f32 %v1606_v4, %v5631_v31  ;;  %v1608_v22 = vpop.f32.mrb[11].mxu0  ;;  %3204 = vmatprep.subr.bf16.mxu0 %v5721_v26  ;;  %v1679_v30 = vpop.f32.mrb[11].mxu1  ;;  %3268 = vmatprep.subr.bf16.mxu1 %v5722_v32  ;;  %v1678_v44 = vadd.f32 %v1677_v9, %v5634_v12 }
 0x410   : > { %v1609_v36 = vadd.f32 %v1608_v22, %v5723_v1  ;;  %v1680_v7 = vadd.f32 %v1679_v30, %v5641_v59 }
 0x411   : > { %v1682_v39 = vmul.f32 0.5, %v1607_v18 }
 0x412   : > { %v1686_v46 = vmul.f32 0.5, %v1609_v36  ;;  %3206 = vmatpush1.bf16.msra.mxu0 %v5635_v25  ;;  %3270 = vmatpush1.bf16.msra.mxu1 %v5724_v51  ;;  %v5731_v25 = vld [vmem:[#allocation106_spill] sm:$0xff]  ;;  %v1691_v53 = vmul.f32 0.5, %v1680_v7 }
 0x413   : > { %3477 = vtanh.f32 %v1682_v39  ;;  %3208 = vmatprep.subr.bf16.mxu0 %v5725_v57  ;;  %3272 = vmatprep.subr.bf16.mxu1 %v5726_v58 }
 0x414   : > { %3479 = vtanh.f32 %v1686_v46 }
 0x415   : > { %3481 = vtanh.f32 %v1678_v44 }
 0x416   : > { %3210 = vmatpush1.bf16.msra.mxu0 %v5727_v63  ;;  %3274 = vmatpush1.bf16.msra.mxu1 %v5728_v24  ;;  %3483 = vtanh.f32 %v1691_v53 }
 0x417   : > { %3212 = vmatprep.subr.bf16.mxu0 %v5729_v6  ;;  %3276 = vmatprep.subr.bf16.mxu1 %v5730_v11 }
 0x41a   : > { %3214 = vmatpush1.bf16.msra.mxu0 %v5731_v25  ;;  %3278 = vmatpush1.bf16.msra.mxu1 %v5732_v14 }
 0x41b   : > { %3216 = vmatprep.subr.bf16.mxu0 %v5646_v61  ;;  %3280 = vmatprep.subr.bf16.mxu1 %v5647_v28 }
 0x41d   : > { %v3478_v33 = vpop.eup %3477 }
 0x41e   : > { %v3480_v20 = vpop.eup %3479  ;;  %v1684_v2 = vmul.f32 0.5, %v3478_v33  ;;  %3218 = vmatpush1.bf16.msra.mxu0 %v5558_v38  ;;  %3282 = vmatpush1.bf16.msra.mxu1 %v5733_v0 }
 0x41f   : > { %v3482_v42 = vpop.eup %3481  ;;  %v1688_v52 = vmul.f32 0.5, %v3480_v20  ;;  %3220 = vmatprep.subr.bf16.mxu0 %v5560_v34  ;;  %3284 = vmatprep.subr.bf16.mxu1 %v5649_v49 }
 0x420   : > { %v1685_v56 = vadd.f32 0.5, %v1684_v2  ;;  %v3484_v34 = vpop.eup %3483 }
 0x421   : > { %v1689_v4 = vadd.f32 0.5, %v1688_v52 }
 0x422   : > { %v1696_v8 = vmul.f32 %v3482_v42, %v1685_v56  ;;  %3222 = vmatpush1.bf16.msra.mxu0 %v5562_v50  ;;  %3286 = vmatpush1.bf16.msra.mxu1 %v5563_v54  ;;  %v1866_v54 = vld [vmem:[%s4118_s2] sm:$0xff]  ;;  %s3623_s2 = scalar_lea.vmem %s5021_s19, 512 }
 0x423   : > { %v1695_v61 = vmul.f32 %v1689_v4, %v4842_v45  ;;  %3224 = vmatprep.subr.bf16.mxu0 %v5564_v23  ;;  %3288 = vmatprep.subr.bf16.mxu1 %v4477_v27  ;;  %v1693_v27 = vmul.f32 0.5, %v3484_v34  ;;  %p3624_p0 = scmp.ne.s32.totalorder %s5021_s19, %s3623_s2  ;;  %p3631_p13 = scmp.lt.s32.totalorder %s3629_s22, %s3623_s2 }
 0x425   : > { %v4990_v38 = vadd.f32 %v1696_v8, %v1695_v61  ;;  %p3625_p12 = pnand %p3624_p0, %p3981_p8  ;;  %p3632_p7 = por %p3631_p13, %p3630_p3 }
 0x426   : > { %3226 = vmatpush1.bf16.msra.mxu0 %v5565_v19  ;;  %3290 = vmatpush1.bf16.msra.mxu1 %v5566_v43 }
 0x427   : > { %3228 = vmatprep.subr.bf16.mxu0 %v5567_v3  ;;  %3292 = vmatprep.subr.bf16.mxu1 %v4489_v15  ;;  %3485 = vtanh.f32 %v4990_v38  ;;  %v1694_v15 = vadd.f32 0.5, %v1693_v27  ;;  %p3626_p1 = pneg %p3625_p12 }
 0x429   : > { %p3633_p6 = pnand %p3632_p7, %p3626_p1 }
 0x42a   : > { %3230 = vmatpush1.bf16.msra.mxu0 %v4486_v35  ;;  %3294 = vmatpush1.bf16.msra.mxu1 %v4495_v21 }
 0x42b   : > { %3232 = vmatprep.subr.bf16.mxu0 %v4492_v47  ;;  %3296 = vmatprep.subr.bf16.mxu1 %v4501_v13 }
 0x42e   : > { %3234 = vmatpush1.bf16.msra.mxu0 %v4498_v55  ;;  %3298 = vmatpush1.bf16.msra.mxu1 %v4507_v29 }
 0x42f   : > { %3236 = vmatprep.subr.bf16.mxu0 %v4504_v62  ;;  %3300 = vmatprep.subr.bf16.mxu1 %v4513_v37 }
 0x431   : > { %v3486_v50 = vpop.eup %3485 }
 0x432   : > { %3238 = vmatpush1.bf16.msra.mxu0 %v4510_v10  ;;  %v1699_v35 = vmul.f32 %v3486_v50, %v1694_v15  ;;  %3302 = vmatpush1.bf16.msra.mxu1 %v4517_v40 }
 0x434   : > { %2264 = vst [vmem:[%s4134_s4 + $0x8] sm:$0xff] %v1699_v35  ;;  %1931 = vmatprep.mubr.f32.mxu0 %v1699_v35  ;;  %2002 = vmatprep.mubr.f32.mxu1 %v1699_v35 }
 0x435   : > { %1932 = vmatmul.mubr.f32.vlgmr.msra.gmra.mrb[14].mxu0 %v1866_v54  ;;  %2003 = vmatmul.mubr.f32.vlgmr.msra.gmra.mrb[14].mxu1 %v1866_v54 }
 0x4c8   : > { %v1772_v47 = vpop.f32.mrb[12].mxu0  ;;  %v1843_v21 = vpop.f32.mrb[12].mxu1 }
 0x4c9   : > { %v1773_v55 = vadd.f32 %v1772_v47, %v5694_v48  ;;  %v1774_v62 = vpop.f32.mrb[13].mxu0  ;;  %v1845_v13 = vpop.f32.mrb[13].mxu1  ;;  %v1844_v10 = vadd.f32 %v1843_v21, %v5604_v5 }
 0x4ca   : > { %v1775_v29 = vadd.f32 %v1774_v62, %v5695_v60  ;;  %v1846_v40 = vadd.f32 %v1845_v13, %v5696_v41 }
 0x4cb   : > { %v1848_v37 = vmul.f32 0.5, %v1773_v55 }
 0x4cc   : > { %v1852_v23 = vmul.f32 0.5, %v1775_v29  ;;  %v1857_v3 = vmul.f32 0.5, %v1846_v40 }
 0x4cd   : > { %3487 = vtanh.f32 %v1848_v37 }
 0x4ce   : > { %3489 = vtanh.f32 %v1852_v23 }
 0x4cf   : > { %3491 = vtanh.f32 %v1844_v10 }
 0x4d0   : > { %3493 = vtanh.f32 %v1857_v3 }
 0x4d7   : > { %v3488_v19 = vpop.eup %3487 }
 0x4d8   : > { %v3490_v43 = vpop.eup %3489  ;;  %v1850_v45 = vmul.f32 0.5, %v3488_v19 }
 0x4d9   : > { %v3492_v28 = vpop.eup %3491  ;;  %v1854_v49 = vmul.f32 0.5, %v3490_v43 }
 0x4da   : > { %v1851_v48 = vadd.f32 0.5, %v1850_v45  ;;  %v3494_v41 = vpop.eup %3493 }
 0x4db   : > { %v1855_v60 = vadd.f32 0.5, %v1854_v49  ;;  %v1859_v18 = vmul.f32 0.5, %v3494_v41 }
 0x4dc   : > { %v1862_v9 = vmul.f32 %v3492_v28, %v1851_v48 }
 0x4dd   : > { %v1861_v5 = vmul.f32 %v1855_v60, %v4932_v16  ;;  %v1860_v22 = vadd.f32 0.5, %v1859_v18 }
 0x4df   : > { %v1863_v17 = vadd.f32 %v1862_v9, %v1861_v5 }
 0x4e1   : > { %3495 = vtanh.f32 %v1863_v17  ;;  %2031 = vst [vmem:[#allocation3] sm:$0xff] %v1863_v17 }
 0x4eb   : > { %v3496_v26 = vpop.eup %3495 }
 0x4ec   : > { %v1865_v16 = vmul.f32 %v3496_v26, %v1860_v22 }
 0x4ee   : > { %2266 = vst [vmem:[%s4132_s12 + $0x18] sm:$0xff] %v1865_v16  ;;  %2030 = vst [vmem:[#allocation2] sm:$0xff] %v1865_v16 }
 0x4ef   : > { %3636 = shalt.err (!%p3633_p6)
}
 0x4f0   : > { %s3637_s12 = scalar_lea.hbm %s5019_s24, 512  ;;  %s3641_s20 = scalar_lea.hbm %s5734_s16, 1536 }
 0x4f1   : > { %p3638_p9 = scmp.ne.s32.totalorder %s5019_s24, %s3637_s12  ;;  %p3642_p10 = scmp.lt.u32.totalorder %s5019_s24, %s5734_s16 }
 0x4f2   : > { %p3643_p4 = scmp.lt.u32.totalorder %s3641_s20, %s3637_s12  ;;  %p3645_p0 = scmp.lt.u32.totalorder %s3637_s12, %s5019_s24 }
 0x4f3   : > { %p3639_p2 = pnand %p3638_p9, %p3981_p8 }
 0x4f4   : > { %p3644_p11 = por %p3643_p4, %p3642_p10 }
 0x4f5   : > { %p3640_p5 = pneg %p3639_p2 }
 0x4f6   : > { %p3646_p12 = por %p3645_p0, %p3644_p11 }
 0x4f8   : > { %p3647_p1 = pnand %p3646_p12, %p3640_p5 }
 0x4fa   : > { %3650 = shalt.err (!%p3647_p1)
}
 0x4fb   : > { %s3785_s2 = smov 128   ;;  %s3786_s13 = smov 8  }
 0x4fc   : > { %3315 = dma.vmem_to_hbm [thread:$0]  (%p3981_p8), %s5021_s19, 512, %s5019_s24, %s2035_s17, %s3785_s2, %s3785_s2, %s3786_s13  }
 0x4fd   : > { %s2064_s14 = ssub.s32 2, %s3765_s30  ;;  %s2072_s19 = sshll.u32 %s4134_s4, 4  ;;  %s5063_s19 = int_to_ptr.vmem [resolvable:$true] %s2072_s19 }
 0x4fe   : > { %s2278_s7 = sshll.u32 %s2064_s14, 9  ;;  %s5735_s22 = sld [smem:[#allocation134_spill]] }
 0x4ff   : > { %s5068_s6 = scalar_lea.sflag [#allocation16], %s353_s11  ;;  %s3651_s30 = scalar_lea.vmem %s5063_s19, 512 }
 0x500   : > { %p3652_p8 = scmp.ne.s32.totalorder %s5063_s19, %s3651_s30  ;;  %p5736_p3 = scmp.ne.s32.totalorder %s5376_s0, 0 }
 0x501   : > { %s3787_s18 = smov [#allocation15]  }
 0x502   : > { %p3653_p13 = pnand %p3652_p8, %p5736_p3  ;;  %s3655_s20 = sshll.u32 %s3787_s18, 4  ;;  %s3656_s20 = int_to_ptr.vmem [resolvable:$false] %s3655_s20 }
 0x503   : > { %s3657_s15 = scalar_lea.vmem %s3656_s20, 1024  ;;  %p3658_p6 = scmp.lt.s32.totalorder %s5063_s19, %s3656_s20 }
 0x504   : > { %s5061_s12 = scalar_lea.hbm %s5735_s22, %s2278_s7  ;;  %p3654_p7 = pneg %p3653_p13 }
 0x505   : > { %p3659_p9 = scmp.lt.s32.totalorder %s3657_s15, %s3651_s30 }
 0x507   : > { %p3660_p2 = por %p3659_p9, %p3658_p6 }
 0x508   : > { %v1933_v30 = vpop.f32.mrb[14].mxu0  ;;  %v2004_v32 = vpop.f32.mrb[14].mxu1 }
 0x509   : > { %v1934_v36 = vadd.f32 %v1933_v30, %v5631_v31  ;;  %v1935_v39 = vpop.f32.mrb[15].mxu0  ;;  %v2006_v44 = vpop.f32.mrb[15].mxu1  ;;  %v2005_v57 = vadd.f32 %v2004_v32, %v5634_v12  ;;  %p3661_p5 = pnand %p3660_p2, %p3654_p7 }
 0x50a   : > { %v1936_v46 = vadd.f32 %v1935_v39, %v5723_v1  ;;  %v2007_v63 = vadd.f32 %v2006_v44, %v5641_v59 }
 0x50b   : > { %v2009_v51 = vmul.f32 0.5, %v1934_v36 }
 0x50c   : > { %v2013_v58 = vmul.f32 0.5, %v1936_v46  ;;  %v2018_v24 = vmul.f32 0.5, %v2007_v63 }
 0x50d   : > { %3497 = vtanh.f32 %v2009_v51 }
 0x50e   : > { %3499 = vtanh.f32 %v2013_v58 }
 0x50f   : > { %3501 = vtanh.f32 %v2005_v57 }
 0x510   : > { %3503 = vtanh.f32 %v2018_v24 }
 0x517   : > { %v3498_v7 = vpop.eup %3497 }
 0x518   : > { %v3500_v6 = vpop.eup %3499  ;;  %v2011_v11 = vmul.f32 0.5, %v3498_v7 }
 0x519   : > { %v3502_v31 = vpop.eup %3501  ;;  %v2015_v25 = vmul.f32 0.5, %v3500_v6 }
 0x51a   : > { %v2012_v14 = vadd.f32 0.5, %v2011_v11  ;;  %v3504_v59 = vpop.eup %3503 }
 0x51b   : > { %v2016_v1 = vadd.f32 0.5, %v2015_v25  ;;  %v2020_v20 = vmul.f32 0.5, %v3504_v59 }
 0x51c   : > { %v2023_v53 = vmul.f32 %v3502_v31, %v2012_v14 }
 0x51d   : > { %v2022_v12 = vmul.f32 %v2016_v1, %v4990_v38  ;;  %v2021_v2 = vadd.f32 0.5, %v2020_v20 }
 0x51f   : > { %v2024_v33 = vadd.f32 %v2023_v53, %v2022_v12 }
 0x521   : > { %3505 = vtanh.f32 %v2024_v33  ;;  %2033 = vst [vmem:[#allocation5] sm:$0xff] %v2024_v33 }
 0x52b   : > { %v3506_v0 = vpop.eup %3505 }
 0x52c   : > { %v2026_v42 = vmul.f32 %v3506_v0, %v2021_v2 }
 0x52e   : > { %2029 = vst [vmem:[%s4134_s4] sm:$0xff] %v2026_v42  ;;  %2032 = vst [vmem:[#allocation4] sm:$0xff] %v2026_v42 }
 0x52f   : > { %3664 = shalt.err (!%p3661_p5)
}
 0x530   : > { %s3665_s11 = scalar_lea.hbm %s5061_s12, 512  ;;  %s3669_s14 = scalar_lea.hbm %s5735_s22, 1536 }
 0x531   : > { %p3666_p10 = scmp.ne.s32.totalorder %s5061_s12, %s3665_s11  ;;  %p3670_p0 = scmp.lt.u32.totalorder %s5061_s12, %s5735_s22 }
 0x532   : > { %p3671_p12 = scmp.lt.u32.totalorder %s3669_s14, %s3665_s11  ;;  %p3673_p8 = scmp.lt.u32.totalorder %s3665_s11, %s5061_s12 }
 0x533   : > { %p3667_p4 = pnand %p3666_p10, %p5736_p3 }
 0x534   : > { %p3672_p1 = por %p3671_p12, %p3670_p0 }
 0x535   : > { %p3668_p11 = pneg %p3667_p4 }
 0x536   : > { %p3674_p13 = por %p3673_p8, %p3672_p1 }
 0x538   : > { %p3675_p7 = pnand %p3674_p13, %p3668_p11 }
 0x53a   : > { %3678 = shalt.err (!%p3675_p7)
}
 0x53b   : > { %3316 = dma.vmem_to_hbm [thread:$0]  (%p5736_p3), %s5063_s19, 512, %s5061_s12, %s5068_s6, %s3785_s2, %s3785_s2, %s3786_s13  }
 0x53c PF: > { %s5737_s17 = sld [smem:[#allocation24_spill]]  ;;  %s5738_s30 = sld [smem:[#allocation25_spill]] }
 0x53d   : > { %p3345_p6 = scmp.ge.s32.totalorder %s3773_s9, 2 }
 0x542   : > { %s2087_s18 = sand.u32 1, %s5737_s17   ;;  %p5739_p9 = scmp.ne.s32.totalorder %s5738_s30, 0 }
 0x543   : > { %s2088_s20 = scalar_lea.sflag [#allocation8], %s2087_s18 }
 0x544   : > { %p3334_p2 = pnand %p3345_p6, %p5739_p9 }
 0x546   : > { %3732 = dma.done.wait (!%p3334_p2), %s2088_s20, 512  }
 0x547   : > { %3734 = vsyncadd (!%p3334_p2), %s2088_s20, 4294966784  ;;  %s5740_s15 = sld [smem:[#allocation23_spill]]  ;;  %s5741_s0 = sld [smem:[#allocation26_spill]] }
 0x54d   : > { %s2096_s11 = sand.u32 1, %s5740_s15   ;;  %p5742_p5 = scmp.ne.s32.totalorder %s5741_s0, 0 }
 0x54e   : > { %s2097_s4 = scalar_lea.sflag [#allocation16], %s2096_s11 }
 0x54f   : > { %p3337_p10 = pnand %p3345_p6, %p5742_p5 }
 0x551   : > { %3736 = dma.done.wait (!%p3337_p10), %s2097_s4, 512  }
 0x552   : > { %3738 = vsyncadd (!%p3337_p10), %s2097_s4, 4294966784  ;;  %s31_s9 = sadd.s32 1, %s3773_s9   ;;  %s5743_s2 = smov %s5753_s27 }
 0x553   : > { %p28_p3 = scmp.ge.s32.totalorder %s31_s9, 5   ;;  %s5744_s24 = smov %s3745_s25 }
 0x554   : > { %s5745_s25 = smov %s3749_s26  ;;  %s5746_s26 = smov %s4054_s21 }
 0x555   : > { %s5747_s27 = smov %s3757_s28  ;;  %s5748_s28 = smov %s3761_s29 }
 0x556   : > { %s5749_s29 = smov %s3990_s23  ;;  %s5750_s30 = smov %s3769_s8 }
 0x557   : > { %s5751_s8 = smov %s5743_s2  ;;  %30 = sbr.rel (!%p28_p3) target bundleno = 19 (0x13), region = 143 }
 0x55e   :  { %2102 = vsyncpa [#allocation7], 1 }
 0x55f   :  { %2104 = vsyncpa [#allocation7 + $0x1], 1 }
 0x560   :  { %2105 = vsyncpa [#allocation10], 1 }
 0x561   :  { %2107 = vsyncpa [#allocation10 + $0x1], 1 }
 0x562   :  { %2108 = vsyncpa [#allocation13], 1 }
 0x563   :  { %2109 = vsyncpa [#allocation8], 1 }
 0x564   :  { %2111 = vsyncpa [#allocation8 + $0x1], 1 }
 0x565   :  { %2112 = vsyncpa [#allocation16], 1 }
 0x566   :  { %2114 = vsyncpa [#allocation16 + $0x1], 1 }

</bundles_post_ra>
